<compile_context>
chip_gen: v6e
topology: v6e:2x2x1
jax: 0.10.0
libtpu: 0.0.40
codegen_flags: <defaults>
</compile_context>

<pallas_src>
import jax
import jax.numpy as jnp
import numpy as np
from jax import lax
from jax.experimental import pallas as pl
from jax.experimental.pallas import tpu as pltpu

EPS = 1e-5
_BN_TARGET_ROWS = 2048        # row tile for the HBM-bound BN/residual/ReLU pass

_VMEM_LIMIT_CACHE = None


def _vmem_limit_bytes():
    """Per-generation scoped-VMEM budget: ~3/4 of physical VMEM, capped at 96 MiB."""
    global _VMEM_LIMIT_CACHE
    if _VMEM_LIMIT_CACHE is None:
        try:
            cap = int(pltpu.get_tpu_info().vmem_capacity_bytes)
            _VMEM_LIMIT_CACHE = max(32 * 1024 * 1024,
                                    min(cap * 3 // 4, 96 * 1024 * 1024))
        except Exception:
            _VMEM_LIMIT_CACHE = 32 * 1024 * 1024
    return _VMEM_LIMIT_CACHE


def _bn_row_group(num_slabs, rows_per_slab):
    """Largest divisor g of num_slabs with g * rows_per_slab <= _BN_TARGET_ROWS."""
    target = max(1, _BN_TARGET_ROWS // max(rows_per_slab, 1))
    best = 1
    for g in range(1, min(num_slabs, target) + 1):
        if num_slabs % g == 0:
            best = g
    return best


# ----------------------------- Pallas kernels ------------------------------

def _bn_act_kernel(y_ref, scale_ref, shift_ref, o_ref):
    y = y_ref[...].astype(jnp.float32) * scale_ref[...] + shift_ref[...]
    o_ref[...] = jnp.maximum(y, 0.0).astype(o_ref.dtype)


def _bn_add_act_kernel(y_ref, scale_ref, shift_ref, res_ref, o_ref):
    y = y_ref[...].astype(jnp.float32) * scale_ref[...] + shift_ref[...]
    y = y + res_ref[...].astype(jnp.float32)
    o_ref[...] = jnp.maximum(y, 0.0).astype(o_ref.dtype)


# --------------------------- pallas_call wrappers ---------------------------

def _conv27(x_planes, w_taps, N, D, H, W, Cin, Cout):
    """3x3x3 conv (pad=1, stride=1) via in-kernel 27-tap MXU accumulation.

    x_planes: (N*(D+2), H+2, W+2, Cin) bf16 — spatially zero-padded activation planes.
    w_taps:   (27, Cin, Cout) bf16         — VMEM-resident weight.
    Returns   y     (N*D, H*W, Cout) bf16  — conv output,
              stats (N*D, 2,   Cout) f32   — per-step [column sum; column sum-of-squares]
                                             taken from the f32 accumulator (BN inputs).
    """
    HW = H * W
    d_pad = D + 2

    def kernel(x0_ref, x1_ref, x2_ref, w_ref, y_ref, stats_ref):
        planes = (x0_ref[0], x1_ref[0], x2_ref[0])          # (H+2, W+2, Cin) each
        acc = jnp.zeros((HW, Cout), jnp.float32)
        for kd in range(3):                                  # 27 taps, fully unrolled
            xp = planes[kd]
            for kh in range(3):
                for kw in range(3):
                    lhs = xp[kh:kh + H, kw:kw + W, :].reshape(HW, Cin)
                    tap = (kd * 3 + kh) * 3 + kw
                    acc = acc + jnp.dot(lhs, w_ref[tap],
                                        preferred_element_type=jnp.float32)
        y_ref[0] = acc.astype(y_ref.dtype)
        s = jnp.sum(acc, axis=0, keepdims=True)              # (1, Cout)
        sq = jnp.sum(acc * acc, axis=0, keepdims=True)       # (1, Cout)
        stats_ref[0] = jnp.concatenate([s, sq], axis=0)      # (2, Cout)

    def plane_map(kd):
        return lambda n, d: (n * d_pad + d + kd, 0, 0, 0)

    def plane_spec(kd):
        return pl.BlockSpec((1, H + 2, W + 2, Cin), plane_map(kd))

    cost = pl.CostEstimate(
        flops=2 * N * D * HW * 27 * Cin * Cout,
        transcendentals=0,
        bytes_accessed=(3 * x_planes.size * x_planes.dtype.itemsize
                        + w_taps.size * w_taps.dtype.itemsize
                        + N * D * HW * Cout * 2
                        + N * D * 2 * Cout * 4))

    return pl.pallas_call(
        kernel,
        out_shape=(jax.ShapeDtypeStruct((N * D, HW, Cout), jnp.bfloat16),
                   jax.ShapeDtypeStruct((N * D, 2, Cout), jnp.float32)),
        grid_spec=pltpu.PrefetchScalarGridSpec(
            num_scalar_prefetch=0,
            grid=(N, D),
            in_specs=[plane_spec(0), plane_spec(1), plane_spec(2),
                      pl.BlockSpec((27, Cin, Cout), lambda n, d: (0, 0, 0))],
            out_specs=(pl.BlockSpec((1, HW, Cout), lambda n, d: (n * D + d, 0, 0)),
                       pl.BlockSpec((1, 2, Cout), lambda n, d: (n * D + d, 0, 0))),
        ),
        compiler_params=pltpu.CompilerParams(
            dimension_semantics=("parallel", "parallel"),
            vmem_limit_bytes=_vmem_limit_bytes()),
        cost_estimate=cost,
    )(x_planes, x_planes, x_planes, w_taps)


def _bn_act(y, scale, shift, residual, out_dtype):
    """y*scale + shift (+ residual) -> ReLU, tiled over ~2048-row blocks."""
    G, HW, C = y.shape
    g = _bn_row_group(G, HW)
    blk = pl.BlockSpec((g, HW, C), lambda i: (i, 0, 0))
    vec = pl.BlockSpec((1, C), lambda i: (0, 0))             # resident across row tiles

    if residual is None:
        kernel = _bn_act_kernel
        operands = (y, scale, shift)
        in_specs = [blk, vec, vec]
    else:
        kernel = _bn_add_act_kernel
        operands = (y, scale, shift, residual)
        in_specs = [blk, vec, vec, blk]

    return pl.pallas_call(
        kernel,
        out_shape=jax.ShapeDtypeStruct((G, HW, C), out_dtype),
        grid_spec=pltpu.PrefetchScalarGridSpec(
            num_scalar_prefetch=0,
            grid=(G // g,),
            in_specs=in_specs,
            out_specs=blk,
        ),
        compiler_params=pltpu.CompilerParams(
            dimension_semantics=("parallel",),
            vmem_limit_bytes=_vmem_limit_bytes()),
    )(*operands)


# ------------------------------ JAX glue ------------------------------------

def _conv3x3x3_bn_act(x_ndhwc, w, gamma, beta, residual, out_dtype):
    """conv3x3x3(pad=1, stride=1) -> BatchNorm (batch stats) -> [+residual] -> ReLU.

    Returns the result flattened to (N*D, H*W, Cout)."""
    N, D, H, W, Cin = x_ndhwc.shape
    Cout = w.shape[-1]
    R = N * D * H * W

    x_bf = x_ndhwc.astype(jnp.bfloat16)
    x_pad = jnp.pad(x_bf, ((0, 0), (1, 1), (1, 1), (1, 1), (0, 0)))
    x_planes = x_pad.reshape(N * (D + 2), H + 2, W + 2, Cin)
    w_taps = w.astype(jnp.bfloat16).reshape(27, Cin, Cout)

    y, stats = _conv27(x_planes, w_taps, N, D, H, W, Cin, Cout)

    # BatchNorm batch statistics (training mode) from the in-kernel f32 partial sums.
    # TODO(synk): E[y^2]-E[y]^2 can cancel if conv outputs develop a large mean; switch to a
    # shifted/two-pass variance if activations grow.
    col_sum = jnp.sum(stats[:, 0, :], axis=0)
    col_sq = jnp.sum(stats[:, 1, :], axis=0)
    mean = col_sum / R
    var = jnp.maximum(col_sq / R - mean * mean, 0.0)
    scale = gamma.reshape(-1).astype(jnp.float32) * lax.rsqrt(var + EPS)
    shift = beta.reshape(-1).astype(jnp.float32) - mean * scale

    return _bn_act(y, scale.reshape(1, Cout), shift.reshape(1, Cout),
                   residual, out_dtype)


def init_params(key, inplanes, planes):
    k1, k2, k3, k4, k5, k6 = jax.random.split(key, 6)
    # conv weights stored as (3, 3, 3, Cin, Cout) so they flatten to (27, Cin, Cout)
    w1 = 0.1 * jax.random.normal(k1, (3, 3, 3, inplanes, planes), jnp.float32)
    w2 = 0.1 * jax.random.normal(k2, (3, 3, 3, planes, planes), jnp.float32)
    g1 = 1.0 + 0.1 * jax.random.normal(k3, (1, planes), jnp.float32)
    b1 = 0.1 * jax.random.normal(k4, (1, planes), jnp.float32)
    g2 = 1.0 + 0.1 * jax.random.normal(k5, (1, planes), jnp.float32)
    b2 = 0.1 * jax.random.normal(k6, (1, planes), jnp.float32)
    return dict(w1=w1, w2=w2, g1=g1, b1=b1, g2=g2, b2=b2)


@jax.jit
def basic_block_forward(x_ncdhw, params):
    """BasicBlock forward, stride=1, downsample=None (inplanes == planes)."""
    # TODO(synk): in a full network the NCDHW<->NDHWC transposes would be hoisted outside the
    # residual blocks instead of being paid per block.
    x = jnp.transpose(x_ncdhw, (0, 2, 3, 4, 1)).astype(jnp.float32)   # NCDHW -> NDHWC
    N, D, H, W, Cin = x.shape
    Cout = params["w1"].shape[-1]

    # conv1 -> bn1 -> relu   (bf16 intermediate: only consumed by conv2's bf16 MXU path)
    y1 = _conv3x3x3_bn_act(x, params["w1"], params["g1"], params["b1"],
                           residual=None, out_dtype=jnp.bfloat16)
    y1 = y1.reshape(N, D, H, W, Cout)

    # conv2 -> bn2 -> +residual -> relu   (identity shortcut, bf16, never padded/copied)
    res = x.astype(jnp.bfloat16).reshape(N * D, H * W, Cin)
    y2 = _conv3x3x3_bn_act(y1, params["w2"], params["g2"], params["b2"],
                           residual=res, out_dtype=jnp.float32)
    y2 = y2.reshape(N, D, H, W, Cout)
    return jnp.transpose(y2, (0, 4, 1, 2, 3))                          # back to NCDHW


# ---------------------------- pure-JAX reference ----------------------------

def _reference_forward(x_ncdhw, params):
    x = jnp.transpose(x_ncdhw, (0, 2, 3, 4, 1)).astype(jnp.float32)
    N, D, H, W, Cin = x.shape
    Cout = params["w1"].shape[-1]

    def im2col_f32(xin):
        n, d, h, w, c = xin.shape
        xp = jnp.pad(xin, ((0, 0), (1, 1), (1, 1), (1, 1), (0, 0)))
        patches = [xp[:, kd:kd + d, kh:kh + h, kw:kw + w, :]
                   for kd in range(3) for kh in range(3) for kw in range(3)]
        return jnp.stack(patches, axis=4).reshape(n * d * h * w, 27 * c)

    def conv(xin, wflat, cout):
        y = jnp.dot(im2col_f32(xin), wflat, precision=lax.Precision.HIGHEST)
        return y.reshape(N, D, H, W, cout)

    def bn(y, gamma, beta):
        mean = jnp.mean(y, axis=(0, 1, 2, 3))
        var = jnp.mean((y - mean) ** 2, axis=(0, 1, 2, 3))
        return (y - mean) * lax.rsqrt(var + EPS) * gamma[0] + beta[0]

    out = jnp.maximum(bn(conv(x, params["w1"].reshape(27 * Cin, Cout), Cout),
                         params["g1"], params["b1"]), 0.0)
    out = bn(conv(out, params["w2"].reshape(27 * Cout, Cout), Cout),
             params["g2"], params["b2"])
    out = jnp.maximum(out + x, 0.0)
    return jnp.transpose(out, (0, 4, 1, 2, 3))


# --------------------------------- main --------------------------------------

if __name__ == "__main__":
    key = jax.random.PRNGKey(0)
    kx, kp = jax.random.split(key)

    N, C, D, H, W = 2, 4, 8, 8, 8          # small NCDHW input, inplanes == planes == 4
    x = jax.random.normal(kx, (N, C, D, H, W), jnp.float32)
    params = init_params(kp, inplanes=C, planes=C)

    out = jax.block_until_ready(basic_block_forward(x, params))
    assert out.shape == (N, C, D, H, W), out.shape

    ref = jax.block_until_ready(_reference_forward(x, params))
    # bf16 MXU inputs + bf16 y / residual HBM intermediates (f32 accumulation, f32 BN stats)
    # vs. an f32 HIGHEST reference across two stacked convs -> a few 1e-2 worst-case error.
    np.testing.assert_allclose(np.asarray(out), np.asarray(ref), rtol=5e-2, atol=5e-2)

    print("KERNEL_OK")
</pallas_src>

<mosaic_0001>
module attributes {stable_mosaic.version = 11 : i64} {
  func.func @_bn_act_kernel(%arg0: i32, %arg1: memref<16x64x4xbf16, #tpu.memory_space<vmem>>, %arg2: memref<1x4xf32, #tpu.memory_space<vmem>>, %arg3: memref<1x4xf32, #tpu.memory_space<vmem>>, %arg4: memref<16x64x4xbf16, #tpu.memory_space<vmem>>) attributes {dimension_semantics = [#tpu.dimension_semantics<parallel>], iteration_bounds = array<i64: 1>, scalar_prefetch = 0 : i64, scratch_operands = 0 : i64, tpu.core_type = #tpu.core_type<tc>, window_params = [{transform_indices = @transform_0, window_bounds = array<i64: 16, 64, 4>}, {pipeline_mode = #tpu.pipeline_mode<synchronous>, transform_indices = @transform_1, window_bounds = array<i64: 1, 4>}, {pipeline_mode = #tpu.pipeline_mode<synchronous>, transform_indices = @transform_2, window_bounds = array<i64: 1, 4>}, {transform_indices = @transform_3, window_bounds = array<i64: 16, 64, 4>}]} {
    %c0 = arith.constant 0 : index
    %c0_0 = arith.constant 0 : index
    %c0_1 = arith.constant 0 : index
    %0 = vector.load %arg1[%c0, %c0_0, %c0_1] : memref<16x64x4xbf16, #tpu.memory_space<vmem>>, vector<16x64x4xbf16>
    %1 = arith.extf %0 : vector<16x64x4xbf16> to vector<16x64x4xf32>
    %c0_2 = arith.constant 0 : index
    %c0_3 = arith.constant 0 : index
    %2 = vector.load %arg2[%c0_2, %c0_3] : memref<1x4xf32, #tpu.memory_space<vmem>>, vector<1x4xf32>
    %3 = vector.shape_cast %2 : vector<1x4xf32> to vector<1x1x4xf32>
    %4 = vector.broadcast %3 : vector<1x1x4xf32> to vector<16x64x4xf32>
    %5 = arith.mulf %1, %4 : vector<16x64x4xf32>
    %c0_4 = arith.constant 0 : index
    %c0_5 = arith.constant 0 : index
    %6 = vector.load %arg3[%c0_4, %c0_5] : memref<1x4xf32, #tpu.memory_space<vmem>>, vector<1x4xf32>
    %7 = vector.shape_cast %6 : vector<1x4xf32> to vector<1x1x4xf32>
    %8 = vector.broadcast %7 : vector<1x1x4xf32> to vector<16x64x4xf32>
    %9 = arith.addf %5, %8 : vector<16x64x4xf32>
    %cst = arith.constant 0.000000e+00 : f32
    %10 = vector.broadcast %cst : f32 to vector<16x64x4xf32>
    %11 = arith.maximumf %9, %10 : vector<16x64x4xf32>
    %12 = arith.truncf %11 : vector<16x64x4xf32> to vector<16x64x4xbf16>
    %c0_6 = arith.constant 0 : index
    %c0_7 = arith.constant 0 : index
    %c0_8 = arith.constant 0 : index
    %13 = vector.load %arg4[%c0_6, %c0_7, %c0_8] : memref<16x64x4xbf16, #tpu.memory_space<vmem>>, vector<16x64x4xbf16>
    tpu.vector_store %arg4[%c0_6, %c0_7, %c0_8], %12 {strides = array<i32>} : memref<16x64x4xbf16, #tpu.memory_space<vmem>>, vector<16x64x4xbf16>,
    return
  }
  func.func @transform_0(%arg0: i32) -> (i32, i32, i32) {
    %c0_i32 = arith.constant 0 : i32
    %c0_i32_0 = arith.constant 0 : i32
    %c0_i32_1 = arith.constant 0 : i32
    return %arg0, %c0_i32, %c0_i32_0 : i32, i32, i32
  }
  func.func @transform_1(%arg0: i32) -> (i32, i32) {
    %c0_i32 = arith.constant 0 : i32
    %c0_i32_0 = arith.constant 0 : i32
    %c0_i32_1 = arith.constant 0 : i32
    return %c0_i32, %c0_i32_0 : i32, i32
  }
  func.func @transform_2(%arg0: i32) -> (i32, i32) {
    %c0_i32 = arith.constant 0 : i32
    %c0_i32_0 = arith.constant 0 : i32
    %c0_i32_1 = arith.constant 0 : i32
    return %c0_i32, %c0_i32_0 : i32, i32
  }
  func.func @transform_3(%arg0: i32) -> (i32, i32, i32) {
    %c0_i32 = arith.constant 0 : i32
    %c0_i32_0 = arith.constant 0 : i32
    %c0_i32_1 = arith.constant 0 : i32
    return %arg0, %c0_i32, %c0_i32_0 : i32, i32, i32
  }
}

module attributes {stable_mosaic.version = 11 : i64} {
  func.func @kernel(%arg0: i32, %arg1: i32, %arg2: memref<1x10x10x4xbf16, #tpu.memory_space<vmem>>, %arg3: memref<1x10x10x4xbf16, #tpu.memory_space<vmem>>, %arg4: memref<1x10x10x4xbf16, #tpu.memory_space<vmem>>, %arg5: memref<27x4x4xbf16, #tpu.memory_space<vmem>>, %arg6: memref<1x64x4xbf16, #tpu.memory_space<vmem>>, %arg7: memref<1x2x4xf32, #tpu.memory_space<vmem>>) attributes {dimension_semantics = [#tpu.dimension_semantics<parallel>, #tpu.dimension_semantics<parallel>], iteration_bounds = array<i64: 2, 8>, scalar_prefetch = 0 : i64, scratch_operands = 0 : i64, tpu.core_type = #tpu.core_type<tc>, window_params = [{transform_indices = @transform_0, window_bounds = array<i64: 1, 10, 10, 4>}, {transform_indices = @transform_1, window_bounds = array<i64: 1, 10, 10, 4>}, {transform_indices = @transform_2, window_bounds = array<i64: 1, 10, 10, 4>}, {pipeline_mode = #tpu.pipeline_mode<synchronous>, transform_indices = @transform_3, window_bounds = array<i64: 27, 4, 4>}, {transform_indices = @transform_4, window_bounds = array<i64: 1, 64, 4>}, {transform_indices = @transform_5, window_bounds = array<i64: 1, 2, 4>}]} {
    %c0 = arith.constant 0 : index
    %c0_0 = arith.constant 0 : index
    %c0_1 = arith.constant 0 : index
    %c0_2 = arith.constant 0 : index
    %0 = vector.load %arg2[%c0, %c0_0, %c0_1, %c0_2] : memref<1x10x10x4xbf16, #tpu.memory_space<vmem>>, vector<1x10x10x4xbf16>
    %1 = vector.shape_cast %0 : vector<1x10x10x4xbf16> to vector<10x10x4xbf16>
    %c0_3 = arith.constant 0 : index
    %c0_4 = arith.constant 0 : index
    %c0_5 = arith.constant 0 : index
    %c0_6 = arith.constant 0 : index
    %2 = vector.load %arg3[%c0_3, %c0_4, %c0_5, %c0_6] : memref<1x10x10x4xbf16, #tpu.memory_space<vmem>>, vector<1x10x10x4xbf16>
    %3 = vector.shape_cast %2 : vector<1x10x10x4xbf16> to vector<10x10x4xbf16>
    %c0_7 = arith.constant 0 : index
    %c0_8 = arith.constant 0 : index
    %c0_9 = arith.constant 0 : index
    %c0_10 = arith.constant 0 : index
    %4 = vector.load %arg4[%c0_7, %c0_8, %c0_9, %c0_10] : memref<1x10x10x4xbf16, #tpu.memory_space<vmem>>, vector<1x10x10x4xbf16>
    %5 = vector.shape_cast %4 : vector<1x10x10x4xbf16> to vector<10x10x4xbf16>
    %cst = arith.constant 0.000000e+00 : f32
    %6 = vector.broadcast %cst : f32 to vector<64x4xf32>
    %7 = vector.extract_strided_slice %1 {offsets = [0, 0, 0], sizes = [8, 8, 4], strides = [1, 1, 1]} : vector<10x10x4xbf16> to vector<8x8x4xbf16>
    %8 = vector.shape_cast %7 : vector<8x8x4xbf16> to vector<64x4xbf16>
    %c0_11 = arith.constant 0 : index
    %c0_12 = arith.constant 0 : index
    %c0_13 = arith.constant 0 : index
    %9 = vector.load %arg5[%c0_11, %c0_12, %c0_13] : memref<27x4x4xbf16, #tpu.memory_space<vmem>>, vector<1x4x4xbf16>
    %10 = vector.shape_cast %9 : vector<1x4x4xbf16> to vector<4x4xbf16>
    %cst_14 = arith.constant dense<0.000000e+00> : vector<64x4xf32>
    %11 = tpu.matmul %8, %10, %cst_14 {dimension_numbers = #tpu.dot_dimension_numbers<[1], [0], [0], [1], [0, 0, 1, 1], [], []>} : vector<64x4xbf16>, vector<4x4xbf16>, vector<64x4xf32> -> vector<64x4xf32>
    %12 = arith.addf %6, %11 : vector<64x4xf32>
    %13 = vector.extract_strided_slice %1 {offsets = [0, 1, 0], sizes = [8, 8, 4], strides = [1, 1, 1]} : vector<10x10x4xbf16> to vector<8x8x4xbf16>
    %14 = vector.shape_cast %13 : vector<8x8x4xbf16> to vector<64x4xbf16>
    %c1 = arith.constant 1 : index
    %c0_15 = arith.constant 0 : index
    %c0_16 = arith.constant 0 : index
    %15 = vector.load %arg5[%c1, %c0_15, %c0_16] : memref<27x4x4xbf16, #tpu.memory_space<vmem>>, vector<1x4x4xbf16>
    %16 = vector.shape_cast %15 : vector<1x4x4xbf16> to vector<4x4xbf16>
    %cst_17 = arith.constant dense<0.000000e+00> : vector<64x4xf32>
    %17 = tpu.matmul %14, %16, %cst_17 {dimension_numbers = #tpu.dot_dimension_numbers<[1], [0], [0], [1], [0, 0, 1, 1], [], []>} : vector<64x4xbf16>, vector<4x4xbf16>, vector<64x4xf32> -> vector<64x4xf32>
    %18 = arith.addf %12, %17 : vector<64x4xf32>
    %19 = vector.extract_strided_slice %1 {offsets = [0, 2, 0], sizes = [8, 8, 4], strides = [1, 1, 1]} : vector<10x10x4xbf16> to vector<8x8x4xbf16>
    %20 = vector.shape_cast %19 : vector<8x8x4xbf16> to vector<64x4xbf16>
    %c2 = arith.constant 2 : index
    %c0_18 = arith.constant 0 : index
    %c0_19 = arith.constant 0 : index
    %21 = vector.load %arg5[%c2, %c0_18, %c0_19] : memref<27x4x4xbf16, #tpu.memory_space<vmem>>, vector<1x4x4xbf16>
    %22 = vector.shape_cast %21 : vector<1x4x4xbf16> to vector<4x4xbf16>
    %cst_20 = arith.constant dense<0.000000e+00> : vector<64x4xf32>
    %23 = tpu.matmul %20, %22, %cst_20 {dimension_numbers = #tpu.dot_dimension_numbers<[1], [0], [0], [1], [0, 0, 1, 1], [], []>} : vector<64x4xbf16>, vector<4x4xbf16>, vector<64x4xf32> -> vector<64x4xf32>
    %24 = arith.addf %18, %23 : vector<64x4xf32>
    %25 = vector.extract_strided_slice %1 {offsets = [1, 0, 0], sizes = [8, 8, 4], strides = [1, 1, 1]} : vector<10x10x4xbf16> to vector<8x8x4xbf16>
    %26 = vector.shape_cast %25 : vector<8x8x4xbf16> to vector<64x4xbf16>
    %c3 = arith.constant 3 : index
    %c0_21 = arith.constant 0 : index
    %c0_22 = arith.constant 0 : index
    %27 = vector.load %arg5[%c3, %c0_21, %c0_22] : memref<27x4x4xbf16, #tpu.memory_space<vmem>>, vector<1x4x4xbf16>
    %28 = vector.shape_cast %27 : vector<1x4x4xbf16> to vector<4x4xbf16>
    %cst_23 = arith.constant dense<0.000000e+00> : vector<64x4xf32>
    %29 = tpu.matmul %26, %28, %cst_23 {dimension_numbers = #tpu.dot_dimension_numbers<[1], [0], [0], [1], [0, 0, 1, 1], [], []>} : vector<64x4xbf16>, vector<4x4xbf16>, vector<64x4xf32> -> vector<64x4xf32>
    %30 = arith.addf %24, %29 : vector<64x4xf32>
    %31 = vector.extract_strided_slice %1 {offsets = [1, 1, 0], sizes = [8, 8, 4], strides = [1, 1, 1]} : vector<10x10x4xbf16> to vector<8x8x4xbf16>
    %32 = vector.shape_cast %31 : vector<8x8x4xbf16> to vector<64x4xbf16>
    %c4 = arith.constant 4 : index
    %c0_24 = arith.constant 0 : index
    %c0_25 = arith.constant 0 : index
    %33 = vector.load %arg5[%c4, %c0_24, %c0_25] : memref<27x4x4xbf16, #tpu.memory_space<vmem>>, vector<1x4x4xbf16>
    %34 = vector.shape_cast %33 : vector<1x4x4xbf16> to vector<4x4xbf16>
    %cst_26 = arith.constant dense<0.000000e+00> : vector<64x4xf32>
    %35 = tpu.matmul %32, %34, %cst_26 {dimension_numbers = #tpu.dot_dimension_numbers<[1], [0], [0], [1], [0, 0, 1, 1], [], []>} : vector<64x4xbf16>, vector<4x4xbf16>, vector<64x4xf32> -> vector<64x4xf32>
    %36 = arith.addf %30, %35 : vector<64x4xf32>
    %37 = vector.extract_strided_slice %1 {offsets = [1, 2, 0], sizes = [8, 8, 4], strides = [1, 1, 1]} : vector<10x10x4xbf16> to vector<8x8x4xbf16>
    %38 = vector.shape_cast %37 : vector<8x8x4xbf16> to vector<64x4xbf16>
    %c5 = arith.constant 5 : index
    %c0_27 = arith.constant 0 : index
    %c0_28 = arith.constant 0 : index
    %39 = vector.load %arg5[%c5, %c0_27, %c0_28] : memref<27x4x4xbf16, #tpu.memory_space<vmem>>, vector<1x4x4xbf16>
    %40 = vector.shape_cast %39 : vector<1x4x4xbf16> to vector<4x4xbf16>
    %cst_29 = arith.constant dense<0.000000e+00> : vector<64x4xf32>
    %41 = tpu.matmul %38, %40, %cst_29 {dimension_numbers = #tpu.dot_dimension_numbers<[1], [0], [0], [1], [0, 0, 1, 1], [], []>} : vector<64x4xbf16>, vector<4x4xbf16>, vector<64x4xf32> -> vector<64x4xf32>
    %42 = arith.addf %36, %41 : vector<64x4xf32>
    %43 = vector.extract_strided_slice %1 {offsets = [2, 0, 0], sizes = [8, 8, 4], strides = [1, 1, 1]} : vector<10x10x4xbf16> to vector<8x8x4xbf16>
    %44 = vector.shape_cast %43 : vector<8x8x4xbf16> to vector<64x4xbf16>
    %c6 = arith.constant 6 : index
    %c0_30 = arith.constant 0 : index
    %c0_31 = arith.constant 0 : index
    %45 = vector.load %arg5[%c6, %c0_30, %c0_31] : memref<27x4x4xbf16, #tpu.memory_space<vmem>>, vector<1x4x4xbf16>
    %46 = vector.shape_cast %45 : vector<1x4x4xbf16> to vector<4x4xbf16>
    %cst_32 = arith.constant dense<0.000000e+00> : vector<64x4xf32>
    %47 = tpu.matmul %44, %46, %cst_32 {dimension_numbers = #tpu.dot_dimension_numbers<[1], [0], [0], [1], [0, 0, 1, 1], [], []>} : vector<64x4xbf16>, vector<4x4xbf16>, vector<64x4xf32> -> vector<64x4xf32>
    %48 = arith.addf %42, %47 : vector<64x4xf32>
    %49 = vector.extract_strided_slice %1 {offsets = [2, 1, 0], sizes = [8, 8, 4], strides = [1, 1, 1]} : vector<10x10x4xbf16> to vector<8x8x4xbf16>
    %50 = vector.shape_cast %49 : vector<8x8x4xbf16> to vector<64x4xbf16>
    %c7 = arith.constant 7 : index
    %c0_33 = arith.constant 0 : index
    %c0_34 = arith.constant 0 : index
    %51 = vector.load %arg5[%c7, %c0_33, %c0_34] : memref<27x4x4xbf16, #tpu.memory_space<vmem>>, vector<1x4x4xbf16>
    %52 = vector.shape_cast %51 : vector<1x4x4xbf16> to vector<4x4xbf16>
    %cst_35 = arith.constant dense<0.000000e+00> : vector<64x4xf32>
    %53 = tpu.matmul %50, %52, %cst_35 {dimension_numbers = #tpu.dot_dimension_numbers<[1], [0], [0], [1], [0, 0, 1, 1], [], []>} : vector<64x4xbf16>, vector<4x4xbf16>, vector<64x4xf32> -> vector<64x4xf32>
    %54 = arith.addf %48, %53 : vector<64x4xf32>
    %55 = vector.extract_strided_slice %1 {offsets = [2, 2, 0], sizes = [8, 8, 4], strides = [1, 1, 1]} : vector<10x10x4xbf16> to vector<8x8x4xbf16>
    %56 = vector.shape_cast %55 : vector<8x8x4xbf16> to vector<64x4xbf16>
    %c8 = arith.constant 8 : index
    %c0_36 = arith.constant 0 : index
    %c0_37 = arith.constant 0 : index
    %57 = vector.load %arg5[%c8, %c0_36, %c0_37] : memref<27x4x4xbf16, #tpu.memory_space<vmem>>, vector<1x4x4xbf16>
    %58 = vector.shape_cast %57 : vector<1x4x4xbf16> to vector<4x4xbf16>
    %cst_38 = arith.constant dense<0.000000e+00> : vector<64x4xf32>
    %59 = tpu.matmul %56, %58, %cst_38 {dimension_numbers = #tpu.dot_dimension_numbers<[1], [0], [0], [1], [0, 0, 1, 1], [], []>} : vector<64x4xbf16>, vector<4x4xbf16>, vector<64x4xf32> -> vector<64x4xf32>
    %60 = arith.addf %54, %59 : vector<64x4xf32>
    %61 = vector.extract_strided_slice %3 {offsets = [0, 0, 0], sizes = [8, 8, 4], strides = [1, 1, 1]} : vector<10x10x4xbf16> to vector<8x8x4xbf16>
    %62 = vector.shape_cast %61 : vector<8x8x4xbf16> to vector<64x4xbf16>
    %c9 = arith.constant 9 : index
    %c0_39 = arith.constant 0 : index
    %c0_40 = arith.constant 0 : index
    %63 = vector.load %arg5[%c9, %c0_39, %c0_40] : memref<27x4x4xbf16, #tpu.memory_space<vmem>>, vector<1x4x4xbf16>
    %64 = vector.shape_cast %63 : vector<1x4x4xbf16> to vector<4x4xbf16>
    %cst_41 = arith.constant dense<0.000000e+00> : vector<64x4xf32>
    %65 = tpu.matmul %62, %64, %cst_41 {dimension_numbers = #tpu.dot_dimension_numbers<[1], [0], [0], [1], [0, 0, 1, 1], [], []>} : vector<64x4xbf16>, vector<4x4xbf16>, vector<64x4xf32> -> vector<64x4xf32>
    %66 = arith.addf %60, %65 : vector<64x4xf32>
    %67 = vector.extract_strided_slice %3 {offsets = [0, 1, 0], sizes = [8, 8, 4], strides = [1, 1, 1]} : vector<10x10x4xbf16> to vector<8x8x4xbf16>
    %68 = vector.shape_cast %67 : vector<8x8x4xbf16> to vector<64x4xbf16>
    %c10 = arith.constant 10 : index
    %c0_42 = arith.constant 0 : index
    %c0_43 = arith.constant 0 : index
    %69 = vector.load %arg5[%c10, %c0_42, %c0_43] : memref<27x4x4xbf16, #tpu.memory_space<vmem>>, vector<1x4x4xbf16>
    %70 = vector.shape_cast %69 : vector<1x4x4xbf16> to vector<4x4xbf16>
    %cst_44 = arith.constant dense<0.000000e+00> : vector<64x4xf32>
    %71 = tpu.matmul %68, %70, %cst_44 {dimension_numbers = #tpu.dot_dimension_numbers<[1], [0], [0], [1], [0, 0, 1, 1], [], []>} : vector<64x4xbf16>, vector<4x4xbf16>, vector<64x4xf32> -> vector<64x4xf32>
    %72 = arith.addf %66, %71 : vector<64x4xf32>
    %73 = vector.extract_strided_slice %3 {offsets = [0, 2, 0], sizes = [8, 8, 4], strides = [1, 1, 1]} : vector<10x10x4xbf16> to vector<8x8x4xbf16>
    %74 = vector.shape_cast %73 : vector<8x8x4xbf16> to vector<64x4xbf16>
    %c11 = arith.constant 11 : index
    %c0_45 = arith.constant 0 : index
    %c0_46 = arith.constant 0 : index
    %75 = vector.load %arg5[%c11, %c0_45, %c0_46] : memref<27x4x4xbf16, #tpu.memory_space<vmem>>, vector<1x4x4xbf16>
    %76 = vector.shape_cast %75 : vector<1x4x4xbf16> to vector<4x4xbf16>
    %cst_47 = arith.constant dense<0.000000e+00> : vector<64x4xf32>
    %77 = tpu.matmul %74, %76, %cst_47 {dimension_numbers = #tpu.dot_dimension_numbers<[1], [0], [0], [1], [0, 0, 1, 1], [], []>} : vector<64x4xbf16>, vector<4x4xbf16>, vector<64x4xf32> -> vector<64x4xf32>
    %78 = arith.addf %72, %77 : vector<64x4xf32>
    %79 = vector.extract_strided_slice %3 {offsets = [1, 0, 0], sizes = [8, 8, 4], strides = [1, 1, 1]} : vector<10x10x4xbf16> to vector<8x8x4xbf16>
    %80 = vector.shape_cast %79 : vector<8x8x4xbf16> to vector<64x4xbf16>
    %c12 = arith.constant 12 : index
    %c0_48 = arith.constant 0 : index
    %c0_49 = arith.constant 0 : index
    %81 = vector.load %arg5[%c12, %c0_48, %c0_49] : memref<27x4x4xbf16, #tpu.memory_space<vmem>>, vector<1x4x4xbf16>
    %82 = vector.shape_cast %81 : vector<1x4x4xbf16> to vector<4x4xbf16>
    %cst_50 = arith.constant dense<0.000000e+00> : vector<64x4xf32>
    %83 = tpu.matmul %80, %82, %cst_50 {dimension_numbers = #tpu.dot_dimension_numbers<[1], [0], [0], [1], [0, 0, 1, 1], [], []>} : vector<64x4xbf16>, vector<4x4xbf16>, vector<64x4xf32> -> vector<64x4xf32>
    %84 = arith.addf %78, %83 : vector<64x4xf32>
    %85 = vector.extract_strided_slice %3 {offsets = [1, 1, 0], sizes = [8, 8, 4], strides = [1, 1, 1]} : vector<10x10x4xbf16> to vector<8x8x4xbf16>
    %86 = vector.shape_cast %85 : vector<8x8x4xbf16> to vector<64x4xbf16>
    %c13 = arith.constant 13 : index
    %c0_51 = arith.constant 0 : index
    %c0_52 = arith.constant 0 : index
    %87 = vector.load %arg5[%c13, %c0_51, %c0_52] : memref<27x4x4xbf16, #tpu.memory_space<vmem>>, vector<1x4x4xbf16>
    %88 = vector.shape_cast %87 : vector<1x4x4xbf16> to vector<4x4xbf16>
    %cst_53 = arith.constant dense<0.000000e+00> : vector<64x4xf32>
    %89 = tpu.matmul %86, %88, %cst_53 {dimension_numbers = #tpu.dot_dimension_numbers<[1], [0], [0], [1], [0, 0, 1, 1], [], []>} : vector<64x4xbf16>, vector<4x4xbf16>, vector<64x4xf32> -> vector<64x4xf32>
    %90 = arith.addf %84, %89 : vector<64x4xf32>
    %91 = vector.extract_strided_slice %3 {offsets = [1, 2, 0], sizes = [8, 8, 4], strides = [1, 1, 1]} : vector<10x10x4xbf16> to vector<8x8x4xbf16>
    %92 = vector.shape_cast %91 : vector<8x8x4xbf16> to vector<64x4xbf16>
    %c14 = arith.constant 14 : index
    %c0_54 = arith.constant 0 : index
    %c0_55 = arith.constant 0 : index
    %93 = vector.load %arg5[%c14, %c0_54, %c0_55] : memref<27x4x4xbf16, #tpu.memory_space<vmem>>, vector<1x4x4xbf16>
    %94 = vector.shape_cast %93 : vector<1x4x4xbf16> to vector<4x4xbf16>
    %cst_56 = arith.constant dense<0.000000e+00> : vector<64x4xf32>
    %95 = tpu.matmul %92, %94, %cst_56 {dimension_numbers = #tpu.dot_dimension_numbers<[1], [0], [0], [1], [0, 0, 1, 1], [], []>} : vector<64x4xbf16>, vector<4x4xbf16>, vector<64x4xf32> -> vector<64x4xf32>
    %96 = arith.addf %90, %95 : vector<64x4xf32>
    %97 = vector.extract_strided_slice %3 {offsets = [2, 0, 0], sizes = [8, 8, 4], strides = [1, 1, 1]} : vector<10x10x4xbf16> to vector<8x8x4xbf16>
    %98 = vector.shape_cast %97 : vector<8x8x4xbf16> to vector<64x4xbf16>
    %c15 = arith.constant 15 : index
    %c0_57 = arith.constant 0 : index
    %c0_58 = arith.constant 0 : index
    %99 = vector.load %arg5[%c15, %c0_57, %c0_58] : memref<27x4x4xbf16, #tpu.memory_space<vmem>>, vector<1x4x4xbf16>
    %100 = vector.shape_cast %99 : vector<1x4x4xbf16> to vector<4x4xbf16>
    %cst_59 = arith.constant dense<0.000000e+00> : vector<64x4xf32>
    %101 = tpu.matmul %98, %100, %cst_59 {dimension_numbers = #tpu.dot_dimension_numbers<[1], [0], [0], [1], [0, 0, 1, 1], [], []>} : vector<64x4xbf16>, vector<4x4xbf16>, vector<64x4xf32> -> vector<64x4xf32>
    %102 = arith.addf %96, %101 : vector<64x4xf32>
    %103 = vector.extract_strided_slice %3 {offsets = [2, 1, 0], sizes = [8, 8, 4], strides = [1, 1, 1]} : vector<10x10x4xbf16> to vector<8x8x4xbf16>
    %104 = vector.shape_cast %103 : vector<8x8x4xbf16> to vector<64x4xbf16>
    %c16 = arith.constant 16 : index
    %c0_60 = arith.constant 0 : index
    %c0_61 = arith.constant 0 : index
    %105 = vector.load %arg5[%c16, %c0_60, %c0_61] : memref<27x4x4xbf16, #tpu.memory_space<vmem>>, vector<1x4x4xbf16>
    %106 = vector.shape_cast %105 : vector<1x4x4xbf16> to vector<4x4xbf16>
    %cst_62 = arith.constant dense<0.000000e+00> : vector<64x4xf32>
    %107 = tpu.matmul %104, %106, %cst_62 {dimension_numbers = #tpu.dot_dimension_numbers<[1], [0], [0], [1], [0, 0, 1, 1], [], []>} : vector<64x4xbf16>, vector<4x4xbf16>, vector<64x4xf32> -> vector<64x4xf32>
    %108 = arith.addf %102, %107 : vector<64x4xf32>
    %109 = vector.extract_strided_slice %3 {offsets = [2, 2, 0], sizes = [8, 8, 4], strides = [1, 1, 1]} : vector<10x10x4xbf16> to vector<8x8x4xbf16>
    %110 = vector.shape_cast %109 : vector<8x8x4xbf16> to vector<64x4xbf16>
    %c17 = arith.constant 17 : index
    %c0_63 = arith.constant 0 : index
    %c0_64 = arith.constant 0 : index
    %111 = vector.load %arg5[%c17, %c0_63, %c0_64] : memref<27x4x4xbf16, #tpu.memory_space<vmem>>, vector<1x4x4xbf16>
    %112 = vector.shape_cast %111 : vector<1x4x4xbf16> to vector<4x4xbf16>
    %cst_65 = arith.constant dense<0.000000e+00> : vector<64x4xf32>
    %113 = tpu.matmul %110, %112, %cst_65 {dimension_numbers = #tpu.dot_dimension_numbers<[1], [0], [0], [1], [0, 0, 1, 1], [], []>} : vector<64x4xbf16>, vector<4x4xbf16>, vector<64x4xf32> -> vector<64x4xf32>
    %114 = arith.addf %108, %113 : vector<64x4xf32>
    %115 = vector.extract_strided_slice %5 {offsets = [0, 0, 0], sizes = [8, 8, 4], strides = [1, 1, 1]} : vector<10x10x4xbf16> to vector<8x8x4xbf16>
    %116 = vector.shape_cast %115 : vector<8x8x4xbf16> to vector<64x4xbf16>
    %c18 = arith.constant 18 : index
    %c0_66 = arith.constant 0 : index
    %c0_67 = arith.constant 0 : index
    %117 = vector.load %arg5[%c18, %c0_66, %c0_67] : memref<27x4x4xbf16, #tpu.memory_space<vmem>>, vector<1x4x4xbf16>
    %118 = vector.shape_cast %117 : vector<1x4x4xbf16> to vector<4x4xbf16>
    %cst_68 = arith.constant dense<0.000000e+00> : vector<64x4xf32>
    %119 = tpu.matmul %116, %118, %cst_68 {dimension_numbers = #tpu.dot_dimension_numbers<[1], [0], [0], [1], [0, 0, 1, 1], [], []>} : vector<64x4xbf16>, vector<4x4xbf16>, vector<64x4xf32> -> vector<64x4xf32>
    %120 = arith.addf %114, %119 : vector<64x4xf32>
    %121 = vector.extract_strided_slice %5 {offsets = [0, 1, 0], sizes = [8, 8, 4], strides = [1, 1, 1]} : vector<10x10x4xbf16> to vector<8x8x4xbf16>
    %122 = vector.shape_cast %121 : vector<8x8x4xbf16> to vector<64x4xbf16>
    %c19 = arith.constant 19 : index
    %c0_69 = arith.constant 0 : index
    %c0_70 = arith.constant 0 : index
    %123 = vector.load %arg5[%c19, %c0_69, %c0_70] : memref<27x4x4xbf16, #tpu.memory_space<vmem>>, vector<1x4x4xbf16>
    %124 = vector.shape_cast %123 : vector<1x4x4xbf16> to vector<4x4xbf16>
    %cst_71 = arith.constant dense<0.000000e+00> : vector<64x4xf32>
    %125 = tpu.matmul %122, %124, %cst_71 {dimension_numbers = #tpu.dot_dimension_numbers<[1], [0], [0], [1], [0, 0, 1, 1], [], []>} : vector<64x4xbf16>, vector<4x4xbf16>, vector<64x4xf32> -> vector<64x4xf32>
    %126 = arith.addf %120, %125 : vector<64x4xf32>
    %127 = vector.extract_strided_slice %5 {offsets = [0, 2, 0], sizes = [8, 8, 4], strides = [1, 1, 1]} : vector<10x10x4xbf16> to vector<8x8x4xbf16>
    %128 = vector.shape_cast %127 : vector<8x8x4xbf16> to vector<64x4xbf16>
    %c20 = arith.constant 20 : index
    %c0_72 = arith.constant 0 : index
    %c0_73 = arith.constant 0 : index
    %129 = vector.load %arg5[%c20, %c0_72, %c0_73] : memref<27x4x4xbf16, #tpu.memory_space<vmem>>, vector<1x4x4xbf16>
    %130 = vector.shape_cast %129 : vector<1x4x4xbf16> to vector<4x4xbf16>
    %cst_74 = arith.constant dense<0.000000e+00> : vector<64x4xf32>
    %131 = tpu.matmul %128, %130, %cst_74 {dimension_numbers = #tpu.dot_dimension_numbers<[1], [0], [0], [1], [0, 0, 1, 1], [], []>} : vector<64x4xbf16>, vector<4x4xbf16>, vector<64x4xf32> -> vector<64x4xf32>
    %132 = arith.addf %126, %131 : vector<64x4xf32>
    %133 = vector.extract_strided_slice %5 {offsets = [1, 0, 0], sizes = [8, 8, 4], strides = [1, 1, 1]} : vector<10x10x4xbf16> to vector<8x8x4xbf16>
    %134 = vector.shape_cast %133 : vector<8x8x4xbf16> to vector<64x4xbf16>
    %c21 = arith.constant 21 : index
    %c0_75 = arith.constant 0 : index
    %c0_76 = arith.constant 0 : index
    %135 = vector.load %arg5[%c21, %c0_75, %c0_76] : memref<27x4x4xbf16, #tpu.memory_space<vmem>>, vector<1x4x4xbf16>
    %136 = vector.shape_cast %135 : vector<1x4x4xbf16> to vector<4x4xbf16>
    %cst_77 = arith.constant dense<0.000000e+00> : vector<64x4xf32>
    %137 = tpu.matmul %134, %136, %cst_77 {dimension_numbers = #tpu.dot_dimension_numbers<[1], [0], [0], [1], [0, 0, 1, 1], [], []>} : vector<64x4xbf16>, vector<4x4xbf16>, vector<64x4xf32> -> vector<64x4xf32>
    %138 = arith.addf %132, %137 : vector<64x4xf32>
    %139 = vector.extract_strided_slice %5 {offsets = [1, 1, 0], sizes = [8, 8, 4], strides = [1, 1, 1]} : vector<10x10x4xbf16> to vector<8x8x4xbf16>
    %140 = vector.shape_cast %139 : vector<8x8x4xbf16> to vector<64x4xbf16>
    %c22 = arith.constant 22 : index
    %c0_78 = arith.constant 0 : index
    %c0_79 = arith.constant 0 : index
    %141 = vector.load %arg5[%c22, %c0_78, %c0_79] : memref<27x4x4xbf16, #tpu.memory_space<vmem>>, vector<1x4x4xbf16>
    %142 = vector.shape_cast %141 : vector<1x4x4xbf16> to vector<4x4xbf16>
    %cst_80 = arith.constant dense<0.000000e+00> : vector<64x4xf32>
    %143 = tpu.matmul %140, %142, %cst_80 {dimension_numbers = #tpu.dot_dimension_numbers<[1], [0], [0], [1], [0, 0, 1, 1], [], []>} : vector<64x4xbf16>, vector<4x4xbf16>, vector<64x4xf32> -> vector<64x4xf32>
    %144 = arith.addf %138, %143 : vector<64x4xf32>
    %145 = vector.extract_strided_slice %5 {offsets = [1, 2, 0], sizes = [8, 8, 4], strides = [1, 1, 1]} : vector<10x10x4xbf16> to vector<8x8x4xbf16>
    %146 = vector.shape_cast %145 : vector<8x8x4xbf16> to vector<64x4xbf16>
    %c23 = arith.constant 23 : index
    %c0_81 = arith.constant 0 : index
    %c0_82 = arith.constant 0 : index
    %147 = vector.load %arg5[%c23, %c0_81, %c0_82] : memref<27x4x4xbf16, #tpu.memory_space<vmem>>, vector<1x4x4xbf16>
    %148 = vector.shape_cast %147 : vector<1x4x4xbf16> to vector<4x4xbf16>
    %cst_83 = arith.constant dense<0.000000e+00> : vector<64x4xf32>
    %149 = tpu.matmul %146, %148, %cst_83 {dimension_numbers = #tpu.dot_dimension_numbers<[1], [0], [0], [1], [0, 0, 1, 1], [], []>} : vector<64x4xbf16>, vector<4x4xbf16>, vector<64x4xf32> -> vector<64x4xf32>
    %150 = arith.addf %144, %149 : vector<64x4xf32>
    %151 = vector.extract_strided_slice %5 {offsets = [2, 0, 0], sizes = [8, 8, 4], strides = [1, 1, 1]} : vector<10x10x4xbf16> to vector<8x8x4xbf16>
    %152 = vector.shape_cast %151 : vector<8x8x4xbf16> to vector<64x4xbf16>
    %c24 = arith.constant 24 : index
    %c0_84 = arith.constant 0 : index
    %c0_85 = arith.constant 0 : index
    %153 = vector.load %arg5[%c24, %c0_84, %c0_85] : memref<27x4x4xbf16, #tpu.memory_space<vmem>>, vector<1x4x4xbf16>
    %154 = vector.shape_cast %153 : vector<1x4x4xbf16> to vector<4x4xbf16>
    %cst_86 = arith.constant dense<0.000000e+00> : vector<64x4xf32>
    %155 = tpu.matmul %152, %154, %cst_86 {dimension_numbers = #tpu.dot_dimension_numbers<[1], [0], [0], [1], [0, 0, 1, 1], [], []>} : vector<64x4xbf16>, vector<4x4xbf16>, vector<64x4xf32> -> vector<64x4xf32>
    %156 = arith.addf %150, %155 : vector<64x4xf32>
    %157 = vector.extract_strided_slice %5 {offsets = [2, 1, 0], sizes = [8, 8, 4], strides = [1, 1, 1]} : vector<10x10x4xbf16> to vector<8x8x4xbf16>
    %158 = vector.shape_cast %157 : vector<8x8x4xbf16> to vector<64x4xbf16>
    %c25 = arith.constant 25 : index
    %c0_87 = arith.constant 0 : index
    %c0_88 = arith.constant 0 : index
    %159 = vector.load %arg5[%c25, %c0_87, %c0_88] : memref<27x4x4xbf16, #tpu.memory_space<vmem>>, vector<1x4x4xbf16>
    %160 = vector.shape_cast %159 : vector<1x4x4xbf16> to vector<4x4xbf16>
    %cst_89 = arith.constant dense<0.000000e+00> : vector<64x4xf32>
    %161 = tpu.matmul %158, %160, %cst_89 {dimension_numbers = #tpu.dot_dimension_numbers<[1], [0], [0], [1], [0, 0, 1, 1], [], []>} : vector<64x4xbf16>, vector<4x4xbf16>, vector<64x4xf32> -> vector<64x4xf32>
    %162 = arith.addf %156, %161 : vector<64x4xf32>
    %163 = vector.extract_strided_slice %5 {offsets = [2, 2, 0], sizes = [8, 8, 4], strides = [1, 1, 1]} : vector<10x10x4xbf16> to vector<8x8x4xbf16>
    %164 = vector.shape_cast %163 : vector<8x8x4xbf16> to vector<64x4xbf16>
    %c26 = arith.constant 26 : index
    %c0_90 = arith.constant 0 : index
    %c0_91 = arith.constant 0 : index
    %165 = vector.load %arg5[%c26, %c0_90, %c0_91] : memref<27x4x4xbf16, #tpu.memory_space<vmem>>, vector<1x4x4xbf16>
    %166 = vector.shape_cast %165 : vector<1x4x4xbf16> to vector<4x4xbf16>
    %cst_92 = arith.constant dense<0.000000e+00> : vector<64x4xf32>
    %167 = tpu.matmul %164, %166, %cst_92 {dimension_numbers = #tpu.dot_dimension_numbers<[1], [0], [0], [1], [0, 0, 1, 1], [], []>} : vector<64x4xbf16>, vector<4x4xbf16>, vector<64x4xf32> -> vector<64x4xf32>
    %168 = arith.addf %162, %167 : vector<64x4xf32>
    %169 = arith.truncf %168 : vector<64x4xf32> to vector<64x4xbf16>
    %c0_93 = arith.constant 0 : index
    %c0_94 = arith.constant 0 : index
    %c0_95 = arith.constant 0 : index
    %170 = vector.load %arg6[%c0_93, %c0_94, %c0_95] : memref<1x64x4xbf16, #tpu.memory_space<vmem>>, vector<1x64x4xbf16>
    %171 = vector.shape_cast %170 : vector<1x64x4xbf16> to vector<64x4xbf16>
    %172 = vector.shape_cast %169 : vector<64x4xbf16> to vector<1x64x4xbf16>
    tpu.vector_store %arg6[%c0_93, %c0_94, %c0_95], %172 {strides = array<i32>} : memref<1x64x4xbf16, #tpu.memory_space<vmem>>, vector<1x64x4xbf16>,
    %cst_96 = arith.constant dense<0.000000e+00> : vector<4xf32>
    %173 = vector.multi_reduction <add>, %168, %cst_96 [0] : vector<64x4xf32> to vector<4xf32>
    %174 = vector.shape_cast %173 : vector<4xf32> to vector<1x4xf32>
    %175 = arith.mulf %168, %168 : vector<64x4xf32>
    %cst_97 = arith.constant dense<0.000000e+00> : vector<4xf32>
    %176 = vector.multi_reduction <add>, %175, %cst_97 [0] : vector<64x4xf32> to vector<4xf32>
    %177 = vector.shape_cast %176 : vector<4xf32> to vector<1x4xf32>
    %178 = tpu.concatenate %174, %177 in 0 : vector<1x4xf32>, vector<1x4xf32> -> vector<2x4xf32>
    %c0_98 = arith.constant 0 : index
    %c0_99 = arith.constant 0 : index
    %c0_100 = arith.constant 0 : index
    %179 = vector.load %arg7[%c0_98, %c0_99, %c0_100] : memref<1x2x4xf32, #tpu.memory_space<vmem>>, vector<1x2x4xf32>
    %180 = vector.shape_cast %179 : vector<1x2x4xf32> to vector<2x4xf32>
    %181 = vector.shape_cast %178 : vector<2x4xf32> to vector<1x2x4xf32>
    tpu.vector_store %arg7[%c0_98, %c0_99, %c0_100], %181 {strides = array<i32>} : memref<1x2x4xf32, #tpu.memory_space<vmem>>, vector<1x2x4xf32>,
    return
  }
  func.func @transform_0(%arg0: i32, %arg1: i32) -> (i32, i32, i32, i32) {
    %c10_i32 = arith.constant 10 : i32
    %0 = arith.muli %arg0, %c10_i32 : i32
    %1 = arith.addi %0, %arg1 : i32
    %c0_i32 = arith.constant 0 : i32
    %2 = arith.addi %1, %c0_i32 : i32
    %c0_i32_0 = arith.constant 0 : i32
    %c0_i32_1 = arith.constant 0 : i32
    %c0_i32_2 = arith.constant 0 : i32
    %c0_i32_3 = arith.constant 0 : i32
    return %2, %c0_i32_0, %c0_i32_1, %c0_i32_2 : i32, i32, i32, i32
  }
  func.func @transform_1(%arg0: i32, %arg1: i32) -> (i32, i32, i32, i32) {
    %c10_i32 = arith.constant 10 : i32
    %0 = arith.muli %arg0, %c10_i32 : i32
    %1 = arith.addi %0, %arg1 : i32
    %c1_i32 = arith.constant 1 : i32
    %2 = arith.addi %1, %c1_i32 : i32
    %c0_i32 = arith.constant 0 : i32
    %c0_i32_0 = arith.constant 0 : i32
    %c0_i32_1 = arith.constant 0 : i32
    %c0_i32_2 = arith.constant 0 : i32
    return %2, %c0_i32, %c0_i32_0, %c0_i32_1 : i32, i32, i32, i32
  }
  func.func @transform_2(%arg0: i32, %arg1: i32) -> (i32, i32, i32, i32) {
    %c10_i32 = arith.constant 10 : i32
    %0 = arith.muli %arg0, %c10_i32 : i32
    %1 = arith.addi %0, %arg1 : i32
    %c2_i32 = arith.constant 2 : i32
    %2 = arith.addi %1, %c2_i32 : i32
    %c0_i32 = arith.constant 0 : i32
    %c0_i32_0 = arith.constant 0 : i32
    %c0_i32_1 = arith.constant 0 : i32
    %c0_i32_2 = arith.constant 0 : i32
    return %2, %c0_i32, %c0_i32_0, %c0_i32_1 : i32, i32, i32, i32
  }
  func.func @transform_3(%arg0: i32, %arg1: i32) -> (i32, i32, i32) {
    %c0_i32 = arith.constant 0 : i32
    %c0_i32_0 = arith.constant 0 : i32
    %c0_i32_1 = arith.constant 0 : i32
    %c0_i32_2 = arith.constant 0 : i32
    return %c0_i32, %c0_i32_0, %c0_i32_1 : i32, i32, i32
  }
  func.func @transform_4(%arg0: i32, %arg1: i32) -> (i32, i32, i32) {
    %c8_i32 = arith.constant 8 : i32
    %0 = arith.muli %arg0, %c8_i32 : i32
    %1 = arith.addi %0, %arg1 : i32
    %c0_i32 = arith.constant 0 : i32
    %c0_i32_0 = arith.constant 0 : i32
    %c0_i32_1 = arith.constant 0 : i32
    return %1, %c0_i32, %c0_i32_0 : i32, i32, i32
  }
  func.func @transform_5(%arg0: i32, %arg1: i32) -> (i32, i32, i32) {
    %c8_i32 = arith.constant 8 : i32
    %0 = arith.muli %arg0, %c8_i32 : i32
    %1 = arith.addi %0, %arg1 : i32
    %c0_i32 = arith.constant 0 : i32
    %c0_i32_0 = arith.constant 0 : i32
    %c0_i32_1 = arith.constant 0 : i32
    return %1, %c0_i32, %c0_i32_0 : i32, i32, i32
  }
}

module attributes {stable_mosaic.version = 11 : i64} {
  func.func @_bn_add_act_kernel(%arg0: i32, %arg1: memref<16x64x4xbf16, #tpu.memory_space<vmem>>, %arg2: memref<1x4xf32, #tpu.memory_space<vmem>>, %arg3: memref<1x4xf32, #tpu.memory_space<vmem>>, %arg4: memref<16x64x4xbf16, #tpu.memory_space<vmem>>, %arg5: memref<16x64x4xf32, #tpu.memory_space<vmem>>) attributes {dimension_semantics = [#tpu.dimension_semantics<parallel>], iteration_bounds = array<i64: 1>, scalar_prefetch = 0 : i64, scratch_operands = 0 : i64, tpu.core_type = #tpu.core_type<tc>, window_params = [{transform_indices = @transform_0, window_bounds = array<i64: 16, 64, 4>}, {pipeline_mode = #tpu.pipeline_mode<synchronous>, transform_indices = @transform_1, window_bounds = array<i64: 1, 4>}, {pipeline_mode = #tpu.pipeline_mode<synchronous>, transform_indices = @transform_2, window_bounds = array<i64: 1, 4>}, {transform_indices = @transform_3, window_bounds = array<i64: 16, 64, 4>}, {transform_indices = @transform_4, window_bounds = array<i64: 16, 64, 4>}]} {
    %c0 = arith.constant 0 : index
    %c0_0 = arith.constant 0 : index
    %c0_1 = arith.constant 0 : index
    %0 = vector.load %arg1[%c0, %c0_0, %c0_1] : memref<16x64x4xbf16, #tpu.memory_space<vmem>>, vector<16x64x4xbf16>
    %1 = arith.extf %0 : vector<16x64x4xbf16> to vector<16x64x4xf32>
    %c0_2 = arith.constant 0 : index
    %c0_3 = arith.constant 0 : index
    %2 = vector.load %arg2[%c0_2, %c0_3] : memref<1x4xf32, #tpu.memory_space<vmem>>, vector<1x4xf32>
    %3 = vector.shape_cast %2 : vector<1x4xf32> to vector<1x1x4xf32>
    %4 = vector.broadcast %3 : vector<1x1x4xf32> to vector<16x64x4xf32>
    %5 = arith.mulf %1, %4 : vector<16x64x4xf32>
    %c0_4 = arith.constant 0 : index
    %c0_5 = arith.constant 0 : index
    %6 = vector.load %arg3[%c0_4, %c0_5] : memref<1x4xf32, #tpu.memory_space<vmem>>, vector<1x4xf32>
    %7 = vector.shape_cast %6 : vector<1x4xf32> to vector<1x1x4xf32>
    %8 = vector.broadcast %7 : vector<1x1x4xf32> to vector<16x64x4xf32>
    %9 = arith.addf %5, %8 : vector<16x64x4xf32>
    %c0_6 = arith.constant 0 : index
    %c0_7 = arith.constant 0 : index
    %c0_8 = arith.constant 0 : index
    %10 = vector.load %arg4[%c0_6, %c0_7, %c0_8] : memref<16x64x4xbf16, #tpu.memory_space<vmem>>, vector<16x64x4xbf16>
    %11 = arith.extf %10 : vector<16x64x4xbf16> to vector<16x64x4xf32>
    %12 = arith.addf %9, %11 : vector<16x64x4xf32>
    %cst = arith.constant 0.000000e+00 : f32
    %13 = vector.broadcast %cst : f32 to vector<16x64x4xf32>
    %14 = arith.maximumf %12, %13 : vector<16x64x4xf32>
    %c0_9 = arith.constant 0 : index
    %c0_10 = arith.constant 0 : index
    %c0_11 = arith.constant 0 : index
    %15 = vector.load %arg5[%c0_9, %c0_10, %c0_11] : memref<16x64x4xf32, #tpu.memory_space<vmem>>, vector<16x64x4xf32>
    tpu.vector_store %arg5[%c0_9, %c0_10, %c0_11], %14 {strides = array<i32>} : memref<16x64x4xf32, #tpu.memory_space<vmem>>, vector<16x64x4xf32>,
    return
  }
  func.func @transform_0(%arg0: i32) -> (i32, i32, i32) {
    %c0_i32 = arith.constant 0 : i32
    %c0_i32_0 = arith.constant 0 : i32
    %c0_i32_1 = arith.constant 0 : i32
    return %arg0, %c0_i32, %c0_i32_0 : i32, i32, i32
  }
  func.func @transform_1(%arg0: i32) -> (i32, i32) {
    %c0_i32 = arith.constant 0 : i32
    %c0_i32_0 = arith.constant 0 : i32
    %c0_i32_1 = arith.constant 0 : i32
    return %c0_i32, %c0_i32_0 : i32, i32
  }
  func.func @transform_2(%arg0: i32) -> (i32, i32) {
    %c0_i32 = arith.constant 0 : i32
    %c0_i32_0 = arith.constant 0 : i32
    %c0_i32_1 = arith.constant 0 : i32
    return %c0_i32, %c0_i32_0 : i32, i32
  }
  func.func @transform_3(%arg0: i32) -> (i32, i32, i32) {
    %c0_i32 = arith.constant 0 : i32
    %c0_i32_0 = arith.constant 0 : i32
    %c0_i32_1 = arith.constant 0 : i32
    return %arg0, %c0_i32, %c0_i32_0 : i32, i32, i32
  }
  func.func @transform_4(%arg0: i32) -> (i32, i32, i32) {
    %c0_i32 = arith.constant 0 : i32
    %c0_i32_0 = arith.constant 0 : i32
    %c0_i32_1 = arith.constant 0 : i32
    return %arg0, %c0_i32, %c0_i32_0 : i32, i32, i32
  }
}

</mosaic_0001>

<bundles_post_ra>
// kernel: basic_block_forward.5
= control target key start
LH: loop header
LB: loop body
LE: loop exit
PB: predicated region body
PF: predicated region fallthrough
CT: control target
= control target key end

     0   :  { %vm1180_vm0 = vcmask 27648   ;;  %s2892_s0 = inlined_call_operand.vmem [shape: bf16[16,64,4], index: 0, kind: input, shape index: {}]   ;;  %s2893_s1 = inlined_call_operand.vmem [shape: f32[1,4], index: 1, kind: input, shape index: {}]   ;;  %s2894_s2 = inlined_call_operand.vmem [shape: f32[1,4], index: 2, kind: input, shape index: {}]   ;;  %s2895_s3 = inlined_call_operand.vmem [shape: bf16[16,64,4], index: 3, kind: output, shape index: {}]  }
   0x1   :  { %v1572_v0 = vld [vmem:[%s2892_s0] sm:$0xff]   ;;  %v1827_v4 = vld [vmem:[%s2892_s0 + $0x8] sm:$0xff]   ;;  %v1828_v5 = vld [vmem:[%s2892_s0 + $0x10] sm:$0xff]  }
   0x2   :  { %v1918_v1 = vld [vmem:[%s2893_s1] ss:$0 sm:$0xff]  ;;  %v1573_v2 = vunpack.c.l.bf16 %v1572_v0  ;;  %v1574_v3 = vunpack.c.h.bf16 %v1572_v0  ;;  %v1829_v6 = vld [vmem:[%s2892_s0 + $0x18] sm:$0xff]   ;;  %v1577_v8 = vunpack.c.l.bf16 %v1827_v4  ;;  %v1578_v9 = vunpack.c.h.bf16 %v1827_v4  ;;  %v1831_v41 = vld [vmem:[%s2892_s0 + $0x28] sm:$0xff]  }
   0x3   :  { %v1932_v7 = vld [vmem:[%s2894_s2] ss:$0 sm:$0xff]  ;;  %v1581_v10 = vunpack.c.l.bf16 %v1828_v5  ;;  %v1582_v11 = vunpack.c.h.bf16 %v1828_v5  ;;  %v1585_v14 = vunpack.c.l.bf16 %v1829_v6  ;;  %v1586_v15 = vunpack.c.h.bf16 %v1829_v6  ;;  %v1832_v42 = vld [vmem:[%s2892_s0 + $0x30] sm:$0xff]   ;;  %v1833_v47 = vld [vmem:[%s2892_s0 + $0x38] sm:$0xff]  }
   0x4   :  { %v277_v12 = vmul.f32 %v1573_v2, %v1918_v1  ;;  %v278_v13 = vmul.f32 %v1574_v3, %v1918_v1  ;;  %v279_v16 = vmul.f32 %v1577_v8, %v1918_v1  ;;  %v280_v17 = vmul.f32 %v1578_v9, %v1918_v1  ;;  %v1830_v36 = vld [vmem:[%s2892_s0 + $0x20] sm:$0xff]  }
   0x5   :  { %v281_v18 = vmul.f32 %v1581_v10, %v1918_v1  ;;  %v282_v19 = vmul.f32 %v1582_v11, %v1918_v1  ;;  %v283_v22 = vmul.f32 %v1585_v14, %v1918_v1  ;;  %v284_v23 = vmul.f32 %v1586_v15, %v1918_v1 }
   0x6   :  { %v412_v20 = vadd.f32 %v1932_v7, %v277_v12  ;;  %v413_v21 = vadd.f32 %v1932_v7, %v278_v13  ;;  %v414_v24 = vadd.f32 %v1932_v7, %v279_v16  ;;  %v415_v25 = vadd.f32 %v1932_v7, %v280_v17 }
   0x7   :  { %v416_v26 = vadd.f32 %v1932_v7, %v281_v18  ;;  %v417_v27 = vadd.f32 %v1932_v7, %v282_v19  ;;  %v418_v30 = vadd.f32 %v1932_v7, %v283_v22  ;;  %v419_v31 = vadd.f32 %v1932_v7, %v284_v23  ;;  %v1834_v18 = vld [vmem:[%s2892_s0 + $0x40] sm:$0xff]   ;;  %v1835_v23 = vld [vmem:[%s2892_s0 + $0x48] sm:$0xff]  }
   0x8   :  { %v540_v28 = vmax.f32 %v412_v20, 0.0  ;;  %v541_v29 = vmax.f32 %v413_v21, 0.0  ;;  %v542_v32 = vmax.f32 %v414_v24, 0.0  ;;  %v543_v33 = vmax.f32 %v415_v25, 0.0  ;;  %v1836_v24 = vld [vmem:[%s2892_s0 + $0x50] sm:$0xff]  }
   0x9   :  { %v544_v34 = vmax.f32 %v416_v26, 0.0  ;;  %v545_v35 = vmax.f32 %v417_v27, 0.0  ;;  %v546_v39 = vmax.f32 %v418_v30, 0.0  ;;  %v547_v40 = vmax.f32 %v419_v31, 0.0 }
   0xa   :  { %v1443_v37 = vpack.c.bf16 %v540_v28, %v540_v28  ;;  %v1444_v38 = vpack.c.bf16 %v541_v29, %v541_v29  ;;  %v1445_v43 = vpack.c.bf16 %v542_v32, %v542_v32  ;;  %v1446_v44 = vpack.c.bf16 %v543_v33, %v543_v33  ;;  %v1837_v29 = vld [vmem:[%s2892_s0 + $0x58] sm:$0xff]  }
   0xb   :  { %v1447_v45 = vpack.c.bf16 %v544_v34, %v544_v34  ;;  %v1448_v46 = vpack.c.bf16 %v545_v35, %v545_v35  ;;  %v1449_v48 = vpack.c.bf16 %v546_v39, %v546_v39  ;;  %v1450_v49 = vpack.c.bf16 %v547_v40, %v547_v40 }
   0xc   :  { %1181 = vst.msk [vmem:[%s2895_s3] sm:$0xf] %vm1180_vm0, %v1443_v37  ;;  %1182 = vst.msk [vmem:[%s2895_s3 + $0x4] sm:$0xf] %vm1180_vm0, %v1444_v38  ;;  %v1589_v50 = vunpack.c.l.bf16 %v1830_v36  ;;  %v1590_v51 = vunpack.c.h.bf16 %v1830_v36  ;;  %v1593_v52 = vunpack.c.l.bf16 %v1831_v41  ;;  %v1594_v53 = vunpack.c.h.bf16 %v1831_v41 }
   0xd   :  { %1183 = vst.msk [vmem:[%s2895_s3 + $0x8] sm:$0xf] %vm1180_vm0, %v1445_v43  ;;  %1184 = vst.msk [vmem:[%s2895_s3 + $0xc] sm:$0xf] %vm1180_vm0, %v1446_v44  ;;  %v1597_v54 = vunpack.c.l.bf16 %v1832_v42  ;;  %v1598_v55 = vunpack.c.h.bf16 %v1832_v42  ;;  %v1601_v58 = vunpack.c.l.bf16 %v1833_v47  ;;  %v1602_v59 = vunpack.c.h.bf16 %v1833_v47 }
   0xe   :  { %1185 = vst.msk [vmem:[%s2895_s3 + $0x10] sm:$0xf] %vm1180_vm0, %v1447_v45  ;;  %1186 = vst.msk [vmem:[%s2895_s3 + $0x14] sm:$0xf] %vm1180_vm0, %v1448_v46  ;;  %v285_v56 = vmul.f32 %v1589_v50, %v1918_v1  ;;  %v286_v57 = vmul.f32 %v1590_v51, %v1918_v1  ;;  %v287_v60 = vmul.f32 %v1593_v52, %v1918_v1  ;;  %v1605_v32 = vunpack.c.l.bf16 %v1834_v18 }
   0xf   :  { %1187 = vst.msk [vmem:[%s2895_s3 + $0x18] sm:$0xf] %vm1180_vm0, %v1449_v48  ;;  %1188 = vst.msk [vmem:[%s2895_s3 + $0x1c] sm:$0xf] %vm1180_vm0, %v1450_v49  ;;  %v288_v61 = vmul.f32 %v1594_v53, %v1918_v1  ;;  %v289_v62 = vmul.f32 %v1597_v54, %v1918_v1  ;;  %v290_v63 = vmul.f32 %v1598_v55, %v1918_v1  ;;  %v1606_v33 = vunpack.c.h.bf16 %v1834_v18 }
  0x10   :  { %v420_v0 = vadd.f32 %v1932_v7, %v285_v56  ;;  %v421_v2 = vadd.f32 %v1932_v7, %v286_v57  ;;  %v291_v3 = vmul.f32 %v1601_v58, %v1918_v1  ;;  %v292_v4 = vmul.f32 %v1602_v59, %v1918_v1 }
  0x11   :  { %v422_v5 = vadd.f32 %v1932_v7, %v287_v60  ;;  %v423_v6 = vadd.f32 %v1932_v7, %v288_v61  ;;  %v424_v8 = vadd.f32 %v1932_v7, %v289_v62  ;;  %v425_v9 = vadd.f32 %v1932_v7, %v290_v63  ;;  %v1838_v62 = vld [vmem:[%s2892_s0 + $0x60] sm:$0xff]  }
  0x12   :  { %v548_v10 = vmax.f32 %v420_v0, 0.0  ;;  %v549_v11 = vmax.f32 %v421_v2, 0.0  ;;  %v426_v12 = vadd.f32 %v1932_v7, %v291_v3  ;;  %v427_v13 = vadd.f32 %v1932_v7, %v292_v4  ;;  %v1839_v4 = vld [vmem:[%s2892_s0 + $0x68] sm:$0xff]  }
  0x13   :  { %v550_v14 = vmax.f32 %v422_v5, 0.0  ;;  %v551_v15 = vmax.f32 %v423_v6, 0.0  ;;  %v552_v16 = vmax.f32 %v424_v8, 0.0  ;;  %v553_v17 = vmax.f32 %v425_v9, 0.0  ;;  %v1840_v5 = vld [vmem:[%s2892_s0 + $0x70] sm:$0xff]  }
  0x14   :  { %v1451_v19 = vpack.c.bf16 %v548_v10, %v548_v10  ;;  %v1452_v20 = vpack.c.bf16 %v549_v11, %v549_v11  ;;  %v554_v21 = vmax.f32 %v426_v12, 0.0  ;;  %v555_v22 = vmax.f32 %v427_v13, 0.0  ;;  %v1841_v11 = vld [vmem:[%s2892_s0 + $0x78] sm:$0xff]  }
  0x15   :  { %v1453_v25 = vpack.c.bf16 %v550_v14, %v550_v14  ;;  %v1454_v26 = vpack.c.bf16 %v551_v15, %v551_v15  ;;  %v1455_v27 = vpack.c.bf16 %v552_v16, %v552_v16  ;;  %v1456_v28 = vpack.c.bf16 %v553_v17, %v553_v17 }
  0x16   :  { %1189 = vst.msk [vmem:[%s2895_s3 + $0x20] sm:$0xf] %vm1180_vm0, %v1451_v19  ;;  %1190 = vst.msk [vmem:[%s2895_s3 + $0x24] sm:$0xf] %vm1180_vm0, %v1452_v20  ;;  %v1457_v30 = vpack.c.bf16 %v554_v21, %v554_v21  ;;  %v1458_v31 = vpack.c.bf16 %v555_v22, %v555_v22  ;;  %v1609_v34 = vunpack.c.l.bf16 %v1835_v23  ;;  %v1610_v35 = vunpack.c.h.bf16 %v1835_v23 }
  0x17   :  { %1191 = vst.msk [vmem:[%s2895_s3 + $0x28] sm:$0xf] %vm1180_vm0, %v1453_v25  ;;  %1192 = vst.msk [vmem:[%s2895_s3 + $0x2c] sm:$0xf] %vm1180_vm0, %v1454_v26  ;;  %v1613_v36 = vunpack.c.l.bf16 %v1836_v24  ;;  %v1614_v37 = vunpack.c.h.bf16 %v1836_v24  ;;  %v293_v38 = vmul.f32 %v1605_v32, %v1918_v1  ;;  %v294_v39 = vmul.f32 %v1606_v33, %v1918_v1 }
  0x18   :  { %1193 = vst.msk [vmem:[%s2895_s3 + $0x30] sm:$0xf] %vm1180_vm0, %v1455_v27  ;;  %1194 = vst.msk [vmem:[%s2895_s3 + $0x34] sm:$0xf] %vm1180_vm0, %v1456_v28  ;;  %v1617_v40 = vunpack.c.l.bf16 %v1837_v29  ;;  %v1618_v41 = vunpack.c.h.bf16 %v1837_v29  ;;  %v295_v42 = vmul.f32 %v1609_v34, %v1918_v1  ;;  %v296_v43 = vmul.f32 %v1610_v35, %v1918_v1 }
  0x19   :  { %1195 = vst.msk [vmem:[%s2895_s3 + $0x38] sm:$0xf] %vm1180_vm0, %v1457_v30  ;;  %1196 = vst.msk [vmem:[%s2895_s3 + $0x3c] sm:$0xf] %vm1180_vm0, %v1458_v31  ;;  %v297_v44 = vmul.f32 %v1613_v36, %v1918_v1  ;;  %v298_v45 = vmul.f32 %v1614_v37, %v1918_v1  ;;  %v428_v46 = vadd.f32 %v1932_v7, %v293_v38  ;;  %v1621_v14 = vunpack.c.l.bf16 %v1838_v62 }
  0x1a   :  { %v429_v47 = vadd.f32 %v1932_v7, %v294_v39  ;;  %v299_v48 = vmul.f32 %v1617_v40, %v1918_v1  ;;  %v300_v49 = vmul.f32 %v1618_v41, %v1918_v1  ;;  %v430_v50 = vadd.f32 %v1932_v7, %v295_v42 }
  0x1b   :  { %v431_v51 = vadd.f32 %v1932_v7, %v296_v43  ;;  %v432_v52 = vadd.f32 %v1932_v7, %v297_v44  ;;  %v433_v53 = vadd.f32 %v1932_v7, %v298_v45  ;;  %v556_v54 = vmax.f32 %v428_v46, 0.0  ;;  %v1842_v44 = vld [vmem:[%s2892_s0 + $0x80] sm:$0xff]  }
  0x1c   :  { %v557_v55 = vmax.f32 %v429_v47, 0.0  ;;  %v434_v56 = vadd.f32 %v1932_v7, %v299_v48  ;;  %v435_v57 = vadd.f32 %v1932_v7, %v300_v49  ;;  %v558_v58 = vmax.f32 %v430_v50, 0.0  ;;  %v1843_v49 = vld [vmem:[%s2892_s0 + $0x88] sm:$0xff]   ;;  %v1844_v50 = vld [vmem:[%s2892_s0 + $0x90] sm:$0xff]  }
  0x1d   :  { %v559_v59 = vmax.f32 %v431_v51, 0.0  ;;  %v560_v60 = vmax.f32 %v432_v52, 0.0  ;;  %v561_v61 = vmax.f32 %v433_v53, 0.0  ;;  %v1459_v63 = vpack.c.bf16 %v556_v54, %v556_v54 }
  0x1e   :  { %v1460_v0 = vpack.c.bf16 %v557_v55, %v557_v55  ;;  %v562_v2 = vmax.f32 %v434_v56, 0.0  ;;  %v563_v3 = vmax.f32 %v435_v57, 0.0  ;;  %v1461_v6 = vpack.c.bf16 %v558_v58, %v558_v58  ;;  %v1845_v55 = vld [vmem:[%s2892_s0 + $0x98] sm:$0xff]  }
  0x1f   :  { %v1462_v8 = vpack.c.bf16 %v559_v59, %v559_v59  ;;  %v1463_v9 = vpack.c.bf16 %v560_v60, %v560_v60  ;;  %v1464_v10 = vpack.c.bf16 %v561_v61, %v561_v61  ;;  %1197 = vst.msk [vmem:[%s2895_s3 + $0x40] sm:$0xf] %vm1180_vm0, %v1459_v63  ;;  %v1622_v15 = vunpack.c.h.bf16 %v1838_v62 }
  0x20   :  { %1198 = vst.msk [vmem:[%s2895_s3 + $0x44] sm:$0xf] %vm1180_vm0, %v1460_v0  ;;  %v1465_v12 = vpack.c.bf16 %v562_v2, %v562_v2  ;;  %v1466_v13 = vpack.c.bf16 %v563_v3, %v563_v3  ;;  %1199 = vst.msk [vmem:[%s2895_s3 + $0x48] sm:$0xf] %vm1180_vm0, %v1461_v6  ;;  %v1625_v16 = vunpack.c.l.bf16 %v1839_v4  ;;  %v1626_v17 = vunpack.c.h.bf16 %v1839_v4 }
  0x21   :  { %1200 = vst.msk [vmem:[%s2895_s3 + $0x4c] sm:$0xf] %vm1180_vm0, %v1462_v8  ;;  %1201 = vst.msk [vmem:[%s2895_s3 + $0x50] sm:$0xf] %vm1180_vm0, %v1463_v9  ;;  %v1629_v18 = vunpack.c.l.bf16 %v1840_v5  ;;  %v1630_v19 = vunpack.c.h.bf16 %v1840_v5  ;;  %v301_v20 = vmul.f32 %v1621_v14, %v1918_v1  ;;  %v302_v21 = vmul.f32 %v1622_v15, %v1918_v1 }
  0x22   :  { %1202 = vst.msk [vmem:[%s2895_s3 + $0x54] sm:$0xf] %vm1180_vm0, %v1464_v10  ;;  %1203 = vst.msk [vmem:[%s2895_s3 + $0x58] sm:$0xf] %vm1180_vm0, %v1465_v12  ;;  %v1633_v22 = vunpack.c.l.bf16 %v1841_v11  ;;  %v1634_v23 = vunpack.c.h.bf16 %v1841_v11  ;;  %v303_v24 = vmul.f32 %v1625_v16, %v1918_v1  ;;  %v304_v25 = vmul.f32 %v1626_v17, %v1918_v1 }
  0x23   :  { %1204 = vst.msk [vmem:[%s2895_s3 + $0x5c] sm:$0xf] %vm1180_vm0, %v1466_v13  ;;  %v305_v26 = vmul.f32 %v1629_v18, %v1918_v1  ;;  %v306_v27 = vmul.f32 %v1630_v19, %v1918_v1  ;;  %v436_v28 = vadd.f32 %v1932_v7, %v301_v20  ;;  %v437_v29 = vadd.f32 %v1932_v7, %v302_v21 }
  0x24   :  { %v307_v30 = vmul.f32 %v1633_v22, %v1918_v1  ;;  %v308_v31 = vmul.f32 %v1634_v23, %v1918_v1  ;;  %v438_v32 = vadd.f32 %v1932_v7, %v303_v24  ;;  %v439_v33 = vadd.f32 %v1932_v7, %v304_v25 }
  0x25   :  { %v440_v34 = vadd.f32 %v1932_v7, %v305_v26  ;;  %v441_v35 = vadd.f32 %v1932_v7, %v306_v27  ;;  %v564_v36 = vmax.f32 %v436_v28, 0.0  ;;  %v565_v37 = vmax.f32 %v437_v29, 0.0  ;;  %v1846_v26 = vld [vmem:[%s2892_s0 + $0xa0] sm:$0xff]  }
  0x26   :  { %v442_v38 = vadd.f32 %v1932_v7, %v307_v30  ;;  %v443_v39 = vadd.f32 %v1932_v7, %v308_v31  ;;  %v566_v40 = vmax.f32 %v438_v32, 0.0  ;;  %v567_v41 = vmax.f32 %v439_v33, 0.0  ;;  %v1847_v31 = vld [vmem:[%s2892_s0 + $0xa8] sm:$0xff]   ;;  %v1848_v32 = vld [vmem:[%s2892_s0 + $0xb0] sm:$0xff]  }
  0x27   :  { %v568_v42 = vmax.f32 %v440_v34, 0.0  ;;  %v569_v43 = vmax.f32 %v441_v35, 0.0  ;;  %v1467_v45 = vpack.c.bf16 %v564_v36, %v564_v36  ;;  %v1468_v46 = vpack.c.bf16 %v565_v37, %v565_v37  ;;  %v1849_v37 = vld [vmem:[%s2892_s0 + $0xb8] sm:$0xff]  }
  0x28   :  { %v570_v47 = vmax.f32 %v442_v38, 0.0  ;;  %v571_v48 = vmax.f32 %v443_v39, 0.0  ;;  %v1469_v51 = vpack.c.bf16 %v566_v40, %v566_v40  ;;  %v1470_v52 = vpack.c.bf16 %v567_v41, %v567_v41 }
  0x29   :  { %v1471_v53 = vpack.c.bf16 %v568_v42, %v568_v42  ;;  %v1472_v54 = vpack.c.bf16 %v569_v43, %v569_v43  ;;  %1205 = vst.msk [vmem:[%s2895_s3 + $0x60] sm:$0xf] %vm1180_vm0, %v1467_v45  ;;  %1206 = vst.msk [vmem:[%s2895_s3 + $0x64] sm:$0xf] %vm1180_vm0, %v1468_v46  ;;  %v1637_v58 = vunpack.c.l.bf16 %v1842_v44  ;;  %v1638_v59 = vunpack.c.h.bf16 %v1842_v44 }
  0x2a   :  { %v1473_v56 = vpack.c.bf16 %v570_v47, %v570_v47  ;;  %v1474_v57 = vpack.c.bf16 %v571_v48, %v571_v48  ;;  %1207 = vst.msk [vmem:[%s2895_s3 + $0x68] sm:$0xf] %vm1180_vm0, %v1469_v51  ;;  %1208 = vst.msk [vmem:[%s2895_s3 + $0x6c] sm:$0xf] %vm1180_vm0, %v1470_v52  ;;  %v1641_v60 = vunpack.c.l.bf16 %v1843_v49  ;;  %v1642_v61 = vunpack.c.h.bf16 %v1843_v49 }
  0x2b   :  { %1209 = vst.msk [vmem:[%s2895_s3 + $0x70] sm:$0xf] %vm1180_vm0, %v1471_v53  ;;  %1210 = vst.msk [vmem:[%s2895_s3 + $0x74] sm:$0xf] %vm1180_vm0, %v1472_v54  ;;  %v1645_v62 = vunpack.c.l.bf16 %v1844_v50  ;;  %v1646_v63 = vunpack.c.h.bf16 %v1844_v50  ;;  %v309_v0 = vmul.f32 %v1637_v58, %v1918_v1  ;;  %v310_v2 = vmul.f32 %v1638_v59, %v1918_v1 }
  0x2c   :  { %1211 = vst.msk [vmem:[%s2895_s3 + $0x78] sm:$0xf] %vm1180_vm0, %v1473_v56  ;;  %1212 = vst.msk [vmem:[%s2895_s3 + $0x7c] sm:$0xf] %vm1180_vm0, %v1474_v57  ;;  %v1649_v3 = vunpack.c.l.bf16 %v1845_v55  ;;  %v1650_v4 = vunpack.c.h.bf16 %v1845_v55  ;;  %v311_v5 = vmul.f32 %v1641_v60, %v1918_v1  ;;  %v312_v6 = vmul.f32 %v1642_v61, %v1918_v1 }
  0x2d   :  { %v313_v8 = vmul.f32 %v1645_v62, %v1918_v1  ;;  %v314_v9 = vmul.f32 %v1646_v63, %v1918_v1  ;;  %v444_v10 = vadd.f32 %v1932_v7, %v309_v0  ;;  %v445_v11 = vadd.f32 %v1932_v7, %v310_v2 }
  0x2e   :  { %v315_v12 = vmul.f32 %v1649_v3, %v1918_v1  ;;  %v316_v13 = vmul.f32 %v1650_v4, %v1918_v1  ;;  %v446_v14 = vadd.f32 %v1932_v7, %v311_v5  ;;  %v447_v15 = vadd.f32 %v1932_v7, %v312_v6 }
  0x2f   :  { %v448_v16 = vadd.f32 %v1932_v7, %v313_v8  ;;  %v449_v17 = vadd.f32 %v1932_v7, %v314_v9  ;;  %v572_v18 = vmax.f32 %v444_v10, 0.0  ;;  %v573_v19 = vmax.f32 %v445_v11, 0.0  ;;  %v1850_v8 = vld [vmem:[%s2892_s0 + $0xc0] sm:$0xff]  }
  0x30   :  { %v450_v20 = vadd.f32 %v1932_v7, %v315_v12  ;;  %v451_v21 = vadd.f32 %v1932_v7, %v316_v13  ;;  %v574_v22 = vmax.f32 %v446_v14, 0.0  ;;  %v575_v23 = vmax.f32 %v447_v15, 0.0  ;;  %v1851_v13 = vld [vmem:[%s2892_s0 + $0xc8] sm:$0xff]   ;;  %v1852_v14 = vld [vmem:[%s2892_s0 + $0xd0] sm:$0xff]  }
  0x31   :  { %v576_v24 = vmax.f32 %v448_v16, 0.0  ;;  %v577_v25 = vmax.f32 %v449_v17, 0.0  ;;  %v1475_v27 = vpack.c.bf16 %v572_v18, %v572_v18  ;;  %v1476_v28 = vpack.c.bf16 %v573_v19, %v573_v19  ;;  %v1853_v19 = vld [vmem:[%s2892_s0 + $0xd8] sm:$0xff]  }
  0x32   :  { %v578_v29 = vmax.f32 %v450_v20, 0.0  ;;  %v579_v30 = vmax.f32 %v451_v21, 0.0  ;;  %v1477_v33 = vpack.c.bf16 %v574_v22, %v574_v22  ;;  %v1478_v34 = vpack.c.bf16 %v575_v23, %v575_v23 }
  0x33   :  { %v1479_v35 = vpack.c.bf16 %v576_v24, %v576_v24  ;;  %v1480_v36 = vpack.c.bf16 %v577_v25, %v577_v25  ;;  %1213 = vst.msk [vmem:[%s2895_s3 + $0x80] sm:$0xf] %vm1180_vm0, %v1475_v27  ;;  %1214 = vst.msk [vmem:[%s2895_s3 + $0x84] sm:$0xf] %vm1180_vm0, %v1476_v28  ;;  %v1653_v40 = vunpack.c.l.bf16 %v1846_v26  ;;  %v1654_v41 = vunpack.c.h.bf16 %v1846_v26 }
  0x34   :  { %v1481_v38 = vpack.c.bf16 %v578_v29, %v578_v29  ;;  %v1482_v39 = vpack.c.bf16 %v579_v30, %v579_v30  ;;  %1215 = vst.msk [vmem:[%s2895_s3 + $0x88] sm:$0xf] %vm1180_vm0, %v1477_v33  ;;  %1216 = vst.msk [vmem:[%s2895_s3 + $0x8c] sm:$0xf] %vm1180_vm0, %v1478_v34  ;;  %v1657_v42 = vunpack.c.l.bf16 %v1847_v31  ;;  %v1658_v43 = vunpack.c.h.bf16 %v1847_v31 }
  0x35   :  { %1217 = vst.msk [vmem:[%s2895_s3 + $0x90] sm:$0xf] %vm1180_vm0, %v1479_v35  ;;  %1218 = vst.msk [vmem:[%s2895_s3 + $0x94] sm:$0xf] %vm1180_vm0, %v1480_v36  ;;  %v1661_v44 = vunpack.c.l.bf16 %v1848_v32  ;;  %v1662_v45 = vunpack.c.h.bf16 %v1848_v32  ;;  %v317_v46 = vmul.f32 %v1653_v40, %v1918_v1  ;;  %v318_v47 = vmul.f32 %v1654_v41, %v1918_v1 }
  0x36   :  { %1219 = vst.msk [vmem:[%s2895_s3 + $0x98] sm:$0xf] %vm1180_vm0, %v1481_v38  ;;  %1220 = vst.msk [vmem:[%s2895_s3 + $0x9c] sm:$0xf] %vm1180_vm0, %v1482_v39  ;;  %v1665_v48 = vunpack.c.l.bf16 %v1849_v37  ;;  %v1666_v49 = vunpack.c.h.bf16 %v1849_v37  ;;  %v319_v50 = vmul.f32 %v1657_v42, %v1918_v1  ;;  %v320_v51 = vmul.f32 %v1658_v43, %v1918_v1 }
  0x37   :  { %v321_v52 = vmul.f32 %v1661_v44, %v1918_v1  ;;  %v322_v53 = vmul.f32 %v1662_v45, %v1918_v1  ;;  %v452_v54 = vadd.f32 %v1932_v7, %v317_v46  ;;  %v453_v55 = vadd.f32 %v1932_v7, %v318_v47 }
  0x38   :  { %v323_v56 = vmul.f32 %v1665_v48, %v1918_v1  ;;  %v324_v57 = vmul.f32 %v1666_v49, %v1918_v1  ;;  %v454_v58 = vadd.f32 %v1932_v7, %v319_v50  ;;  %v455_v59 = vadd.f32 %v1932_v7, %v320_v51 }
  0x39   :  { %v456_v60 = vadd.f32 %v1932_v7, %v321_v52  ;;  %v457_v61 = vadd.f32 %v1932_v7, %v322_v53  ;;  %v580_v62 = vmax.f32 %v452_v54, 0.0  ;;  %v581_v63 = vmax.f32 %v453_v55, 0.0  ;;  %v1854_v52 = vld [vmem:[%s2892_s0 + $0xe0] sm:$0xff]  }
  0x3a   :  { %v458_v0 = vadd.f32 %v1932_v7, %v323_v56  ;;  %v459_v2 = vadd.f32 %v1932_v7, %v324_v57  ;;  %v582_v3 = vmax.f32 %v454_v58, 0.0  ;;  %v583_v4 = vmax.f32 %v455_v59, 0.0  ;;  %v1855_v57 = vld [vmem:[%s2892_s0 + $0xe8] sm:$0xff]   ;;  %v1856_v58 = vld [vmem:[%s2892_s0 + $0xf0] sm:$0xff]  }
  0x3b   :  { %v584_v5 = vmax.f32 %v456_v60, 0.0  ;;  %v585_v6 = vmax.f32 %v457_v61, 0.0  ;;  %v1483_v9 = vpack.c.bf16 %v580_v62, %v580_v62  ;;  %v1484_v10 = vpack.c.bf16 %v581_v63, %v581_v63  ;;  %v1857_v63 = vld [vmem:[%s2892_s0 + $0xf8] sm:$0xff]  }
  0x3c   :  { %v586_v11 = vmax.f32 %v458_v0, 0.0  ;;  %v587_v12 = vmax.f32 %v459_v2, 0.0  ;;  %v1485_v15 = vpack.c.bf16 %v582_v3, %v582_v3  ;;  %v1486_v16 = vpack.c.bf16 %v583_v4, %v583_v4 }
  0x3d   :  { %v1487_v17 = vpack.c.bf16 %v584_v5, %v584_v5  ;;  %v1488_v18 = vpack.c.bf16 %v585_v6, %v585_v6  ;;  %1221 = vst.msk [vmem:[%s2895_s3 + $0xa0] sm:$0xf] %vm1180_vm0, %v1483_v9  ;;  %1222 = vst.msk [vmem:[%s2895_s3 + $0xa4] sm:$0xf] %vm1180_vm0, %v1484_v10  ;;  %v1669_v22 = vunpack.c.l.bf16 %v1850_v8  ;;  %v1670_v23 = vunpack.c.h.bf16 %v1850_v8 }
  0x3e   :  { %v1489_v20 = vpack.c.bf16 %v586_v11, %v586_v11  ;;  %v1490_v21 = vpack.c.bf16 %v587_v12, %v587_v12  ;;  %1223 = vst.msk [vmem:[%s2895_s3 + $0xa8] sm:$0xf] %vm1180_vm0, %v1485_v15  ;;  %1224 = vst.msk [vmem:[%s2895_s3 + $0xac] sm:$0xf] %vm1180_vm0, %v1486_v16  ;;  %v1673_v24 = vunpack.c.l.bf16 %v1851_v13  ;;  %v1674_v25 = vunpack.c.h.bf16 %v1851_v13 }
  0x3f   :  { %1225 = vst.msk [vmem:[%s2895_s3 + $0xb0] sm:$0xf] %vm1180_vm0, %v1487_v17  ;;  %1226 = vst.msk [vmem:[%s2895_s3 + $0xb4] sm:$0xf] %vm1180_vm0, %v1488_v18  ;;  %v1677_v26 = vunpack.c.l.bf16 %v1852_v14  ;;  %v1678_v27 = vunpack.c.h.bf16 %v1852_v14  ;;  %v325_v28 = vmul.f32 %v1669_v22, %v1918_v1  ;;  %v326_v29 = vmul.f32 %v1670_v23, %v1918_v1 }
  0x40   :  { %1227 = vst.msk [vmem:[%s2895_s3 + $0xb8] sm:$0xf] %vm1180_vm0, %v1489_v20  ;;  %1228 = vst.msk [vmem:[%s2895_s3 + $0xbc] sm:$0xf] %vm1180_vm0, %v1490_v21  ;;  %v1681_v30 = vunpack.c.l.bf16 %v1853_v19  ;;  %v1682_v31 = vunpack.c.h.bf16 %v1853_v19  ;;  %v327_v32 = vmul.f32 %v1673_v24, %v1918_v1  ;;  %v328_v33 = vmul.f32 %v1674_v25, %v1918_v1 }
  0x41   :  { %v329_v34 = vmul.f32 %v1677_v26, %v1918_v1  ;;  %v330_v35 = vmul.f32 %v1678_v27, %v1918_v1  ;;  %v460_v36 = vadd.f32 %v1932_v7, %v325_v28  ;;  %v461_v37 = vadd.f32 %v1932_v7, %v326_v29 }
  0x42   :  { %v331_v38 = vmul.f32 %v1681_v30, %v1918_v1  ;;  %v332_v39 = vmul.f32 %v1682_v31, %v1918_v1  ;;  %v462_v40 = vadd.f32 %v1932_v7, %v327_v32  ;;  %v463_v41 = vadd.f32 %v1932_v7, %v328_v33 }
  0x43   :  { %v464_v42 = vadd.f32 %v1932_v7, %v329_v34  ;;  %v465_v43 = vadd.f32 %v1932_v7, %v330_v35  ;;  %v588_v44 = vmax.f32 %v460_v36, 0.0  ;;  %v589_v45 = vmax.f32 %v461_v37, 0.0  ;;  %v1858_v34 = vld [vmem:[%s2892_s0 + $0x100] sm:$0xff]  }
  0x44   :  { %v466_v46 = vadd.f32 %v1932_v7, %v331_v38  ;;  %v467_v47 = vadd.f32 %v1932_v7, %v332_v39  ;;  %v590_v48 = vmax.f32 %v462_v40, 0.0  ;;  %v591_v49 = vmax.f32 %v463_v41, 0.0  ;;  %v1859_v39 = vld [vmem:[%s2892_s0 + $0x108] sm:$0xff]   ;;  %v1860_v40 = vld [vmem:[%s2892_s0 + $0x110] sm:$0xff]  }
  0x45   :  { %v592_v50 = vmax.f32 %v464_v42, 0.0  ;;  %v593_v51 = vmax.f32 %v465_v43, 0.0  ;;  %v1491_v53 = vpack.c.bf16 %v588_v44, %v588_v44  ;;  %v1492_v54 = vpack.c.bf16 %v589_v45, %v589_v45  ;;  %v1861_v45 = vld [vmem:[%s2892_s0 + $0x118] sm:$0xff]  }
  0x46   :  { %v594_v55 = vmax.f32 %v466_v46, 0.0  ;;  %v595_v56 = vmax.f32 %v467_v47, 0.0  ;;  %v1493_v59 = vpack.c.bf16 %v590_v48, %v590_v48  ;;  %v1494_v60 = vpack.c.bf16 %v591_v49, %v591_v49 }
  0x47   :  { %v1495_v61 = vpack.c.bf16 %v592_v50, %v592_v50  ;;  %v1496_v62 = vpack.c.bf16 %v593_v51, %v593_v51  ;;  %1229 = vst.msk [vmem:[%s2895_s3 + $0xc0] sm:$0xf] %vm1180_vm0, %v1491_v53  ;;  %1230 = vst.msk [vmem:[%s2895_s3 + $0xc4] sm:$0xf] %vm1180_vm0, %v1492_v54  ;;  %v1685_v3 = vunpack.c.l.bf16 %v1854_v52  ;;  %v1686_v4 = vunpack.c.h.bf16 %v1854_v52 }
  0x48   :  { %v1497_v0 = vpack.c.bf16 %v594_v55, %v594_v55  ;;  %v1498_v2 = vpack.c.bf16 %v595_v56, %v595_v56  ;;  %1231 = vst.msk [vmem:[%s2895_s3 + $0xc8] sm:$0xf] %vm1180_vm0, %v1493_v59  ;;  %1232 = vst.msk [vmem:[%s2895_s3 + $0xcc] sm:$0xf] %vm1180_vm0, %v1494_v60  ;;  %v1689_v5 = vunpack.c.l.bf16 %v1855_v57  ;;  %v1690_v6 = vunpack.c.h.bf16 %v1855_v57 }
  0x49   :  { %1233 = vst.msk [vmem:[%s2895_s3 + $0xd0] sm:$0xf] %vm1180_vm0, %v1495_v61  ;;  %1234 = vst.msk [vmem:[%s2895_s3 + $0xd4] sm:$0xf] %vm1180_vm0, %v1496_v62  ;;  %v1693_v8 = vunpack.c.l.bf16 %v1856_v58  ;;  %v1694_v9 = vunpack.c.h.bf16 %v1856_v58  ;;  %v333_v10 = vmul.f32 %v1685_v3, %v1918_v1  ;;  %v334_v11 = vmul.f32 %v1686_v4, %v1918_v1 }
  0x4a   :  { %1235 = vst.msk [vmem:[%s2895_s3 + $0xd8] sm:$0xf] %vm1180_vm0, %v1497_v0  ;;  %1236 = vst.msk [vmem:[%s2895_s3 + $0xdc] sm:$0xf] %vm1180_vm0, %v1498_v2  ;;  %v1697_v12 = vunpack.c.l.bf16 %v1857_v63  ;;  %v1698_v13 = vunpack.c.h.bf16 %v1857_v63  ;;  %v335_v14 = vmul.f32 %v1689_v5, %v1918_v1  ;;  %v336_v15 = vmul.f32 %v1690_v6, %v1918_v1 }
  0x4b   :  { %v337_v16 = vmul.f32 %v1693_v8, %v1918_v1  ;;  %v338_v17 = vmul.f32 %v1694_v9, %v1918_v1  ;;  %v468_v18 = vadd.f32 %v1932_v7, %v333_v10  ;;  %v469_v19 = vadd.f32 %v1932_v7, %v334_v11 }
  0x4c   :  { %v339_v20 = vmul.f32 %v1697_v12, %v1918_v1  ;;  %v340_v21 = vmul.f32 %v1698_v13, %v1918_v1  ;;  %v470_v22 = vadd.f32 %v1932_v7, %v335_v14  ;;  %v471_v23 = vadd.f32 %v1932_v7, %v336_v15 }
  0x4d   :  { %v472_v24 = vadd.f32 %v1932_v7, %v337_v16  ;;  %v473_v25 = vadd.f32 %v1932_v7, %v338_v17  ;;  %v596_v26 = vmax.f32 %v468_v18, 0.0  ;;  %v597_v27 = vmax.f32 %v469_v19, 0.0  ;;  %v1862_v16 = vld [vmem:[%s2892_s0 + $0x120] sm:$0xff]  }
  0x4e   :  { %v474_v28 = vadd.f32 %v1932_v7, %v339_v20  ;;  %v475_v29 = vadd.f32 %v1932_v7, %v340_v21  ;;  %v598_v30 = vmax.f32 %v470_v22, 0.0  ;;  %v599_v31 = vmax.f32 %v471_v23, 0.0  ;;  %v1863_v21 = vld [vmem:[%s2892_s0 + $0x128] sm:$0xff]   ;;  %v1864_v22 = vld [vmem:[%s2892_s0 + $0x130] sm:$0xff]  }
  0x4f   :  { %v600_v32 = vmax.f32 %v472_v24, 0.0  ;;  %v601_v33 = vmax.f32 %v473_v25, 0.0  ;;  %v1499_v35 = vpack.c.bf16 %v596_v26, %v596_v26  ;;  %v1500_v36 = vpack.c.bf16 %v597_v27, %v597_v27  ;;  %v1865_v27 = vld [vmem:[%s2892_s0 + $0x138] sm:$0xff]  }
  0x50   :  { %v602_v37 = vmax.f32 %v474_v28, 0.0  ;;  %v603_v38 = vmax.f32 %v475_v29, 0.0  ;;  %v1501_v41 = vpack.c.bf16 %v598_v30, %v598_v30  ;;  %v1502_v42 = vpack.c.bf16 %v599_v31, %v599_v31 }
  0x51   :  { %v1503_v43 = vpack.c.bf16 %v600_v32, %v600_v32  ;;  %v1504_v44 = vpack.c.bf16 %v601_v33, %v601_v33  ;;  %1237 = vst.msk [vmem:[%s2895_s3 + $0xe0] sm:$0xf] %vm1180_vm0, %v1499_v35  ;;  %1238 = vst.msk [vmem:[%s2895_s3 + $0xe4] sm:$0xf] %vm1180_vm0, %v1500_v36  ;;  %v1701_v48 = vunpack.c.l.bf16 %v1858_v34  ;;  %v1702_v49 = vunpack.c.h.bf16 %v1858_v34 }
  0x52   :  { %v1505_v46 = vpack.c.bf16 %v602_v37, %v602_v37  ;;  %v1506_v47 = vpack.c.bf16 %v603_v38, %v603_v38  ;;  %1239 = vst.msk [vmem:[%s2895_s3 + $0xe8] sm:$0xf] %vm1180_vm0, %v1501_v41  ;;  %1240 = vst.msk [vmem:[%s2895_s3 + $0xec] sm:$0xf] %vm1180_vm0, %v1502_v42  ;;  %v1705_v50 = vunpack.c.l.bf16 %v1859_v39  ;;  %v1706_v51 = vunpack.c.h.bf16 %v1859_v39 }
  0x53   :  { %1241 = vst.msk [vmem:[%s2895_s3 + $0xf0] sm:$0xf] %vm1180_vm0, %v1503_v43  ;;  %1242 = vst.msk [vmem:[%s2895_s3 + $0xf4] sm:$0xf] %vm1180_vm0, %v1504_v44  ;;  %v1709_v52 = vunpack.c.l.bf16 %v1860_v40  ;;  %v1710_v53 = vunpack.c.h.bf16 %v1860_v40  ;;  %v341_v54 = vmul.f32 %v1701_v48, %v1918_v1  ;;  %v342_v55 = vmul.f32 %v1702_v49, %v1918_v1 }
  0x54   :  { %1243 = vst.msk [vmem:[%s2895_s3 + $0xf8] sm:$0xf] %vm1180_vm0, %v1505_v46  ;;  %1244 = vst.msk [vmem:[%s2895_s3 + $0xfc] sm:$0xf] %vm1180_vm0, %v1506_v47  ;;  %v1713_v56 = vunpack.c.l.bf16 %v1861_v45  ;;  %v1714_v57 = vunpack.c.h.bf16 %v1861_v45  ;;  %v343_v58 = vmul.f32 %v1705_v50, %v1918_v1  ;;  %v344_v59 = vmul.f32 %v1706_v51, %v1918_v1 }
  0x55   :  { %v345_v60 = vmul.f32 %v1709_v52, %v1918_v1  ;;  %v346_v61 = vmul.f32 %v1710_v53, %v1918_v1  ;;  %v476_v62 = vadd.f32 %v1932_v7, %v341_v54  ;;  %v477_v63 = vadd.f32 %v1932_v7, %v342_v55 }
  0x56   :  { %v347_v0 = vmul.f32 %v1713_v56, %v1918_v1  ;;  %v348_v2 = vmul.f32 %v1714_v57, %v1918_v1  ;;  %v478_v3 = vadd.f32 %v1932_v7, %v343_v58  ;;  %v479_v4 = vadd.f32 %v1932_v7, %v344_v59 }
  0x57   :  { %v480_v5 = vadd.f32 %v1932_v7, %v345_v60  ;;  %v481_v6 = vadd.f32 %v1932_v7, %v346_v61  ;;  %v604_v8 = vmax.f32 %v476_v62, 0.0  ;;  %v605_v9 = vmax.f32 %v477_v63, 0.0 }
  0x58   :  { %v482_v10 = vadd.f32 %v1932_v7, %v347_v0  ;;  %v483_v11 = vadd.f32 %v1932_v7, %v348_v2  ;;  %v606_v12 = vmax.f32 %v478_v3, 0.0  ;;  %v607_v13 = vmax.f32 %v479_v4, 0.0  ;;  %v1867_v0 = vld [vmem:[%s2892_s0 + $0x148] sm:$0xff]  }
  0x59   :  { %v608_v14 = vmax.f32 %v480_v5, 0.0  ;;  %v609_v15 = vmax.f32 %v481_v6, 0.0  ;;  %v1507_v17 = vpack.c.bf16 %v604_v8, %v604_v8  ;;  %v1508_v18 = vpack.c.bf16 %v605_v9, %v605_v9  ;;  %v1869_v6 = vld [vmem:[%s2892_s0 + $0x158] sm:$0xff]  }
  0x5a   :  { %v610_v19 = vmax.f32 %v482_v10, 0.0  ;;  %v611_v20 = vmax.f32 %v483_v11, 0.0  ;;  %v1509_v23 = vpack.c.bf16 %v606_v12, %v606_v12  ;;  %v1510_v24 = vpack.c.bf16 %v607_v13, %v607_v13 }
  0x5b   :  { %v1511_v25 = vpack.c.bf16 %v608_v14, %v608_v14  ;;  %v1512_v26 = vpack.c.bf16 %v609_v15, %v609_v15  ;;  %1245 = vst.msk [vmem:[%s2895_s3 + $0x100] sm:$0xf] %vm1180_vm0, %v1507_v17  ;;  %1246 = vst.msk [vmem:[%s2895_s3 + $0x104] sm:$0xf] %vm1180_vm0, %v1508_v18  ;;  %v1717_v30 = vunpack.c.l.bf16 %v1862_v16  ;;  %v1718_v31 = vunpack.c.h.bf16 %v1862_v16  ;;  %v2537_v16 = vld [vmem:[%s2893_s1] ss:$0 sm:$0xff] }
  0x5c   :  { %v1513_v28 = vpack.c.bf16 %v610_v19, %v610_v19  ;;  %v1514_v29 = vpack.c.bf16 %v611_v20, %v611_v20  ;;  %1247 = vst.msk [vmem:[%s2895_s3 + $0x108] sm:$0xf] %vm1180_vm0, %v1509_v23  ;;  %1248 = vst.msk [vmem:[%s2895_s3 + $0x10c] sm:$0xf] %vm1180_vm0, %v1510_v24  ;;  %v1721_v32 = vunpack.c.l.bf16 %v1863_v21  ;;  %v1722_v33 = vunpack.c.h.bf16 %v1863_v21 }
  0x5d   :  { %1249 = vst.msk [vmem:[%s2895_s3 + $0x110] sm:$0xf] %vm1180_vm0, %v1511_v25  ;;  %1250 = vst.msk [vmem:[%s2895_s3 + $0x114] sm:$0xf] %vm1180_vm0, %v1512_v26  ;;  %v1725_v34 = vunpack.c.l.bf16 %v1864_v22  ;;  %v1726_v35 = vunpack.c.h.bf16 %v1864_v22  ;;  %v349_v36 = vmul.f32 %v1717_v30, %v1918_v1  ;;  %v350_v37 = vmul.f32 %v1718_v31, %v1918_v1  ;;  %v2548_v25 = vld [vmem:[%s2894_s2] ss:$0 sm:$0xff] }
  0x5e   :  { %1251 = vst.msk [vmem:[%s2895_s3 + $0x118] sm:$0xf] %vm1180_vm0, %v1513_v28  ;;  %1252 = vst.msk [vmem:[%s2895_s3 + $0x11c] sm:$0xf] %vm1180_vm0, %v1514_v29  ;;  %v1729_v38 = vunpack.c.l.bf16 %v1865_v27  ;;  %v1730_v39 = vunpack.c.h.bf16 %v1865_v27  ;;  %v351_v40 = vmul.f32 %v1721_v32, %v1918_v1  ;;  %v352_v41 = vmul.f32 %v1722_v33, %v1918_v1 }
  0x5f   :  { %v353_v42 = vmul.f32 %v1725_v34, %v1918_v1  ;;  %v354_v43 = vmul.f32 %v1726_v35, %v1918_v1  ;;  %v484_v44 = vadd.f32 %v1932_v7, %v349_v36  ;;  %v485_v45 = vadd.f32 %v1932_v7, %v350_v37 }
  0x60   :  { %v355_v46 = vmul.f32 %v1729_v38, %v1918_v1  ;;  %v356_v47 = vmul.f32 %v1730_v39, %v1918_v1  ;;  %v486_v48 = vadd.f32 %v1932_v7, %v351_v40  ;;  %v487_v49 = vadd.f32 %v1932_v7, %v352_v41  ;;  %v1866_v1 = vld [vmem:[%s2892_s0 + $0x140] sm:$0xff]  }
  0x61   :  { %v488_v50 = vadd.f32 %v1932_v7, %v353_v42  ;;  %v489_v51 = vadd.f32 %v1932_v7, %v354_v43  ;;  %v612_v52 = vmax.f32 %v484_v44, 0.0  ;;  %v613_v53 = vmax.f32 %v485_v45, 0.0  ;;  %v1870_v42 = vld [vmem:[%s2892_s0 + $0x160] sm:$0xff]  }
  0x62   :  { %v490_v54 = vadd.f32 %v1932_v7, %v355_v46  ;;  %v491_v55 = vadd.f32 %v1932_v7, %v356_v47  ;;  %v614_v56 = vmax.f32 %v486_v48, 0.0  ;;  %v615_v57 = vmax.f32 %v487_v49, 0.0  ;;  %v1868_v7 = vld [vmem:[%s2892_s0 + $0x150] sm:$0xff]   ;;  %v1871_v47 = vld [vmem:[%s2892_s0 + $0x168] sm:$0xff]  }
  0x63   :  { %v616_v58 = vmax.f32 %v488_v50, 0.0  ;;  %v617_v59 = vmax.f32 %v489_v51, 0.0  ;;  %v1515_v60 = vpack.c.bf16 %v612_v52, %v612_v52  ;;  %v1516_v61 = vpack.c.bf16 %v613_v53, %v613_v53  ;;  %v1872_v48 = vld [vmem:[%s2892_s0 + $0x170] sm:$0xff]   ;;  %v1873_v53 = vld [vmem:[%s2892_s0 + $0x178] sm:$0xff]  }
  0x64   :  { %v618_v62 = vmax.f32 %v490_v54, 0.0  ;;  %v619_v63 = vmax.f32 %v491_v55, 0.0  ;;  %v1517_v2 = vpack.c.bf16 %v614_v56, %v614_v56  ;;  %v1518_v3 = vpack.c.bf16 %v615_v57, %v615_v57 }
  0x65   :  { %v1519_v4 = vpack.c.bf16 %v616_v58, %v616_v58  ;;  %v1520_v5 = vpack.c.bf16 %v617_v59, %v617_v59  ;;  %1253 = vst.msk [vmem:[%s2895_s3 + $0x120] sm:$0xf] %vm1180_vm0, %v1515_v60  ;;  %1254 = vst.msk [vmem:[%s2895_s3 + $0x124] sm:$0xf] %vm1180_vm0, %v1516_v61  ;;  %v1733_v10 = vunpack.c.l.bf16 %v1866_v1  ;;  %v1734_v11 = vunpack.c.h.bf16 %v1866_v1 }
  0x66   :  { %v1521_v8 = vpack.c.bf16 %v618_v62, %v618_v62  ;;  %v1522_v9 = vpack.c.bf16 %v619_v63, %v619_v63  ;;  %1255 = vst.msk [vmem:[%s2895_s3 + $0x128] sm:$0xf] %vm1180_vm0, %v1517_v2  ;;  %1256 = vst.msk [vmem:[%s2895_s3 + $0x12c] sm:$0xf] %vm1180_vm0, %v1518_v3  ;;  %v1737_v12 = vunpack.c.l.bf16 %v1867_v0  ;;  %v1738_v13 = vunpack.c.h.bf16 %v1867_v0 }
  0x67   :  { %1257 = vst.msk [vmem:[%s2895_s3 + $0x130] sm:$0xf] %vm1180_vm0, %v1519_v4  ;;  %1258 = vst.msk [vmem:[%s2895_s3 + $0x134] sm:$0xf] %vm1180_vm0, %v1520_v5  ;;  %v1741_v14 = vunpack.c.l.bf16 %v1868_v7  ;;  %v1742_v15 = vunpack.c.h.bf16 %v1868_v7  ;;  %v357_v17 = vmul.f32 %v2537_v16, %v1733_v10  ;;  %v358_v18 = vmul.f32 %v2537_v16, %v1734_v11 }
  0x68   :  { %1259 = vst.msk [vmem:[%s2895_s3 + $0x138] sm:$0xf] %vm1180_vm0, %v1521_v8  ;;  %1260 = vst.msk [vmem:[%s2895_s3 + $0x13c] sm:$0xf] %vm1180_vm0, %v1522_v9  ;;  %v1745_v19 = vunpack.c.l.bf16 %v1869_v6  ;;  %v1746_v20 = vunpack.c.h.bf16 %v1869_v6  ;;  %v359_v21 = vmul.f32 %v2537_v16, %v1737_v12  ;;  %v360_v22 = vmul.f32 %v2537_v16, %v1738_v13 }
  0x69   :  { %v361_v23 = vmul.f32 %v2537_v16, %v1741_v14  ;;  %v362_v24 = vmul.f32 %v2537_v16, %v1742_v15  ;;  %v492_v26 = vadd.f32 %v2548_v25, %v357_v17  ;;  %v493_v27 = vadd.f32 %v2548_v25, %v358_v18 }
  0x6a   :  { %v363_v28 = vmul.f32 %v2537_v16, %v1745_v19  ;;  %v364_v29 = vmul.f32 %v2537_v16, %v1746_v20  ;;  %v494_v30 = vadd.f32 %v2548_v25, %v359_v21  ;;  %v495_v31 = vadd.f32 %v2548_v25, %v360_v22 }
  0x6b   :  { %v496_v32 = vadd.f32 %v2548_v25, %v361_v23  ;;  %v497_v33 = vadd.f32 %v2548_v25, %v362_v24  ;;  %v620_v34 = vmax.f32 %v492_v26, 0.0  ;;  %v621_v35 = vmax.f32 %v493_v27, 0.0  ;;  %v1874_v23 = vld [vmem:[%s2892_s0 + $0x180] sm:$0xff]  }
  0x6c   :  { %v498_v36 = vadd.f32 %v2548_v25, %v363_v28  ;;  %v499_v37 = vadd.f32 %v2548_v25, %v364_v29  ;;  %v622_v38 = vmax.f32 %v494_v30, 0.0  ;;  %v623_v39 = vmax.f32 %v495_v31, 0.0  ;;  %v1875_v29 = vld [vmem:[%s2892_s0 + $0x188] sm:$0xff]   ;;  %v1876_v30 = vld [vmem:[%s2892_s0 + $0x190] sm:$0xff]  }
  0x6d   :  { %v624_v40 = vmax.f32 %v496_v32, 0.0  ;;  %v625_v41 = vmax.f32 %v497_v33, 0.0  ;;  %v1523_v43 = vpack.c.bf16 %v620_v34, %v620_v34  ;;  %v1524_v44 = vpack.c.bf16 %v621_v35, %v621_v35  ;;  %v1877_v35 = vld [vmem:[%s2892_s0 + $0x198] sm:$0xff]  }
  0x6e   :  { %v626_v45 = vmax.f32 %v498_v36, 0.0  ;;  %v627_v46 = vmax.f32 %v499_v37, 0.0  ;;  %v1525_v49 = vpack.c.bf16 %v622_v38, %v622_v38  ;;  %v1526_v50 = vpack.c.bf16 %v623_v39, %v623_v39 }
  0x6f   :  { %v1527_v51 = vpack.c.bf16 %v624_v40, %v624_v40  ;;  %v1528_v52 = vpack.c.bf16 %v625_v41, %v625_v41  ;;  %1261 = vst.msk [vmem:[%s2895_s3 + $0x140] sm:$0xf] %vm1180_vm0, %v1523_v43  ;;  %1262 = vst.msk [vmem:[%s2895_s3 + $0x144] sm:$0xf] %vm1180_vm0, %v1524_v44  ;;  %v1749_v56 = vunpack.c.l.bf16 %v1870_v42  ;;  %v1750_v57 = vunpack.c.h.bf16 %v1870_v42 }
  0x70   :  { %v1529_v54 = vpack.c.bf16 %v626_v45, %v626_v45  ;;  %v1530_v55 = vpack.c.bf16 %v627_v46, %v627_v46  ;;  %1263 = vst.msk [vmem:[%s2895_s3 + $0x148] sm:$0xf] %vm1180_vm0, %v1525_v49  ;;  %1264 = vst.msk [vmem:[%s2895_s3 + $0x14c] sm:$0xf] %vm1180_vm0, %v1526_v50  ;;  %v1753_v58 = vunpack.c.l.bf16 %v1871_v47  ;;  %v1754_v59 = vunpack.c.h.bf16 %v1871_v47 }
  0x71   :  { %1265 = vst.msk [vmem:[%s2895_s3 + $0x150] sm:$0xf] %vm1180_vm0, %v1527_v51  ;;  %1266 = vst.msk [vmem:[%s2895_s3 + $0x154] sm:$0xf] %vm1180_vm0, %v1528_v52  ;;  %v1757_v1 = vunpack.c.l.bf16 %v1872_v48  ;;  %v1758_v60 = vunpack.c.h.bf16 %v1872_v48  ;;  %v365_v61 = vmul.f32 %v2537_v16, %v1749_v56  ;;  %v366_v62 = vmul.f32 %v2537_v16, %v1750_v57 }
  0x72   :  { %1267 = vst.msk [vmem:[%s2895_s3 + $0x158] sm:$0xf] %vm1180_vm0, %v1529_v54  ;;  %1268 = vst.msk [vmem:[%s2895_s3 + $0x15c] sm:$0xf] %vm1180_vm0, %v1530_v55  ;;  %v1761_v63 = vunpack.c.l.bf16 %v1873_v53  ;;  %v1762_v0 = vunpack.c.h.bf16 %v1873_v53  ;;  %v367_v7 = vmul.f32 %v2537_v16, %v1753_v58  ;;  %v368_v2 = vmul.f32 %v2537_v16, %v1754_v59 }
  0x73   :  { %v369_v3 = vmul.f32 %v2537_v16, %v1757_v1  ;;  %v370_v4 = vmul.f32 %v2537_v16, %v1758_v60  ;;  %v500_v5 = vadd.f32 %v2548_v25, %v365_v61  ;;  %v501_v6 = vadd.f32 %v2548_v25, %v366_v62 }
  0x74   :  { %v371_v8 = vmul.f32 %v2537_v16, %v1761_v63  ;;  %v372_v9 = vmul.f32 %v2537_v16, %v1762_v0  ;;  %v502_v10 = vadd.f32 %v2548_v25, %v367_v7  ;;  %v503_v11 = vadd.f32 %v2548_v25, %v368_v2 }
  0x75   :  { %v504_v12 = vadd.f32 %v2548_v25, %v369_v3  ;;  %v505_v13 = vadd.f32 %v2548_v25, %v370_v4  ;;  %v628_v14 = vmax.f32 %v500_v5, 0.0  ;;  %v629_v15 = vmax.f32 %v501_v6, 0.0  ;;  %v1878_v3 = vld [vmem:[%s2892_s0 + $0x1a0] sm:$0xff]  }
  0x76   :  { %v506_v17 = vadd.f32 %v2548_v25, %v371_v8  ;;  %v507_v18 = vadd.f32 %v2548_v25, %v372_v9  ;;  %v630_v19 = vmax.f32 %v502_v10, 0.0  ;;  %v631_v20 = vmax.f32 %v503_v11, 0.0  ;;  %v1879_v9 = vld [vmem:[%s2892_s0 + $0x1a8] sm:$0xff]   ;;  %v1880_v10 = vld [vmem:[%s2892_s0 + $0x1b0] sm:$0xff]  }
  0x77   :  { %v632_v21 = vmax.f32 %v504_v12, 0.0  ;;  %v633_v22 = vmax.f32 %v505_v13, 0.0  ;;  %v1531_v24 = vpack.c.bf16 %v628_v14, %v628_v14  ;;  %v1532_v26 = vpack.c.bf16 %v629_v15, %v629_v15  ;;  %v1881_v15 = vld [vmem:[%s2892_s0 + $0x1b8] sm:$0xff]  }
  0x78   :  { %v634_v27 = vmax.f32 %v506_v17, 0.0  ;;  %v635_v28 = vmax.f32 %v507_v18, 0.0  ;;  %v1533_v31 = vpack.c.bf16 %v630_v19, %v630_v19  ;;  %v1534_v32 = vpack.c.bf16 %v631_v20, %v631_v20 }
  0x79   :  { %v1535_v33 = vpack.c.bf16 %v632_v21, %v632_v21  ;;  %v1536_v34 = vpack.c.bf16 %v633_v22, %v633_v22  ;;  %1269 = vst.msk [vmem:[%s2895_s3 + $0x160] sm:$0xf] %vm1180_vm0, %v1531_v24  ;;  %1270 = vst.msk [vmem:[%s2895_s3 + $0x164] sm:$0xf] %vm1180_vm0, %v1532_v26  ;;  %v1765_v38 = vunpack.c.l.bf16 %v1874_v23  ;;  %v1766_v39 = vunpack.c.h.bf16 %v1874_v23 }
  0x7a   :  { %v1537_v36 = vpack.c.bf16 %v634_v27, %v634_v27  ;;  %v1538_v37 = vpack.c.bf16 %v635_v28, %v635_v28  ;;  %1271 = vst.msk [vmem:[%s2895_s3 + $0x168] sm:$0xf] %vm1180_vm0, %v1533_v31  ;;  %1272 = vst.msk [vmem:[%s2895_s3 + $0x16c] sm:$0xf] %vm1180_vm0, %v1534_v32  ;;  %v1769_v40 = vunpack.c.l.bf16 %v1875_v29  ;;  %v1770_v41 = vunpack.c.h.bf16 %v1875_v29 }
  0x7b   :  { %1273 = vst.msk [vmem:[%s2895_s3 + $0x170] sm:$0xf] %vm1180_vm0, %v1535_v33  ;;  %1274 = vst.msk [vmem:[%s2895_s3 + $0x174] sm:$0xf] %vm1180_vm0, %v1536_v34  ;;  %v1773_v42 = vunpack.c.l.bf16 %v1876_v30  ;;  %v1774_v43 = vunpack.c.h.bf16 %v1876_v30  ;;  %v373_v44 = vmul.f32 %v2537_v16, %v1765_v38  ;;  %v374_v45 = vmul.f32 %v2537_v16, %v1766_v39 }
  0x7c   :  { %1275 = vst.msk [vmem:[%s2895_s3 + $0x178] sm:$0xf] %vm1180_vm0, %v1537_v36  ;;  %1276 = vst.msk [vmem:[%s2895_s3 + $0x17c] sm:$0xf] %vm1180_vm0, %v1538_v37  ;;  %v1777_v46 = vunpack.c.l.bf16 %v1877_v35  ;;  %v1778_v47 = vunpack.c.h.bf16 %v1877_v35  ;;  %v375_v48 = vmul.f32 %v2537_v16, %v1769_v40  ;;  %v376_v49 = vmul.f32 %v2537_v16, %v1770_v41 }
  0x7d   :  { %v377_v50 = vmul.f32 %v2537_v16, %v1773_v42  ;;  %v378_v51 = vmul.f32 %v2537_v16, %v1774_v43  ;;  %v508_v52 = vadd.f32 %v2548_v25, %v373_v44  ;;  %v509_v53 = vadd.f32 %v2548_v25, %v374_v45 }
  0x7e   :  { %v379_v54 = vmul.f32 %v2537_v16, %v1777_v46  ;;  %v380_v55 = vmul.f32 %v2537_v16, %v1778_v47  ;;  %v510_v56 = vadd.f32 %v2548_v25, %v375_v48  ;;  %v511_v57 = vadd.f32 %v2548_v25, %v376_v49 }
  0x7f   :  { %v512_v58 = vadd.f32 %v2548_v25, %v377_v50  ;;  %v513_v59 = vadd.f32 %v2548_v25, %v378_v51  ;;  %v636_v1 = vmax.f32 %v508_v52, 0.0  ;;  %v637_v60 = vmax.f32 %v509_v53, 0.0  ;;  %v1882_v50 = vld [vmem:[%s2892_s0 + $0x1c0] sm:$0xff]  }
  0x80   :  { %v514_v61 = vadd.f32 %v2548_v25, %v379_v54  ;;  %v515_v62 = vadd.f32 %v2548_v25, %v380_v55  ;;  %v638_v63 = vmax.f32 %v510_v56, 0.0  ;;  %v639_v0 = vmax.f32 %v511_v57, 0.0  ;;  %v1883_v55 = vld [vmem:[%s2892_s0 + $0x1c8] sm:$0xff]   ;;  %v1884_v56 = vld [vmem:[%s2892_s0 + $0x1d0] sm:$0xff]  }
  0x81   :  { %v640_v7 = vmax.f32 %v512_v58, 0.0  ;;  %v641_v2 = vmax.f32 %v513_v59, 0.0  ;;  %v1539_v4 = vpack.c.bf16 %v636_v1, %v636_v1  ;;  %v1540_v5 = vpack.c.bf16 %v637_v60, %v637_v60  ;;  %v1885_v60 = vld [vmem:[%s2892_s0 + $0x1d8] sm:$0xff]  }
  0x82   :  { %v642_v6 = vmax.f32 %v514_v61, 0.0  ;;  %v643_v8 = vmax.f32 %v515_v62, 0.0  ;;  %v1541_v11 = vpack.c.bf16 %v638_v63, %v638_v63  ;;  %v1542_v12 = vpack.c.bf16 %v639_v0, %v639_v0 }
  0x83   :  { %v1543_v13 = vpack.c.bf16 %v640_v7, %v640_v7  ;;  %v1544_v14 = vpack.c.bf16 %v641_v2, %v641_v2  ;;  %1277 = vst.msk [vmem:[%s2895_s3 + $0x180] sm:$0xf] %vm1180_vm0, %v1539_v4  ;;  %1278 = vst.msk [vmem:[%s2895_s3 + $0x184] sm:$0xf] %vm1180_vm0, %v1540_v5  ;;  %v1781_v19 = vunpack.c.l.bf16 %v1878_v3  ;;  %v1782_v20 = vunpack.c.h.bf16 %v1878_v3 }
  0x84   :  { %v1545_v17 = vpack.c.bf16 %v642_v6, %v642_v6  ;;  %v1546_v18 = vpack.c.bf16 %v643_v8, %v643_v8  ;;  %1279 = vst.msk [vmem:[%s2895_s3 + $0x188] sm:$0xf] %vm1180_vm0, %v1541_v11  ;;  %1280 = vst.msk [vmem:[%s2895_s3 + $0x18c] sm:$0xf] %vm1180_vm0, %v1542_v12  ;;  %v1785_v21 = vunpack.c.l.bf16 %v1879_v9  ;;  %v1786_v22 = vunpack.c.h.bf16 %v1879_v9 }
  0x85   :  { %1281 = vst.msk [vmem:[%s2895_s3 + $0x190] sm:$0xf] %vm1180_vm0, %v1543_v13  ;;  %1282 = vst.msk [vmem:[%s2895_s3 + $0x194] sm:$0xf] %vm1180_vm0, %v1544_v14  ;;  %v1789_v23 = vunpack.c.l.bf16 %v1880_v10  ;;  %v1790_v24 = vunpack.c.h.bf16 %v1880_v10  ;;  %v381_v26 = vmul.f32 %v2537_v16, %v1781_v19  ;;  %v382_v27 = vmul.f32 %v2537_v16, %v1782_v20 }
  0x86   :  { %1283 = vst.msk [vmem:[%s2895_s3 + $0x198] sm:$0xf] %vm1180_vm0, %v1545_v17  ;;  %1284 = vst.msk [vmem:[%s2895_s3 + $0x19c] sm:$0xf] %vm1180_vm0, %v1546_v18  ;;  %v1793_v28 = vunpack.c.l.bf16 %v1881_v15  ;;  %v1794_v29 = vunpack.c.h.bf16 %v1881_v15  ;;  %v383_v30 = vmul.f32 %v2537_v16, %v1785_v21  ;;  %v384_v31 = vmul.f32 %v2537_v16, %v1786_v22 }
  0x87   :  { %v385_v32 = vmul.f32 %v2537_v16, %v1789_v23  ;;  %v386_v33 = vmul.f32 %v2537_v16, %v1790_v24  ;;  %v516_v34 = vadd.f32 %v2548_v25, %v381_v26  ;;  %v517_v35 = vadd.f32 %v2548_v25, %v382_v27 }
  0x88   :  { %v387_v36 = vmul.f32 %v2537_v16, %v1793_v28  ;;  %v388_v37 = vmul.f32 %v2537_v16, %v1794_v29  ;;  %v518_v38 = vadd.f32 %v2548_v25, %v383_v30  ;;  %v519_v39 = vadd.f32 %v2548_v25, %v384_v31 }
  0x89   :  { %v520_v40 = vadd.f32 %v2548_v25, %v385_v32  ;;  %v521_v41 = vadd.f32 %v2548_v25, %v386_v33  ;;  %v644_v42 = vmax.f32 %v516_v34, 0.0  ;;  %v645_v43 = vmax.f32 %v517_v35, 0.0  ;;  %v1886_v32 = vld [vmem:[%s2892_s0 + $0x1e0] sm:$0xff]  }
  0x8a   :  { %v522_v44 = vadd.f32 %v2548_v25, %v387_v36  ;;  %v523_v45 = vadd.f32 %v2548_v25, %v388_v37  ;;  %v646_v46 = vmax.f32 %v518_v38, 0.0  ;;  %v647_v47 = vmax.f32 %v519_v39, 0.0  ;;  %v1887_v37 = vld [vmem:[%s2892_s0 + $0x1e8] sm:$0xff]   ;;  %v1888_v38 = vld [vmem:[%s2892_s0 + $0x1f0] sm:$0xff]  }
  0x8b   :  { %v648_v48 = vmax.f32 %v520_v40, 0.0  ;;  %v649_v49 = vmax.f32 %v521_v41, 0.0  ;;  %v1547_v51 = vpack.c.bf16 %v644_v42, %v644_v42  ;;  %v1548_v52 = vpack.c.bf16 %v645_v43, %v645_v43  ;;  %v1889_v43 = vld [vmem:[%s2892_s0 + $0x1f8] sm:$0xff]  }
  0x8c   :  { %v650_v53 = vmax.f32 %v522_v44, 0.0  ;;  %v651_v54 = vmax.f32 %v523_v45, 0.0  ;;  %v1549_v57 = vpack.c.bf16 %v646_v46, %v646_v46  ;;  %v1550_v58 = vpack.c.bf16 %v647_v47, %v647_v47 }
  0x8d   :  { %v1551_v59 = vpack.c.bf16 %v648_v48, %v648_v48  ;;  %v1552_v1 = vpack.c.bf16 %v649_v49, %v649_v49  ;;  %1285 = vst.msk [vmem:[%s2895_s3 + $0x1a0] sm:$0xf] %vm1180_vm0, %v1547_v51  ;;  %1286 = vst.msk [vmem:[%s2895_s3 + $0x1a4] sm:$0xf] %vm1180_vm0, %v1548_v52  ;;  %v1797_v63 = vunpack.c.l.bf16 %v1882_v50  ;;  %v1798_v0 = vunpack.c.h.bf16 %v1882_v50 }
  0x8e   :  { %v1553_v61 = vpack.c.bf16 %v650_v53, %v650_v53  ;;  %v1554_v62 = vpack.c.bf16 %v651_v54, %v651_v54  ;;  %1287 = vst.msk [vmem:[%s2895_s3 + $0x1a8] sm:$0xf] %vm1180_vm0, %v1549_v57  ;;  %1288 = vst.msk [vmem:[%s2895_s3 + $0x1ac] sm:$0xf] %vm1180_vm0, %v1550_v58  ;;  %v1801_v7 = vunpack.c.l.bf16 %v1883_v55  ;;  %v1802_v2 = vunpack.c.h.bf16 %v1883_v55 }
  0x8f   :  { %1289 = vst.msk [vmem:[%s2895_s3 + $0x1b0] sm:$0xf] %vm1180_vm0, %v1551_v59  ;;  %1290 = vst.msk [vmem:[%s2895_s3 + $0x1b4] sm:$0xf] %vm1180_vm0, %v1552_v1  ;;  %v1805_v3 = vunpack.c.l.bf16 %v1884_v56  ;;  %v1806_v4 = vunpack.c.h.bf16 %v1884_v56  ;;  %v389_v5 = vmul.f32 %v2537_v16, %v1797_v63  ;;  %v390_v6 = vmul.f32 %v2537_v16, %v1798_v0 }
  0x90   :  { %1291 = vst.msk [vmem:[%s2895_s3 + $0x1b8] sm:$0xf] %vm1180_vm0, %v1553_v61  ;;  %1292 = vst.msk [vmem:[%s2895_s3 + $0x1bc] sm:$0xf] %vm1180_vm0, %v1554_v62  ;;  %v1809_v8 = vunpack.c.l.bf16 %v1885_v60  ;;  %v1810_v9 = vunpack.c.h.bf16 %v1885_v60  ;;  %v391_v10 = vmul.f32 %v2537_v16, %v1801_v7  ;;  %v392_v11 = vmul.f32 %v2537_v16, %v1802_v2 }
  0x91   :  { %v393_v12 = vmul.f32 %v2537_v16, %v1805_v3  ;;  %v394_v13 = vmul.f32 %v2537_v16, %v1806_v4  ;;  %v524_v14 = vadd.f32 %v2548_v25, %v389_v5  ;;  %v525_v15 = vadd.f32 %v2548_v25, %v390_v6 }
  0x92   :  { %v395_v17 = vmul.f32 %v2537_v16, %v1809_v8  ;;  %v396_v18 = vmul.f32 %v2537_v16, %v1810_v9  ;;  %v526_v19 = vadd.f32 %v2548_v25, %v391_v10  ;;  %v527_v20 = vadd.f32 %v2548_v25, %v392_v11 }
  0x93   :  { %v528_v21 = vadd.f32 %v2548_v25, %v393_v12  ;;  %v529_v22 = vadd.f32 %v2548_v25, %v394_v13  ;;  %v652_v23 = vmax.f32 %v524_v14, 0.0  ;;  %v653_v24 = vmax.f32 %v525_v15, 0.0 }
  0x94   :  { %v530_v26 = vadd.f32 %v2548_v25, %v395_v17  ;;  %v531_v27 = vadd.f32 %v2548_v25, %v396_v18  ;;  %v654_v28 = vmax.f32 %v526_v19, 0.0  ;;  %v655_v29 = vmax.f32 %v527_v20, 0.0 }
  0x95   :  { %v656_v30 = vmax.f32 %v528_v21, 0.0  ;;  %v657_v31 = vmax.f32 %v529_v22, 0.0  ;;  %v1555_v33 = vpack.c.bf16 %v652_v23, %v652_v23  ;;  %v1556_v34 = vpack.c.bf16 %v653_v24, %v653_v24 }
  0x96   :  { %v658_v35 = vmax.f32 %v530_v26, 0.0  ;;  %v659_v36 = vmax.f32 %v531_v27, 0.0  ;;  %v1557_v39 = vpack.c.bf16 %v654_v28, %v654_v28  ;;  %v1558_v40 = vpack.c.bf16 %v655_v29, %v655_v29 }
  0x97   :  { %v1559_v41 = vpack.c.bf16 %v656_v30, %v656_v30  ;;  %v1560_v42 = vpack.c.bf16 %v657_v31, %v657_v31  ;;  %1293 = vst.msk [vmem:[%s2895_s3 + $0x1c0] sm:$0xf] %vm1180_vm0, %v1555_v33  ;;  %1294 = vst.msk [vmem:[%s2895_s3 + $0x1c4] sm:$0xf] %vm1180_vm0, %v1556_v34  ;;  %v1813_v46 = vunpack.c.l.bf16 %v1886_v32  ;;  %v1814_v47 = vunpack.c.h.bf16 %v1886_v32 }
  0x98   :  { %v1561_v44 = vpack.c.bf16 %v658_v35, %v658_v35  ;;  %v1562_v45 = vpack.c.bf16 %v659_v36, %v659_v36  ;;  %1295 = vst.msk [vmem:[%s2895_s3 + $0x1c8] sm:$0xf] %vm1180_vm0, %v1557_v39  ;;  %1296 = vst.msk [vmem:[%s2895_s3 + $0x1cc] sm:$0xf] %vm1180_vm0, %v1558_v40  ;;  %v1817_v48 = vunpack.c.l.bf16 %v1887_v37  ;;  %v1818_v49 = vunpack.c.h.bf16 %v1887_v37 }
  0x99   :  { %1297 = vst.msk [vmem:[%s2895_s3 + $0x1d0] sm:$0xf] %vm1180_vm0, %v1559_v41  ;;  %1298 = vst.msk [vmem:[%s2895_s3 + $0x1d4] sm:$0xf] %vm1180_vm0, %v1560_v42  ;;  %v1821_v50 = vunpack.c.l.bf16 %v1888_v38  ;;  %v1822_v51 = vunpack.c.h.bf16 %v1888_v38  ;;  %v397_v52 = vmul.f32 %v2537_v16, %v1813_v46  ;;  %v398_v53 = vmul.f32 %v2537_v16, %v1814_v47 }
  0x9a   :  { %1299 = vst.msk [vmem:[%s2895_s3 + $0x1d8] sm:$0xf] %vm1180_vm0, %v1561_v44  ;;  %1300 = vst.msk [vmem:[%s2895_s3 + $0x1dc] sm:$0xf] %vm1180_vm0, %v1562_v45  ;;  %v1825_v54 = vunpack.c.l.bf16 %v1889_v43  ;;  %v1826_v55 = vunpack.c.h.bf16 %v1889_v43  ;;  %v399_v56 = vmul.f32 %v2537_v16, %v1817_v48  ;;  %v400_v57 = vmul.f32 %v2537_v16, %v1818_v49 }
  0x9b   :  { %v401_v58 = vmul.f32 %v2537_v16, %v1821_v50  ;;  %v402_v59 = vmul.f32 %v2537_v16, %v1822_v51  ;;  %v532_v1 = vadd.f32 %v2548_v25, %v397_v52  ;;  %v533_v60 = vadd.f32 %v2548_v25, %v398_v53 }
  0x9c   :  { %v403_v61 = vmul.f32 %v2537_v16, %v1825_v54  ;;  %v404_v62 = vmul.f32 %v2537_v16, %v1826_v55  ;;  %v534_v63 = vadd.f32 %v2548_v25, %v399_v56  ;;  %v535_v0 = vadd.f32 %v2548_v25, %v400_v57 }
  0x9d   :  { %v536_v7 = vadd.f32 %v2548_v25, %v401_v58  ;;  %v537_v2 = vadd.f32 %v2548_v25, %v402_v59  ;;  %v660_v3 = vmax.f32 %v532_v1, 0.0  ;;  %v661_v4 = vmax.f32 %v533_v60, 0.0 }
  0x9e   :  { %v538_v5 = vadd.f32 %v2548_v25, %v403_v61  ;;  %v539_v6 = vadd.f32 %v2548_v25, %v404_v62  ;;  %v662_v8 = vmax.f32 %v534_v63, 0.0  ;;  %v663_v9 = vmax.f32 %v535_v0, 0.0 }
  0x9f   :  { %v664_v10 = vmax.f32 %v536_v7, 0.0  ;;  %v665_v11 = vmax.f32 %v537_v2, 0.0  ;;  %v1563_v12 = vpack.c.bf16 %v660_v3, %v660_v3  ;;  %v1564_v16 = vpack.c.bf16 %v661_v4, %v661_v4 }
  0xa0   :  { %v666_v13 = vmax.f32 %v538_v5, 0.0  ;;  %v667_v14 = vmax.f32 %v539_v6, 0.0  ;;  %v1565_v15 = vpack.c.bf16 %v662_v8, %v662_v8  ;;  %v1566_v17 = vpack.c.bf16 %v663_v9, %v663_v9 }
  0xa1   :  { %v1567_v18 = vpack.c.bf16 %v664_v10, %v664_v10  ;;  %v1568_v19 = vpack.c.bf16 %v665_v11, %v665_v11  ;;  %1301 = vst.msk [vmem:[%s2895_s3 + $0x1e0] sm:$0xf] %vm1180_vm0, %v1563_v12  ;;  %1302 = vst.msk [vmem:[%s2895_s3 + $0x1e4] sm:$0xf] %vm1180_vm0, %v1564_v16 }
  0xa2   :  { %v1569_v25 = vpack.c.bf16 %v666_v13, %v666_v13  ;;  %v1570_v20 = vpack.c.bf16 %v667_v14, %v667_v14  ;;  %1303 = vst.msk [vmem:[%s2895_s3 + $0x1e8] sm:$0xf] %vm1180_vm0, %v1565_v15  ;;  %1304 = vst.msk [vmem:[%s2895_s3 + $0x1ec] sm:$0xf] %vm1180_vm0, %v1566_v17 }
  0xa3   :  { %1305 = vst.msk [vmem:[%s2895_s3 + $0x1f0] sm:$0xf] %vm1180_vm0, %v1567_v18  ;;  %1306 = vst.msk [vmem:[%s2895_s3 + $0x1f4] sm:$0xf] %vm1180_vm0, %v1568_v19 }
  0xa4   :  { %1307 = vst.msk [vmem:[%s2895_s3 + $0x1f8] sm:$0xf] %vm1180_vm0, %v1569_v25  ;;  %1308 = vst.msk [vmem:[%s2895_s3 + $0x1fc] sm:$0xf] %vm1180_vm0, %v1570_v20 }

// kernel: basic_block_forward.7
= control target key start
LH: loop header
LB: loop body
LE: loop exit
PB: predicated region body
PF: predicated region fallthrough
CT: control target
= control target key end

     0   :  { %vm1055_vm0 = vcmask 31744   ;;  %s3027_s0 = inlined_call_operand.vmem [shape: bf16[16,64,4], index: 0, kind: input, shape index: {}]   ;;  %s3028_s1 = inlined_call_operand.vmem [shape: f32[1,4], index: 1, kind: input, shape index: {}]   ;;  %s3029_s2 = inlined_call_operand.vmem [shape: f32[1,4], index: 2, kind: input, shape index: {}]   ;;  %s3030_s3 = inlined_call_operand.vmem [shape: bf16[16,64,4], index: 3, kind: input, shape index: {}]   ;;  %s3031_s4 = inlined_call_operand.vmem [shape: f32[16,64,4], index: 4, kind: output, shape index: {}]  }
   0x1   :  { %v1191_v0 = vld [vmem:[%s3027_s0] sm:$0xff]   ;;  %v1702_v5 = vld [vmem:[%s3027_s0 + $0x8] sm:$0xff]   ;;  %v1703_v12 = vld [vmem:[%s3027_s0 + $0x10] sm:$0xff]  }
   0x2   :  { %v1861_v1 = vld [vmem:[%s3028_s1] ss:$0 sm:$0xff]  ;;  %v1192_v2 = vunpack.c.l.bf16 %v1191_v0  ;;  %v1193_v4 = vunpack.c.h.bf16 %v1191_v0  ;;  %v1765_v6 = vld [vmem:[%s3030_s3 + $0x8] sm:$0xff]   ;;  %v1196_v10 = vunpack.c.l.bf16 %v1702_v5  ;;  %v1766_v13 = vld [vmem:[%s3030_s3 + $0x10] sm:$0xff]   ;;  %v1197_v16 = vunpack.c.h.bf16 %v1702_v5 }
   0x3   :  { %v1447_v3 = vld [vmem:[%s3030_s3] sm:$0xff]   ;;  %v1452_v11 = vunpack.c.l.bf16 %v1765_v6  ;;  %v1453_v17 = vunpack.c.h.bf16 %v1765_v6  ;;  %v1704_v18 = vld [vmem:[%s3027_s0 + $0x18] sm:$0xff]   ;;  %v1200_v20 = vunpack.c.l.bf16 %v1703_v12  ;;  %v1456_v21 = vunpack.c.l.bf16 %v1766_v13  ;;  %v1706_v54 = vld [vmem:[%s3027_s0 + $0x28] sm:$0xff]  }
   0x4   :  { %v1875_v7 = vld [vmem:[%s3029_s2] ss:$0 sm:$0xff]  ;;  %v1448_v8 = vunpack.c.l.bf16 %v1447_v3  ;;  %v1449_v9 = vunpack.c.h.bf16 %v1447_v3  ;;  %v280_v14 = vmul.f32 %v1192_v2, %v1861_v1  ;;  %v281_v15 = vmul.f32 %v1193_v4, %v1861_v1  ;;  %v1767_v23 = vld [vmem:[%s3030_s3 + $0x18] sm:$0xff]   ;;  %v1769_v55 = vld [vmem:[%s3030_s3 + $0x28] sm:$0xff]  }
   0x5   :  { %v282_v19 = vmul.f32 %v1196_v10, %v1861_v1  ;;  %v1201_v22 = vunpack.c.h.bf16 %v1703_v12  ;;  %v283_v26 = vmul.f32 %v1197_v16, %v1861_v1  ;;  %v1457_v27 = vunpack.c.h.bf16 %v1766_v13  ;;  %v1705_v40 = vld [vmem:[%s3027_s0 + $0x20] sm:$0xff]   ;;  %v1707_v0 = vld [vmem:[%s3027_s0 + $0x30] sm:$0xff]   ;;  %v1708_v16 = vld [vmem:[%s3027_s0 + $0x38] sm:$0xff]  }
   0x6   :  { %v415_v24 = vadd.f32 %v1875_v7, %v280_v14  ;;  %v416_v25 = vadd.f32 %v1875_v7, %v281_v15  ;;  %v284_v29 = vmul.f32 %v1200_v20, %v1861_v1  ;;  %v1204_v31 = vunpack.c.l.bf16 %v1704_v18  ;;  %v1768_v45 = vld [vmem:[%s3030_s3 + $0x20] sm:$0xff]   ;;  %v1770_v2 = vld [vmem:[%s3030_s3 + $0x30] sm:$0xff]  }
   0x7   :  { %v417_v28 = vadd.f32 %v1875_v7, %v282_v19  ;;  %v285_v30 = vmul.f32 %v1201_v22, %v1861_v1  ;;  %v418_v34 = vadd.f32 %v1875_v7, %v283_v26  ;;  %v1460_v35 = vunpack.c.l.bf16 %v1767_v23 }
   0x8   :  { %v799_v32 = vadd.f32 %v1448_v8, %v415_v24  ;;  %v800_v33 = vadd.f32 %v1449_v9, %v416_v25  ;;  %v419_v37 = vadd.f32 %v1875_v7, %v284_v29  ;;  %v286_v39 = vmul.f32 %v1204_v31, %v1861_v1 }
   0x9   :  { %v801_v36 = vadd.f32 %v1452_v11, %v417_v28  ;;  %v420_v38 = vadd.f32 %v1875_v7, %v285_v30  ;;  %v802_v43 = vadd.f32 %v1453_v17, %v418_v34  ;;  %v1205_v44 = vunpack.c.h.bf16 %v1704_v18  ;;  %v1709_v34 = vld [vmem:[%s3027_s0 + $0x40] sm:$0xff]  }
   0xa   :  { %v927_v41 = vmax.f32 %v799_v32, 0.0  ;;  %v928_v42 = vmax.f32 %v800_v33, 0.0  ;;  %v803_v47 = vadd.f32 %v1456_v21, %v419_v37  ;;  %v421_v49 = vadd.f32 %v1875_v7, %v286_v39  ;;  %v1771_v21 = vld [vmem:[%s3030_s3 + $0x38] sm:$0xff]   ;;  %v1772_v39 = vld [vmem:[%s3030_s3 + $0x40] sm:$0xff]  }
   0xb   :  { %v929_v46 = vmax.f32 %v801_v36, 0.0  ;;  %v804_v48 = vadd.f32 %v1457_v27, %v420_v38  ;;  %v930_v50 = vmax.f32 %v802_v43, 0.0  ;;  %v287_v51 = vmul.f32 %v1205_v44, %v1861_v1 }
   0xc   :  { %1056 = vst.msk [vmem:[%s3031_s4] sm:$0xff] %vm1055_vm0, %v927_v41  ;;  %1057 = vst.msk [vmem:[%s3031_s4 + $0x8] sm:$0xff] %vm1055_vm0, %v928_v42  ;;  %v1461_v52 = vunpack.c.h.bf16 %v1767_v23  ;;  %v1208_v53 = vunpack.c.l.bf16 %v1705_v40  ;;  %v931_v56 = vmax.f32 %v803_v47, 0.0  ;;  %v805_v58 = vadd.f32 %v1460_v35, %v421_v49  ;;  %v1773_v49 = vld [vmem:[%s3030_s3 + $0x48] sm:$0xff]  }
   0xd   :  { %1058 = vst.msk [vmem:[%s3031_s4 + $0x10] sm:$0xff] %vm1055_vm0, %v929_v46  ;;  %v932_v57 = vmax.f32 %v804_v48, 0.0  ;;  %v1464_v59 = vunpack.c.l.bf16 %v1768_v45  ;;  %1059 = vst.msk [vmem:[%s3031_s4 + $0x18] sm:$0xff] %vm1055_vm0, %v930_v50  ;;  %v422_v60 = vadd.f32 %v1875_v7, %v287_v51  ;;  %v1209_v62 = vunpack.c.h.bf16 %v1705_v40  ;;  %v1710_v48 = vld [vmem:[%s3027_s0 + $0x48] sm:$0xff]  }
   0xe   :  { %v288_v61 = vmul.f32 %v1208_v53, %v1861_v1  ;;  %v1465_v63 = vunpack.c.h.bf16 %v1768_v45  ;;  %1060 = vst.msk [vmem:[%s3031_s4 + $0x20] sm:$0xff] %vm1055_vm0, %v931_v56  ;;  %v933_v3 = vmax.f32 %v805_v58, 0.0  ;;  %v1212_v4 = vunpack.c.l.bf16 %v1706_v54  ;;  %v1711_v58 = vld [vmem:[%s3027_s0 + $0x50] sm:$0xff]  }
   0xf   :  { %1061 = vst.msk [vmem:[%s3031_s4 + $0x28] sm:$0xff] %vm1055_vm0, %v932_v57  ;;  %v1468_v5 = vunpack.c.l.bf16 %v1769_v55  ;;  %v1213_v6 = vunpack.c.h.bf16 %v1706_v54  ;;  %v806_v8 = vadd.f32 %v1461_v52, %v422_v60  ;;  %v289_v10 = vmul.f32 %v1209_v62, %v1861_v1 }
  0x10   :  { %v423_v9 = vadd.f32 %v1875_v7, %v288_v61  ;;  %v1469_v11 = vunpack.c.h.bf16 %v1769_v55  ;;  %1062 = vst.msk [vmem:[%s3031_s4 + $0x30] sm:$0xff] %vm1055_vm0, %v933_v3  ;;  %v290_v12 = vmul.f32 %v1212_v4, %v1861_v1  ;;  %v1216_v14 = vunpack.c.l.bf16 %v1707_v0 }
  0x11   :  { %v291_v13 = vmul.f32 %v1213_v6, %v1861_v1  ;;  %v1472_v15 = vunpack.c.l.bf16 %v1770_v2  ;;  %v934_v17 = vmax.f32 %v806_v8, 0.0  ;;  %v424_v19 = vadd.f32 %v1875_v7, %v289_v10  ;;  %v1712_v10 = vld [vmem:[%s3027_s0 + $0x58] sm:$0xff]  }
  0x12   :  { %v807_v18 = vadd.f32 %v1464_v59, %v423_v9  ;;  %v1217_v20 = vunpack.c.h.bf16 %v1707_v0  ;;  %v425_v22 = vadd.f32 %v1875_v7, %v290_v12  ;;  %v292_v24 = vmul.f32 %v1216_v14, %v1861_v1 }
  0x13   :  { %v426_v23 = vadd.f32 %v1875_v7, %v291_v13  ;;  %v1473_v25 = vunpack.c.h.bf16 %v1770_v2  ;;  %1063 = vst.msk [vmem:[%s3031_s4 + $0x38] sm:$0xff] %vm1055_vm0, %v934_v17  ;;  %v808_v27 = vadd.f32 %v1465_v63, %v424_v19  ;;  %v1220_v29 = vunpack.c.l.bf16 %v1708_v16  ;;  %v1774_v63 = vld [vmem:[%s3030_s3 + $0x50] sm:$0xff]   ;;  %v1775_v19 = vld [vmem:[%s3030_s3 + $0x58] sm:$0xff]  }
  0x14   :  { %v935_v26 = vmax.f32 %v807_v18, 0.0  ;;  %v293_v28 = vmul.f32 %v1217_v20, %v1861_v1  ;;  %v809_v30 = vadd.f32 %v1468_v5, %v425_v22  ;;  %v427_v32 = vadd.f32 %v1875_v7, %v292_v24 }
  0x15   :  { %v810_v31 = vadd.f32 %v1469_v11, %v426_v23  ;;  %v1476_v33 = vunpack.c.l.bf16 %v1771_v21  ;;  %v936_v35 = vmax.f32 %v808_v27, 0.0  ;;  %v294_v37 = vmul.f32 %v1220_v29, %v1861_v1 }
  0x16   :  { %1064 = vst.msk [vmem:[%s3031_s4 + $0x40] sm:$0xff] %vm1055_vm0, %v935_v26  ;;  %v428_v36 = vadd.f32 %v1875_v7, %v293_v28  ;;  %v1221_v38 = vunpack.c.h.bf16 %v1708_v16  ;;  %v937_v40 = vmax.f32 %v809_v30, 0.0  ;;  %v811_v42 = vadd.f32 %v1472_v15, %v427_v32  ;;  %v1713_v28 = vld [vmem:[%s3027_s0 + $0x60] sm:$0xff]  }
  0x17   :  { %v938_v41 = vmax.f32 %v810_v31, 0.0  ;;  %v1477_v43 = vunpack.c.h.bf16 %v1771_v21  ;;  %1065 = vst.msk [vmem:[%s3031_s4 + $0x48] sm:$0xff] %vm1055_vm0, %v936_v35  ;;  %v429_v45 = vadd.f32 %v1875_v7, %v294_v37  ;;  %v1224_v47 = vunpack.c.l.bf16 %v1709_v34 }
  0x18   :  { %v812_v44 = vadd.f32 %v1473_v25, %v428_v36  ;;  %v295_v46 = vmul.f32 %v1221_v38, %v1861_v1  ;;  %1066 = vst.msk [vmem:[%s3031_s4 + $0x50] sm:$0xff] %vm1055_vm0, %v937_v40  ;;  %v939_v50 = vmax.f32 %v811_v42, 0.0  ;;  %v1480_v51 = vunpack.c.l.bf16 %v1772_v39  ;;  %v1714_v42 = vld [vmem:[%s3027_s0 + $0x68] sm:$0xff]  }
  0x19   :  { %1067 = vst.msk [vmem:[%s3031_s4 + $0x58] sm:$0xff] %vm1055_vm0, %v938_v41  ;;  %v1225_v52 = vunpack.c.h.bf16 %v1709_v34  ;;  %v1481_v53 = vunpack.c.h.bf16 %v1772_v39  ;;  %v813_v55 = vadd.f32 %v1476_v33, %v429_v45  ;;  %v296_v57 = vmul.f32 %v1224_v47, %v1861_v1  ;;  %v1776_v33 = vld [vmem:[%s3030_s3 + $0x60] sm:$0xff]  }
  0x1a   :  { %v940_v54 = vmax.f32 %v812_v44, 0.0  ;;  %v430_v56 = vadd.f32 %v1875_v7, %v295_v46  ;;  %1068 = vst.msk [vmem:[%s3031_s4 + $0x60] sm:$0xff] %vm1055_vm0, %v939_v50  ;;  %v1228_v60 = vunpack.c.l.bf16 %v1710_v48  ;;  %v1484_v61 = vunpack.c.l.bf16 %v1773_v49 }
  0x1b   :  { %v297_v59 = vmul.f32 %v1225_v52, %v1861_v1  ;;  %v1229_v62 = vunpack.c.h.bf16 %v1710_v48  ;;  %v941_v0 = vmax.f32 %v813_v55, 0.0  ;;  %v431_v3 = vadd.f32 %v1875_v7, %v296_v57  ;;  %v1715_v52 = vld [vmem:[%s3027_s0 + $0x70] sm:$0xff]  }
  0x1c   :  { %1069 = vst.msk [vmem:[%s3031_s4 + $0x68] sm:$0xff] %vm1055_vm0, %v940_v54  ;;  %v814_v2 = vadd.f32 %v1477_v43, %v430_v56  ;;  %v1485_v4 = vunpack.c.h.bf16 %v1773_v49  ;;  %v298_v6 = vmul.f32 %v1228_v60, %v1861_v1  ;;  %v1232_v9 = vunpack.c.l.bf16 %v1711_v58  ;;  %v1777_v43 = vld [vmem:[%s3030_s3 + $0x68] sm:$0xff]   ;;  %v1778_v57 = vld [vmem:[%s3030_s3 + $0x70] sm:$0xff]  }
  0x1d   :  { %v432_v5 = vadd.f32 %v1875_v7, %v297_v59  ;;  %v299_v8 = vmul.f32 %v1229_v62, %v1861_v1  ;;  %1070 = vst.msk [vmem:[%s3031_s4 + $0x70] sm:$0xff] %vm1055_vm0, %v941_v0  ;;  %v815_v12 = vadd.f32 %v1480_v51, %v431_v3  ;;  %v1488_v13 = vunpack.c.l.bf16 %v1774_v63  ;;  %v1716_v3 = vld [vmem:[%s3027_s0 + $0x78] sm:$0xff]  }
  0x1e   :  { %v942_v11 = vmax.f32 %v814_v2, 0.0  ;;  %v1233_v14 = vunpack.c.h.bf16 %v1711_v58  ;;  %v433_v16 = vadd.f32 %v1875_v7, %v298_v6  ;;  %v300_v18 = vmul.f32 %v1232_v9, %v1861_v1 }
  0x1f   :  { %v816_v15 = vadd.f32 %v1481_v53, %v432_v5  ;;  %v434_v17 = vadd.f32 %v1875_v7, %v299_v8  ;;  %v943_v20 = vmax.f32 %v815_v12, 0.0  ;;  %v1489_v22 = vunpack.c.h.bf16 %v1774_v63 }
  0x20   :  { %1071 = vst.msk [vmem:[%s3031_s4 + $0x78] sm:$0xff] %vm1055_vm0, %v942_v11  ;;  %v301_v21 = vmul.f32 %v1233_v14, %v1861_v1  ;;  %v1236_v23 = vunpack.c.l.bf16 %v1712_v10  ;;  %v817_v25 = vadd.f32 %v1484_v61, %v433_v16  ;;  %v435_v27 = vadd.f32 %v1875_v7, %v300_v18 }
  0x21   :  { %v944_v24 = vmax.f32 %v816_v15, 0.0  ;;  %v818_v26 = vadd.f32 %v1485_v4, %v434_v17  ;;  %1072 = vst.msk [vmem:[%s3031_s4 + $0x80] sm:$0xff] %vm1055_vm0, %v943_v20  ;;  %v1492_v31 = vunpack.c.l.bf16 %v1775_v19  ;;  %v1237_v32 = vunpack.c.h.bf16 %v1712_v10 }
  0x22   :  { %v436_v29 = vadd.f32 %v1875_v7, %v301_v21  ;;  %v302_v30 = vmul.f32 %v1236_v23, %v1861_v1  ;;  %v945_v34 = vmax.f32 %v817_v25, 0.0  ;;  %v819_v36 = vadd.f32 %v1488_v13, %v435_v27  ;;  %v1779_v13 = vld [vmem:[%s3030_s3 + $0x78] sm:$0xff]   ;;  %v1780_v27 = vld [vmem:[%s3030_s3 + $0x80] sm:$0xff]  }
  0x23   :  { %1073 = vst.msk [vmem:[%s3031_s4 + $0x88] sm:$0xff] %vm1055_vm0, %v944_v24  ;;  %v946_v35 = vmax.f32 %v818_v26, 0.0  ;;  %v1493_v37 = vunpack.c.h.bf16 %v1775_v19  ;;  %v303_v40 = vmul.f32 %v1237_v32, %v1861_v1  ;;  %v1240_v41 = vunpack.c.l.bf16 %v1713_v28 }
  0x24   :  { %v820_v38 = vadd.f32 %v1489_v22, %v436_v29  ;;  %v437_v39 = vadd.f32 %v1875_v7, %v302_v30  ;;  %1074 = vst.msk [vmem:[%s3031_s4 + $0x90] sm:$0xff] %vm1055_vm0, %v945_v34  ;;  %v947_v44 = vmax.f32 %v819_v36, 0.0  ;;  %v1496_v45 = vunpack.c.l.bf16 %v1776_v33  ;;  %v1717_v22 = vld [vmem:[%s3027_s0 + $0x80] sm:$0xff]   ;;  %v1718_v36 = vld [vmem:[%s3027_s0 + $0x88] sm:$0xff]  }
  0x25   :  { %1075 = vst.msk [vmem:[%s3031_s4 + $0x98] sm:$0xff] %vm1055_vm0, %v946_v35  ;;  %v1241_v46 = vunpack.c.h.bf16 %v1713_v28  ;;  %v1497_v47 = vunpack.c.h.bf16 %v1776_v33  ;;  %v438_v50 = vadd.f32 %v1875_v7, %v303_v40  ;;  %v304_v51 = vmul.f32 %v1240_v41, %v1861_v1 }
  0x26   :  { %v948_v48 = vmax.f32 %v820_v38, 0.0  ;;  %v821_v49 = vadd.f32 %v1492_v31, %v437_v39  ;;  %1076 = vst.msk [vmem:[%s3031_s4 + $0xa0] sm:$0xff] %vm1055_vm0, %v947_v44  ;;  %v1244_v54 = vunpack.c.l.bf16 %v1714_v42  ;;  %v1500_v55 = vunpack.c.l.bf16 %v1777_v43 }
  0x27   :  { %v305_v53 = vmul.f32 %v1241_v46, %v1861_v1  ;;  %v1245_v56 = vunpack.c.h.bf16 %v1714_v42  ;;  %v822_v59 = vadd.f32 %v1493_v37, %v438_v50  ;;  %v439_v60 = vadd.f32 %v1875_v7, %v304_v51  ;;  %v1781_v37 = vld [vmem:[%s3030_s3 + $0x88] sm:$0xff]   ;;  %v1719_v46 = vld [vmem:[%s3027_s0 + $0x90] sm:$0xff]  }
  0x28   :  { %1077 = vst.msk [vmem:[%s3031_s4 + $0xa8] sm:$0xff] %vm1055_vm0, %v948_v48  ;;  %v949_v58 = vmax.f32 %v821_v49, 0.0  ;;  %v1501_v61 = vunpack.c.h.bf16 %v1777_v43  ;;  %v306_v63 = vmul.f32 %v1244_v54, %v1861_v1  ;;  %v1248_v2 = vunpack.c.l.bf16 %v1715_v52  ;;  %v1782_v51 = vld [vmem:[%s3030_s3 + $0x90] sm:$0xff]  }
  0x29   :  { %v440_v62 = vadd.f32 %v1875_v7, %v305_v53  ;;  %v307_v0 = vmul.f32 %v1245_v56, %v1861_v1  ;;  %v950_v4 = vmax.f32 %v822_v59, 0.0  ;;  %v823_v5 = vadd.f32 %v1496_v45, %v439_v60  ;;  %v1720_v60 = vld [vmem:[%s3027_s0 + $0x98] sm:$0xff]  }
  0x2a   :  { %1078 = vst.msk [vmem:[%s3031_s4 + $0xb0] sm:$0xff] %vm1055_vm0, %v949_v58  ;;  %v1504_v6 = vunpack.c.l.bf16 %v1778_v57  ;;  %v1249_v8 = vunpack.c.h.bf16 %v1715_v52  ;;  %v441_v10 = vadd.f32 %v1875_v7, %v306_v63  ;;  %v308_v12 = vmul.f32 %v1248_v2, %v1861_v1 }
  0x2b   :  { %v824_v9 = vadd.f32 %v1497_v47, %v440_v62  ;;  %v442_v11 = vadd.f32 %v1875_v7, %v307_v0  ;;  %1079 = vst.msk [vmem:[%s3031_s4 + $0xb8] sm:$0xff] %vm1055_vm0, %v950_v4  ;;  %v951_v14 = vmax.f32 %v823_v5, 0.0  ;;  %v1505_v16 = vunpack.c.h.bf16 %v1778_v57 }
  0x2c   :  { %v309_v15 = vmul.f32 %v1249_v8, %v1861_v1  ;;  %v1252_v17 = vunpack.c.l.bf16 %v1716_v3  ;;  %v825_v19 = vadd.f32 %v1500_v55, %v441_v10  ;;  %v443_v21 = vadd.f32 %v1875_v7, %v308_v12 }
  0x2d   :  { %v952_v18 = vmax.f32 %v824_v9, 0.0  ;;  %v826_v20 = vadd.f32 %v1501_v61, %v442_v11  ;;  %1080 = vst.msk [vmem:[%s3031_s4 + $0xc0] sm:$0xff] %vm1055_vm0, %v951_v14  ;;  %v1508_v25 = vunpack.c.l.bf16 %v1779_v13  ;;  %v1253_v26 = vunpack.c.h.bf16 %v1716_v3 }
  0x2e   :  { %v444_v23 = vadd.f32 %v1875_v7, %v309_v15  ;;  %v310_v24 = vmul.f32 %v1252_v17, %v1861_v1  ;;  %v953_v28 = vmax.f32 %v825_v19, 0.0  ;;  %v827_v30 = vadd.f32 %v1504_v6, %v443_v21  ;;  %v1783_v6 = vld [vmem:[%s3030_s3 + $0x98] sm:$0xff]   ;;  %v1784_v21 = vld [vmem:[%s3030_s3 + $0xa0] sm:$0xff]  }
  0x2f   :  { %1081 = vst.msk [vmem:[%s3031_s4 + $0xc8] sm:$0xff] %vm1055_vm0, %v952_v18  ;;  %v954_v29 = vmax.f32 %v826_v20, 0.0  ;;  %v1509_v31 = vunpack.c.h.bf16 %v1779_v13  ;;  %v311_v34 = vmul.f32 %v1253_v26, %v1861_v1  ;;  %v1256_v35 = vunpack.c.l.bf16 %v1717_v22 }
  0x30   :  { %v828_v32 = vadd.f32 %v1505_v16, %v444_v23  ;;  %v445_v33 = vadd.f32 %v1875_v7, %v310_v24  ;;  %1082 = vst.msk [vmem:[%s3031_s4 + $0xd0] sm:$0xff] %vm1055_vm0, %v953_v28  ;;  %v955_v38 = vmax.f32 %v827_v30, 0.0  ;;  %v1512_v39 = vunpack.c.l.bf16 %v1780_v27  ;;  %v1721_v16 = vld [vmem:[%s3027_s0 + $0xa0] sm:$0xff]   ;;  %v1722_v30 = vld [vmem:[%s3027_s0 + $0xa8] sm:$0xff]  }
  0x31   :  { %1083 = vst.msk [vmem:[%s3031_s4 + $0xd8] sm:$0xff] %vm1055_vm0, %v954_v29  ;;  %v1257_v40 = vunpack.c.h.bf16 %v1717_v22  ;;  %v1513_v41 = vunpack.c.h.bf16 %v1780_v27  ;;  %v446_v44 = vadd.f32 %v1875_v7, %v311_v34  ;;  %v312_v45 = vmul.f32 %v1256_v35, %v1861_v1 }
  0x32   :  { %v956_v42 = vmax.f32 %v828_v32, 0.0  ;;  %v829_v43 = vadd.f32 %v1508_v25, %v445_v33  ;;  %1084 = vst.msk [vmem:[%s3031_s4 + $0xe0] sm:$0xff] %vm1055_vm0, %v955_v38  ;;  %v1260_v48 = vunpack.c.l.bf16 %v1718_v36  ;;  %v1516_v49 = vunpack.c.l.bf16 %v1781_v37 }
  0x33   :  { %v313_v47 = vmul.f32 %v1257_v40, %v1861_v1  ;;  %v1261_v50 = vunpack.c.h.bf16 %v1718_v36  ;;  %v830_v53 = vadd.f32 %v1509_v31, %v446_v44  ;;  %v447_v54 = vadd.f32 %v1875_v7, %v312_v45  ;;  %v1785_v31 = vld [vmem:[%s3030_s3 + $0xa8] sm:$0xff]   ;;  %v1723_v40 = vld [vmem:[%s3027_s0 + $0xb0] sm:$0xff]  }
  0x34   :  { %1085 = vst.msk [vmem:[%s3031_s4 + $0xe8] sm:$0xff] %vm1055_vm0, %v956_v42  ;;  %v957_v52 = vmax.f32 %v829_v43, 0.0  ;;  %v1517_v55 = vunpack.c.h.bf16 %v1781_v37  ;;  %v314_v57 = vmul.f32 %v1260_v48, %v1861_v1  ;;  %v1264_v59 = vunpack.c.l.bf16 %v1719_v46  ;;  %v1786_v45 = vld [vmem:[%s3030_s3 + $0xb0] sm:$0xff]  }
  0x35   :  { %v448_v56 = vadd.f32 %v1875_v7, %v313_v47  ;;  %v315_v58 = vmul.f32 %v1261_v50, %v1861_v1  ;;  %v958_v61 = vmax.f32 %v830_v53, 0.0  ;;  %v831_v62 = vadd.f32 %v1512_v39, %v447_v54  ;;  %v1724_v54 = vld [vmem:[%s3027_s0 + $0xb8] sm:$0xff]  }
  0x36   :  { %1086 = vst.msk [vmem:[%s3031_s4 + $0xf0] sm:$0xff] %vm1055_vm0, %v957_v52  ;;  %v1520_v63 = vunpack.c.l.bf16 %v1782_v51  ;;  %v1265_v0 = vunpack.c.h.bf16 %v1719_v46  ;;  %v449_v3 = vadd.f32 %v1875_v7, %v314_v57  ;;  %v316_v5 = vmul.f32 %v1264_v59, %v1861_v1 }
  0x37   :  { %v832_v2 = vadd.f32 %v1513_v41, %v448_v56  ;;  %v450_v4 = vadd.f32 %v1875_v7, %v315_v58  ;;  %1087 = vst.msk [vmem:[%s3031_s4 + $0xf8] sm:$0xff] %vm1055_vm0, %v958_v61  ;;  %v959_v8 = vmax.f32 %v831_v62, 0.0  ;;  %v1521_v10 = vunpack.c.h.bf16 %v1782_v51 }
  0x38   :  { %v317_v9 = vmul.f32 %v1265_v0, %v1861_v1  ;;  %v1268_v11 = vunpack.c.l.bf16 %v1720_v60  ;;  %v833_v13 = vadd.f32 %v1516_v49, %v449_v3  ;;  %v451_v15 = vadd.f32 %v1875_v7, %v316_v5 }
  0x39   :  { %v960_v12 = vmax.f32 %v832_v2, 0.0  ;;  %v834_v14 = vadd.f32 %v1517_v55, %v450_v4  ;;  %1088 = vst.msk [vmem:[%s3031_s4 + $0x100] sm:$0xff] %vm1055_vm0, %v959_v8  ;;  %v1524_v19 = vunpack.c.l.bf16 %v1783_v6  ;;  %v1269_v20 = vunpack.c.h.bf16 %v1720_v60 }
  0x3a   :  { %v452_v17 = vadd.f32 %v1875_v7, %v317_v9  ;;  %v318_v18 = vmul.f32 %v1268_v11, %v1861_v1  ;;  %v961_v22 = vmax.f32 %v833_v13, 0.0  ;;  %v835_v24 = vadd.f32 %v1520_v63, %v451_v15  ;;  %v1787_v63 = vld [vmem:[%s3030_s3 + $0xb8] sm:$0xff]   ;;  %v1788_v15 = vld [vmem:[%s3030_s3 + $0xc0] sm:$0xff]  }
  0x3b   :  { %1089 = vst.msk [vmem:[%s3031_s4 + $0x108] sm:$0xff] %vm1055_vm0, %v960_v12  ;;  %v962_v23 = vmax.f32 %v834_v14, 0.0  ;;  %v1525_v25 = vunpack.c.h.bf16 %v1783_v6  ;;  %v319_v28 = vmul.f32 %v1269_v20, %v1861_v1  ;;  %v1272_v29 = vunpack.c.l.bf16 %v1721_v16 }
  0x3c   :  { %v836_v26 = vadd.f32 %v1521_v10, %v452_v17  ;;  %v453_v27 = vadd.f32 %v1875_v7, %v318_v18  ;;  %1090 = vst.msk [vmem:[%s3031_s4 + $0x110] sm:$0xff] %vm1055_vm0, %v961_v22  ;;  %v963_v32 = vmax.f32 %v835_v24, 0.0  ;;  %v1528_v33 = vunpack.c.l.bf16 %v1784_v21  ;;  %v1725_v10 = vld [vmem:[%s3027_s0 + $0xc0] sm:$0xff]   ;;  %v1726_v24 = vld [vmem:[%s3027_s0 + $0xc8] sm:$0xff]  }
  0x3d   :  { %1091 = vst.msk [vmem:[%s3031_s4 + $0x118] sm:$0xff] %vm1055_vm0, %v962_v23  ;;  %v1273_v34 = vunpack.c.h.bf16 %v1721_v16  ;;  %v1529_v35 = vunpack.c.h.bf16 %v1784_v21  ;;  %v454_v38 = vadd.f32 %v1875_v7, %v319_v28  ;;  %v320_v39 = vmul.f32 %v1272_v29, %v1861_v1 }
  0x3e   :  { %v964_v36 = vmax.f32 %v836_v26, 0.0  ;;  %v837_v37 = vadd.f32 %v1524_v19, %v453_v27  ;;  %1092 = vst.msk [vmem:[%s3031_s4 + $0x120] sm:$0xff] %vm1055_vm0, %v963_v32  ;;  %v1276_v42 = vunpack.c.l.bf16 %v1722_v30  ;;  %v1532_v43 = vunpack.c.l.bf16 %v1785_v31 }
  0x3f   :  { %v321_v41 = vmul.f32 %v1273_v34, %v1861_v1  ;;  %v1277_v44 = vunpack.c.h.bf16 %v1722_v30  ;;  %v838_v47 = vadd.f32 %v1525_v25, %v454_v38  ;;  %v455_v48 = vadd.f32 %v1875_v7, %v320_v39  ;;  %v1789_v25 = vld [vmem:[%s3030_s3 + $0xc8] sm:$0xff]   ;;  %v1727_v34 = vld [vmem:[%s3027_s0 + $0xd0] sm:$0xff]  }
  0x40   :  { %1093 = vst.msk [vmem:[%s3031_s4 + $0x128] sm:$0xff] %vm1055_vm0, %v964_v36  ;;  %v965_v46 = vmax.f32 %v837_v37, 0.0  ;;  %v1533_v49 = vunpack.c.h.bf16 %v1785_v31  ;;  %v322_v51 = vmul.f32 %v1276_v42, %v1861_v1  ;;  %v1280_v53 = vunpack.c.l.bf16 %v1723_v40  ;;  %v1790_v39 = vld [vmem:[%s3030_s3 + $0xd0] sm:$0xff]  }
  0x41   :  { %v456_v50 = vadd.f32 %v1875_v7, %v321_v41  ;;  %v323_v52 = vmul.f32 %v1277_v44, %v1861_v1  ;;  %v966_v55 = vmax.f32 %v838_v47, 0.0  ;;  %v839_v56 = vadd.f32 %v1528_v33, %v455_v48  ;;  %v1728_v48 = vld [vmem:[%s3027_s0 + $0xd8] sm:$0xff]  }
  0x42   :  { %1094 = vst.msk [vmem:[%s3031_s4 + $0x130] sm:$0xff] %vm1055_vm0, %v965_v46  ;;  %v1536_v57 = vunpack.c.l.bf16 %v1786_v45  ;;  %v1281_v58 = vunpack.c.h.bf16 %v1723_v40  ;;  %v457_v60 = vadd.f32 %v1875_v7, %v322_v51  ;;  %v324_v62 = vmul.f32 %v1280_v53, %v1861_v1 }
  0x43   :  { %v840_v59 = vadd.f32 %v1529_v35, %v456_v50  ;;  %v458_v61 = vadd.f32 %v1875_v7, %v323_v52  ;;  %1095 = vst.msk [vmem:[%s3031_s4 + $0x138] sm:$0xff] %vm1055_vm0, %v966_v55  ;;  %v967_v0 = vmax.f32 %v839_v56, 0.0  ;;  %v1537_v3 = vunpack.c.h.bf16 %v1786_v45 }
  0x44   :  { %v325_v2 = vmul.f32 %v1281_v58, %v1861_v1  ;;  %v1284_v4 = vunpack.c.l.bf16 %v1724_v54  ;;  %v841_v6 = vadd.f32 %v1532_v43, %v457_v60  ;;  %v459_v9 = vadd.f32 %v1875_v7, %v324_v62 }
  0x45   :  { %v968_v5 = vmax.f32 %v840_v59, 0.0  ;;  %v842_v8 = vadd.f32 %v1533_v49, %v458_v61  ;;  %1096 = vst.msk [vmem:[%s3031_s4 + $0x140] sm:$0xff] %vm1055_vm0, %v967_v0  ;;  %v1540_v13 = vunpack.c.l.bf16 %v1787_v63  ;;  %v1285_v14 = vunpack.c.h.bf16 %v1724_v54 }
  0x46   :  { %v460_v11 = vadd.f32 %v1875_v7, %v325_v2  ;;  %v326_v12 = vmul.f32 %v1284_v4, %v1861_v1  ;;  %v969_v16 = vmax.f32 %v841_v6, 0.0  ;;  %v843_v18 = vadd.f32 %v1536_v57, %v459_v9  ;;  %v1791_v57 = vld [vmem:[%s3030_s3 + $0xd8] sm:$0xff]   ;;  %v1792_v9 = vld [vmem:[%s3030_s3 + $0xe0] sm:$0xff]  }
  0x47   :  { %1097 = vst.msk [vmem:[%s3031_s4 + $0x148] sm:$0xff] %vm1055_vm0, %v968_v5  ;;  %v970_v17 = vmax.f32 %v842_v8, 0.0  ;;  %v1541_v19 = vunpack.c.h.bf16 %v1787_v63  ;;  %v327_v22 = vmul.f32 %v1285_v14, %v1861_v1  ;;  %v1288_v23 = vunpack.c.l.bf16 %v1725_v10 }
  0x48   :  { %v844_v20 = vadd.f32 %v1537_v3, %v460_v11  ;;  %v461_v21 = vadd.f32 %v1875_v7, %v326_v12  ;;  %1098 = vst.msk [vmem:[%s3031_s4 + $0x150] sm:$0xff] %vm1055_vm0, %v969_v16  ;;  %v971_v26 = vmax.f32 %v843_v18, 0.0  ;;  %v1544_v27 = vunpack.c.l.bf16 %v1788_v15  ;;  %v1729_v3 = vld [vmem:[%s3027_s0 + $0xe0] sm:$0xff]   ;;  %v1730_v18 = vld [vmem:[%s3027_s0 + $0xe8] sm:$0xff]  }
  0x49   :  { %1099 = vst.msk [vmem:[%s3031_s4 + $0x158] sm:$0xff] %vm1055_vm0, %v970_v17  ;;  %v1289_v28 = vunpack.c.h.bf16 %v1725_v10  ;;  %v1545_v29 = vunpack.c.h.bf16 %v1788_v15  ;;  %v462_v32 = vadd.f32 %v1875_v7, %v327_v22  ;;  %v328_v33 = vmul.f32 %v1288_v23, %v1861_v1 }
  0x4a   :  { %v972_v30 = vmax.f32 %v844_v20, 0.0  ;;  %v845_v31 = vadd.f32 %v1540_v13, %v461_v21  ;;  %1100 = vst.msk [vmem:[%s3031_s4 + $0x160] sm:$0xff] %vm1055_vm0, %v971_v26  ;;  %v1292_v36 = vunpack.c.l.bf16 %v1726_v24  ;;  %v1548_v37 = vunpack.c.l.bf16 %v1789_v25 }
  0x4b   :  { %v329_v35 = vmul.f32 %v1289_v28, %v1861_v1  ;;  %v1293_v38 = vunpack.c.h.bf16 %v1726_v24  ;;  %v846_v41 = vadd.f32 %v1541_v19, %v462_v32  ;;  %v463_v42 = vadd.f32 %v1875_v7, %v328_v33  ;;  %v1793_v19 = vld [vmem:[%s3030_s3 + $0xe8] sm:$0xff]   ;;  %v1731_v28 = vld [vmem:[%s3027_s0 + $0xf0] sm:$0xff]  }
  0x4c   :  { %1101 = vst.msk [vmem:[%s3031_s4 + $0x168] sm:$0xff] %vm1055_vm0, %v972_v30  ;;  %v973_v40 = vmax.f32 %v845_v31, 0.0  ;;  %v1549_v43 = vunpack.c.h.bf16 %v1789_v25  ;;  %v330_v45 = vmul.f32 %v1292_v36, %v1861_v1  ;;  %v1296_v47 = vunpack.c.l.bf16 %v1727_v34  ;;  %v1794_v33 = vld [vmem:[%s3030_s3 + $0xf0] sm:$0xff]  }
  0x4d   :  { %v464_v44 = vadd.f32 %v1875_v7, %v329_v35  ;;  %v331_v46 = vmul.f32 %v1293_v38, %v1861_v1  ;;  %v974_v49 = vmax.f32 %v846_v41, 0.0  ;;  %v847_v50 = vadd.f32 %v1544_v27, %v463_v42  ;;  %v1732_v42 = vld [vmem:[%s3027_s0 + $0xf8] sm:$0xff]  }
  0x4e   :  { %1102 = vst.msk [vmem:[%s3031_s4 + $0x170] sm:$0xff] %vm1055_vm0, %v973_v40  ;;  %v1552_v51 = vunpack.c.l.bf16 %v1790_v39  ;;  %v1297_v52 = vunpack.c.h.bf16 %v1727_v34  ;;  %v465_v54 = vadd.f32 %v1875_v7, %v330_v45  ;;  %v332_v56 = vmul.f32 %v1296_v47, %v1861_v1 }
  0x4f   :  { %v848_v53 = vadd.f32 %v1545_v29, %v464_v44  ;;  %v466_v55 = vadd.f32 %v1875_v7, %v331_v46  ;;  %1103 = vst.msk [vmem:[%s3031_s4 + $0x178] sm:$0xff] %vm1055_vm0, %v974_v49  ;;  %v975_v58 = vmax.f32 %v847_v50, 0.0  ;;  %v1553_v60 = vunpack.c.h.bf16 %v1790_v39 }
  0x50   :  { %v333_v59 = vmul.f32 %v1297_v52, %v1861_v1  ;;  %v1300_v61 = vunpack.c.l.bf16 %v1728_v48  ;;  %v849_v63 = vadd.f32 %v1548_v37, %v465_v54  ;;  %v467_v2 = vadd.f32 %v1875_v7, %v332_v56 }
  0x51   :  { %v976_v62 = vmax.f32 %v848_v53, 0.0  ;;  %v850_v0 = vadd.f32 %v1549_v43, %v466_v55  ;;  %1104 = vst.msk [vmem:[%s3031_s4 + $0x180] sm:$0xff] %vm1055_vm0, %v975_v58  ;;  %v1556_v6 = vunpack.c.l.bf16 %v1791_v57  ;;  %v1301_v8 = vunpack.c.h.bf16 %v1728_v48 }
  0x52   :  { %v468_v4 = vadd.f32 %v1875_v7, %v333_v59  ;;  %v334_v5 = vmul.f32 %v1300_v61, %v1861_v1  ;;  %v977_v10 = vmax.f32 %v849_v63, 0.0  ;;  %v851_v12 = vadd.f32 %v1552_v51, %v467_v2  ;;  %v1795_v51 = vld [vmem:[%s3030_s3 + $0xf8] sm:$0xff]   ;;  %v1796_v2 = vld [vmem:[%s3030_s3 + $0x100] sm:$0xff]  }
  0x53   :  { %1105 = vst.msk [vmem:[%s3031_s4 + $0x188] sm:$0xff] %vm1055_vm0, %v976_v62  ;;  %v978_v11 = vmax.f32 %v850_v0, 0.0  ;;  %v1557_v13 = vunpack.c.h.bf16 %v1791_v57  ;;  %v335_v16 = vmul.f32 %v1301_v8, %v1861_v1  ;;  %v1304_v17 = vunpack.c.l.bf16 %v1729_v3 }
  0x54   :  { %v852_v14 = vadd.f32 %v1553_v60, %v468_v4  ;;  %v469_v15 = vadd.f32 %v1875_v7, %v334_v5  ;;  %1106 = vst.msk [vmem:[%s3031_s4 + $0x190] sm:$0xff] %vm1055_vm0, %v977_v10  ;;  %v979_v20 = vmax.f32 %v851_v12, 0.0  ;;  %v1560_v21 = vunpack.c.l.bf16 %v1792_v9  ;;  %v1733_v60 = vld [vmem:[%s3027_s0 + $0x100] sm:$0xff]   ;;  %v1734_v12 = vld [vmem:[%s3027_s0 + $0x108] sm:$0xff]  }
  0x55   :  { %1107 = vst.msk [vmem:[%s3031_s4 + $0x198] sm:$0xff] %vm1055_vm0, %v978_v11  ;;  %v1305_v22 = vunpack.c.h.bf16 %v1729_v3  ;;  %v1561_v23 = vunpack.c.h.bf16 %v1792_v9  ;;  %v470_v26 = vadd.f32 %v1875_v7, %v335_v16  ;;  %v336_v27 = vmul.f32 %v1304_v17, %v1861_v1 }
  0x56   :  { %v980_v24 = vmax.f32 %v852_v14, 0.0  ;;  %v853_v25 = vadd.f32 %v1556_v6, %v469_v15  ;;  %1108 = vst.msk [vmem:[%s3031_s4 + $0x1a0] sm:$0xff] %vm1055_vm0, %v979_v20  ;;  %v1308_v30 = vunpack.c.l.bf16 %v1730_v18  ;;  %v1564_v31 = vunpack.c.l.bf16 %v1793_v19  ;;  %v2440_v20 = vld [vmem:[%s3028_s1] ss:$0 sm:$0xff] }
  0x57   :  { %v337_v29 = vmul.f32 %v1305_v22, %v1861_v1  ;;  %v1309_v32 = vunpack.c.h.bf16 %v1730_v18  ;;  %v854_v35 = vadd.f32 %v1557_v13, %v470_v26  ;;  %v471_v36 = vadd.f32 %v1875_v7, %v336_v27  ;;  %v1797_v13 = vld [vmem:[%s3030_s3 + $0x108] sm:$0xff]   ;;  %v1735_v22 = vld [vmem:[%s3027_s0 + $0x110] sm:$0xff]  }
  0x58   :  { %1109 = vst.msk [vmem:[%s3031_s4 + $0x1a8] sm:$0xff] %vm1055_vm0, %v980_v24  ;;  %v981_v34 = vmax.f32 %v853_v25, 0.0  ;;  %v1565_v37 = vunpack.c.h.bf16 %v1793_v19  ;;  %v338_v39 = vmul.f32 %v1308_v30, %v1861_v1  ;;  %v1312_v41 = vunpack.c.l.bf16 %v1731_v28  ;;  %v1798_v26 = vld [vmem:[%s3030_s3 + $0x110] sm:$0xff]  }
  0x59   :  { %v472_v38 = vadd.f32 %v1875_v7, %v337_v29  ;;  %v339_v40 = vmul.f32 %v1309_v32, %v1861_v1  ;;  %v982_v43 = vmax.f32 %v854_v35, 0.0  ;;  %v855_v44 = vadd.f32 %v1560_v21, %v471_v36  ;;  %v2461_v29 = vld [vmem:[%s3029_s2] ss:$0 sm:$0xff]  ;;  %v1736_v36 = vld [vmem:[%s3027_s0 + $0x118] sm:$0xff]  }
  0x5a   :  { %1110 = vst.msk [vmem:[%s3031_s4 + $0x1b0] sm:$0xff] %vm1055_vm0, %v981_v34  ;;  %v1568_v45 = vunpack.c.l.bf16 %v1794_v33  ;;  %v1313_v46 = vunpack.c.h.bf16 %v1731_v28  ;;  %v473_v48 = vadd.f32 %v1875_v7, %v338_v39  ;;  %v340_v50 = vmul.f32 %v1312_v41, %v1861_v1 }
  0x5b   :  { %v856_v47 = vadd.f32 %v1561_v23, %v472_v38  ;;  %v474_v49 = vadd.f32 %v1875_v7, %v339_v40  ;;  %1111 = vst.msk [vmem:[%s3031_s4 + $0x1b8] sm:$0xff] %vm1055_vm0, %v982_v43  ;;  %v983_v52 = vmax.f32 %v855_v44, 0.0  ;;  %v1569_v54 = vunpack.c.h.bf16 %v1794_v33 }
  0x5c   :  { %v341_v53 = vmul.f32 %v1313_v46, %v1861_v1  ;;  %v1316_v55 = vunpack.c.l.bf16 %v1732_v42  ;;  %v857_v57 = vadd.f32 %v1564_v31, %v473_v48  ;;  %v475_v59 = vadd.f32 %v1875_v7, %v340_v50 }
  0x5d   :  { %v984_v56 = vmax.f32 %v856_v47, 0.0  ;;  %v858_v58 = vadd.f32 %v1565_v37, %v474_v49  ;;  %1112 = vst.msk [vmem:[%s3031_s4 + $0x1c0] sm:$0xff] %vm1055_vm0, %v983_v52  ;;  %v1572_v63 = vunpack.c.l.bf16 %v1795_v51  ;;  %v1317_v0 = vunpack.c.h.bf16 %v1732_v42 }
  0x5e   :  { %v476_v61 = vadd.f32 %v1875_v7, %v341_v53  ;;  %v342_v62 = vmul.f32 %v1316_v55, %v1861_v1  ;;  %v985_v3 = vmax.f32 %v857_v57, 0.0  ;;  %v859_v5 = vadd.f32 %v1568_v45, %v475_v59  ;;  %v1799_v45 = vld [vmem:[%s3030_s3 + $0x118] sm:$0xff]   ;;  %v1800_v59 = vld [vmem:[%s3030_s3 + $0x120] sm:$0xff]  }
  0x5f   :  { %1113 = vst.msk [vmem:[%s3031_s4 + $0x1c8] sm:$0xff] %vm1055_vm0, %v984_v56  ;;  %v986_v4 = vmax.f32 %v858_v58, 0.0  ;;  %v1573_v6 = vunpack.c.h.bf16 %v1795_v51  ;;  %v343_v10 = vmul.f32 %v1317_v0, %v1861_v1  ;;  %v1320_v11 = vunpack.c.l.bf16 %v1733_v60 }
  0x60   :  { %v860_v8 = vadd.f32 %v1569_v54, %v476_v61  ;;  %v477_v9 = vadd.f32 %v1875_v7, %v342_v62  ;;  %1114 = vst.msk [vmem:[%s3031_s4 + $0x1d0] sm:$0xff] %vm1055_vm0, %v985_v3  ;;  %v987_v1 = vmax.f32 %v859_v5, 0.0  ;;  %v1576_v14 = vunpack.c.l.bf16 %v1796_v2  ;;  %v1737_v54 = vld [vmem:[%s3027_s0 + $0x120] sm:$0xff]   ;;  %v1738_v5 = vld [vmem:[%s3027_s0 + $0x128] sm:$0xff]  }
  0x61   :  { %1115 = vst.msk [vmem:[%s3031_s4 + $0x1d8] sm:$0xff] %vm1055_vm0, %v986_v4  ;;  %v1321_v15 = vunpack.c.h.bf16 %v1733_v60  ;;  %v1577_v16 = vunpack.c.h.bf16 %v1796_v2  ;;  %v478_v19 = vadd.f32 %v1875_v7, %v343_v10  ;;  %v344_v21 = vmul.f32 %v2440_v20, %v1320_v11 }
  0x62   :  { %v988_v17 = vmax.f32 %v860_v8, 0.0  ;;  %v861_v18 = vadd.f32 %v1572_v63, %v477_v9  ;;  %1116 = vst.msk [vmem:[%s3031_s4 + $0x1e0] sm:$0xff] %vm1055_vm0, %v987_v1  ;;  %v1324_v24 = vunpack.c.l.bf16 %v1734_v12  ;;  %v1580_v7 = vunpack.c.l.bf16 %v1797_v13 }
  0x63   :  { %v345_v23 = vmul.f32 %v2440_v20, %v1321_v15  ;;  %v1325_v25 = vunpack.c.h.bf16 %v1734_v12  ;;  %v862_v28 = vadd.f32 %v1573_v6, %v478_v19  ;;  %v479_v30 = vadd.f32 %v2461_v29, %v344_v21  ;;  %v1801_v6 = vld [vmem:[%s3030_s3 + $0x128] sm:$0xff]   ;;  %v1739_v15 = vld [vmem:[%s3027_s0 + $0x130] sm:$0xff]  }
  0x64   :  { %1117 = vst.msk [vmem:[%s3031_s4 + $0x1e8] sm:$0xff] %vm1055_vm0, %v988_v17  ;;  %v989_v27 = vmax.f32 %v861_v18, 0.0  ;;  %v1581_v31 = vunpack.c.h.bf16 %v1797_v13  ;;  %v346_v33 = vmul.f32 %v2440_v20, %v1324_v24  ;;  %v1328_v35 = vunpack.c.l.bf16 %v1735_v22  ;;  %v1802_v21 = vld [vmem:[%s3030_s3 + $0x130] sm:$0xff]  }
  0x65   :  { %v480_v32 = vadd.f32 %v2461_v29, %v345_v23  ;;  %v347_v34 = vmul.f32 %v2440_v20, %v1325_v25  ;;  %v990_v37 = vmax.f32 %v862_v28, 0.0  ;;  %v863_v38 = vadd.f32 %v1576_v14, %v479_v30  ;;  %v1740_v30 = vld [vmem:[%s3027_s0 + $0x138] sm:$0xff]  }
  0x66   :  { %1118 = vst.msk [vmem:[%s3031_s4 + $0x1f0] sm:$0xff] %vm1055_vm0, %v989_v27  ;;  %v1584_v39 = vunpack.c.l.bf16 %v1798_v26  ;;  %v1329_v40 = vunpack.c.h.bf16 %v1735_v22  ;;  %v481_v42 = vadd.f32 %v2461_v29, %v346_v33  ;;  %v348_v44 = vmul.f32 %v2440_v20, %v1328_v35 }
  0x67   :  { %v864_v41 = vadd.f32 %v1577_v16, %v480_v32  ;;  %v482_v43 = vadd.f32 %v2461_v29, %v347_v34  ;;  %1119 = vst.msk [vmem:[%s3031_s4 + $0x1f8] sm:$0xff] %vm1055_vm0, %v990_v37  ;;  %v991_v46 = vmax.f32 %v863_v38, 0.0  ;;  %v1585_v48 = vunpack.c.h.bf16 %v1798_v26 }
  0x68   :  { %v349_v47 = vmul.f32 %v2440_v20, %v1329_v40  ;;  %v1332_v49 = vunpack.c.l.bf16 %v1736_v36  ;;  %v865_v51 = vadd.f32 %v1580_v7, %v481_v42  ;;  %v483_v53 = vadd.f32 %v2461_v29, %v348_v44 }
  0x69   :  { %v992_v50 = vmax.f32 %v864_v41, 0.0  ;;  %v866_v52 = vadd.f32 %v1581_v31, %v482_v43  ;;  %1120 = vst.msk [vmem:[%s3031_s4 + $0x200] sm:$0xff] %vm1055_vm0, %v991_v46  ;;  %v1588_v57 = vunpack.c.l.bf16 %v1799_v45  ;;  %v1333_v58 = vunpack.c.h.bf16 %v1736_v36 }
  0x6a   :  { %v484_v55 = vadd.f32 %v2461_v29, %v349_v47  ;;  %v350_v56 = vmul.f32 %v2440_v20, %v1332_v49  ;;  %v993_v60 = vmax.f32 %v865_v51, 0.0  ;;  %v867_v62 = vadd.f32 %v1584_v39, %v483_v53  ;;  %v1803_v39 = vld [vmem:[%s3030_s3 + $0x138] sm:$0xff]   ;;  %v1804_v53 = vld [vmem:[%s3030_s3 + $0x140] sm:$0xff]  }
  0x6b   :  { %1121 = vst.msk [vmem:[%s3031_s4 + $0x208] sm:$0xff] %vm1055_vm0, %v992_v50  ;;  %v994_v61 = vmax.f32 %v866_v52, 0.0  ;;  %v1589_v63 = vunpack.c.h.bf16 %v1799_v45  ;;  %v351_v3 = vmul.f32 %v2440_v20, %v1333_v58  ;;  %v1336_v4 = vunpack.c.l.bf16 %v1737_v54 }
  0x6c   :  { %v868_v0 = vadd.f32 %v1585_v48, %v484_v55  ;;  %v485_v2 = vadd.f32 %v2461_v29, %v350_v56  ;;  %1122 = vst.msk [vmem:[%s3031_s4 + $0x210] sm:$0xff] %vm1055_vm0, %v993_v60  ;;  %v995_v8 = vmax.f32 %v867_v62, 0.0  ;;  %v1592_v9 = vunpack.c.l.bf16 %v1800_v59  ;;  %v1741_v48 = vld [vmem:[%s3027_s0 + $0x140] sm:$0xff]   ;;  %v1742_v62 = vld [vmem:[%s3027_s0 + $0x148] sm:$0xff]  }
  0x6d   :  { %1123 = vst.msk [vmem:[%s3031_s4 + $0x218] sm:$0xff] %vm1055_vm0, %v994_v61  ;;  %v1337_v10 = vunpack.c.h.bf16 %v1737_v54  ;;  %v1593_v11 = vunpack.c.h.bf16 %v1800_v59  ;;  %v486_v1 = vadd.f32 %v2461_v29, %v351_v3  ;;  %v352_v14 = vmul.f32 %v2440_v20, %v1336_v4 }
  0x6e   :  { %v996_v12 = vmax.f32 %v868_v0, 0.0  ;;  %v869_v13 = vadd.f32 %v1588_v57, %v485_v2  ;;  %1124 = vst.msk [vmem:[%s3031_s4 + $0x220] sm:$0xff] %vm1055_vm0, %v995_v8  ;;  %v1340_v17 = vunpack.c.l.bf16 %v1738_v5  ;;  %v1596_v18 = vunpack.c.l.bf16 %v1801_v6 }
  0x6f   :  { %v353_v16 = vmul.f32 %v2440_v20, %v1337_v10  ;;  %v1341_v19 = vunpack.c.h.bf16 %v1738_v5  ;;  %v870_v23 = vadd.f32 %v1589_v63, %v486_v1  ;;  %v487_v24 = vadd.f32 %v2461_v29, %v352_v14  ;;  %v1805_v63 = vld [vmem:[%s3030_s3 + $0x148] sm:$0xff]   ;;  %v1743_v10 = vld [vmem:[%s3027_s0 + $0x150] sm:$0xff]  }
  0x70   :  { %1125 = vst.msk [vmem:[%s3031_s4 + $0x228] sm:$0xff] %vm1055_vm0, %v996_v12  ;;  %v997_v22 = vmax.f32 %v869_v13, 0.0  ;;  %v1597_v7 = vunpack.c.h.bf16 %v1801_v6  ;;  %v354_v26 = vmul.f32 %v2440_v20, %v1340_v17  ;;  %v1344_v28 = vunpack.c.l.bf16 %v1739_v15  ;;  %v1806_v14 = vld [vmem:[%s3030_s3 + $0x150] sm:$0xff]  }
  0x71   :  { %v488_v25 = vadd.f32 %v2461_v29, %v353_v16  ;;  %v355_v27 = vmul.f32 %v2440_v20, %v1341_v19  ;;  %v998_v31 = vmax.f32 %v870_v23, 0.0  ;;  %v871_v32 = vadd.f32 %v1592_v9, %v487_v24  ;;  %v1744_v24 = vld [vmem:[%s3027_s0 + $0x158] sm:$0xff]  }
  0x72   :  { %1126 = vst.msk [vmem:[%s3031_s4 + $0x230] sm:$0xff] %vm1055_vm0, %v997_v22  ;;  %v1600_v33 = vunpack.c.l.bf16 %v1802_v21  ;;  %v1345_v34 = vunpack.c.h.bf16 %v1739_v15  ;;  %v489_v36 = vadd.f32 %v2461_v29, %v354_v26  ;;  %v356_v38 = vmul.f32 %v2440_v20, %v1344_v28 }
  0x73   :  { %v872_v35 = vadd.f32 %v1593_v11, %v488_v25  ;;  %v490_v37 = vadd.f32 %v2461_v29, %v355_v27  ;;  %1127 = vst.msk [vmem:[%s3031_s4 + $0x238] sm:$0xff] %vm1055_vm0, %v998_v31  ;;  %v999_v40 = vmax.f32 %v871_v32, 0.0  ;;  %v1601_v42 = vunpack.c.h.bf16 %v1802_v21 }
  0x74   :  { %v357_v41 = vmul.f32 %v2440_v20, %v1345_v34  ;;  %v1348_v43 = vunpack.c.l.bf16 %v1740_v30  ;;  %v873_v45 = vadd.f32 %v1596_v18, %v489_v36  ;;  %v491_v47 = vadd.f32 %v2461_v29, %v356_v38 }
  0x75   :  { %v1000_v44 = vmax.f32 %v872_v35, 0.0  ;;  %v874_v46 = vadd.f32 %v1597_v7, %v490_v37  ;;  %1128 = vst.msk [vmem:[%s3031_s4 + $0x240] sm:$0xff] %vm1055_vm0, %v999_v40  ;;  %v1604_v51 = vunpack.c.l.bf16 %v1803_v39  ;;  %v1349_v52 = vunpack.c.h.bf16 %v1740_v30 }
  0x76   :  { %v492_v49 = vadd.f32 %v2461_v29, %v357_v41  ;;  %v358_v50 = vmul.f32 %v2440_v20, %v1348_v43  ;;  %v1001_v54 = vmax.f32 %v873_v45, 0.0  ;;  %v875_v56 = vadd.f32 %v1600_v33, %v491_v47  ;;  %v1807_v33 = vld [vmem:[%s3030_s3 + $0x158] sm:$0xff]   ;;  %v1808_v47 = vld [vmem:[%s3030_s3 + $0x160] sm:$0xff]  }
  0x77   :  { %1129 = vst.msk [vmem:[%s3031_s4 + $0x248] sm:$0xff] %vm1055_vm0, %v1000_v44  ;;  %v1002_v55 = vmax.f32 %v874_v46, 0.0  ;;  %v1605_v57 = vunpack.c.h.bf16 %v1803_v39  ;;  %v359_v60 = vmul.f32 %v2440_v20, %v1349_v52  ;;  %v1352_v61 = vunpack.c.l.bf16 %v1741_v48 }
  0x78   :  { %v876_v58 = vadd.f32 %v1601_v42, %v492_v49  ;;  %v493_v59 = vadd.f32 %v2461_v29, %v358_v50  ;;  %1130 = vst.msk [vmem:[%s3031_s4 + $0x250] sm:$0xff] %vm1055_vm0, %v1001_v54  ;;  %v1003_v0 = vmax.f32 %v875_v56, 0.0  ;;  %v1608_v2 = vunpack.c.l.bf16 %v1804_v53  ;;  %v1745_v42 = vld [vmem:[%s3027_s0 + $0x160] sm:$0xff]   ;;  %v1746_v56 = vld [vmem:[%s3027_s0 + $0x168] sm:$0xff]  }
  0x79   :  { %1131 = vst.msk [vmem:[%s3031_s4 + $0x258] sm:$0xff] %vm1055_vm0, %v1002_v55  ;;  %v1353_v3 = vunpack.c.h.bf16 %v1741_v48  ;;  %v1609_v4 = vunpack.c.h.bf16 %v1804_v53  ;;  %v494_v8 = vadd.f32 %v2461_v29, %v359_v60  ;;  %v360_v9 = vmul.f32 %v2440_v20, %v1352_v61 }
  0x7a   :  { %v1004_v5 = vmax.f32 %v876_v58, 0.0  ;;  %v877_v6 = vadd.f32 %v1604_v51, %v493_v59  ;;  %1132 = vst.msk [vmem:[%s3031_s4 + $0x260] sm:$0xff] %vm1055_vm0, %v1003_v0  ;;  %v1356_v12 = vunpack.c.l.bf16 %v1742_v62  ;;  %v1612_v13 = vunpack.c.l.bf16 %v1805_v63 }
  0x7b   :  { %v361_v11 = vmul.f32 %v2440_v20, %v1353_v3  ;;  %v1357_v1 = vunpack.c.h.bf16 %v1742_v62  ;;  %v878_v16 = vadd.f32 %v1605_v57, %v494_v8  ;;  %v495_v17 = vadd.f32 %v2461_v29, %v360_v9  ;;  %v1809_v57 = vld [vmem:[%s3030_s3 + $0x168] sm:$0xff]   ;;  %v1747_v3 = vld [vmem:[%s3027_s0 + $0x170] sm:$0xff]  }
  0x7c   :  { %1133 = vst.msk [vmem:[%s3031_s4 + $0x268] sm:$0xff] %vm1055_vm0, %v1004_v5  ;;  %v1005_v15 = vmax.f32 %v877_v6, 0.0  ;;  %v1613_v18 = vunpack.c.h.bf16 %v1805_v63  ;;  %v362_v21 = vmul.f32 %v2440_v20, %v1356_v12  ;;  %v1360_v23 = vunpack.c.l.bf16 %v1743_v10  ;;  %v1810_v9 = vld [vmem:[%s3030_s3 + $0x170] sm:$0xff]  }
  0x7d   :  { %v496_v19 = vadd.f32 %v2461_v29, %v361_v11  ;;  %v363_v22 = vmul.f32 %v2440_v20, %v1357_v1  ;;  %v1006_v7 = vmax.f32 %v878_v16, 0.0  ;;  %v879_v25 = vadd.f32 %v1608_v2, %v495_v17  ;;  %v1748_v17 = vld [vmem:[%s3027_s0 + $0x178] sm:$0xff]  }
  0x7e   :  { %1134 = vst.msk [vmem:[%s3031_s4 + $0x270] sm:$0xff] %vm1055_vm0, %v1005_v15  ;;  %v1616_v26 = vunpack.c.l.bf16 %v1806_v14  ;;  %v1361_v27 = vunpack.c.h.bf16 %v1743_v10  ;;  %v497_v30 = vadd.f32 %v2461_v29, %v362_v21  ;;  %v364_v32 = vmul.f32 %v2440_v20, %v1360_v23 }
  0x7f   :  { %v880_v28 = vadd.f32 %v1609_v4, %v496_v19  ;;  %v498_v31 = vadd.f32 %v2461_v29, %v363_v22  ;;  %1135 = vst.msk [vmem:[%s3031_s4 + $0x278] sm:$0xff] %vm1055_vm0, %v1006_v7  ;;  %v1007_v34 = vmax.f32 %v879_v25, 0.0  ;;  %v1617_v36 = vunpack.c.h.bf16 %v1806_v14 }
  0x80   :  { %v365_v35 = vmul.f32 %v2440_v20, %v1361_v27  ;;  %v1364_v37 = vunpack.c.l.bf16 %v1744_v24  ;;  %v881_v39 = vadd.f32 %v1612_v13, %v497_v30  ;;  %v499_v41 = vadd.f32 %v2461_v29, %v364_v32 }
  0x81   :  { %v1008_v38 = vmax.f32 %v880_v28, 0.0  ;;  %v882_v40 = vadd.f32 %v1613_v18, %v498_v31  ;;  %1136 = vst.msk [vmem:[%s3031_s4 + $0x280] sm:$0xff] %vm1055_vm0, %v1007_v34  ;;  %v1620_v45 = vunpack.c.l.bf16 %v1807_v33  ;;  %v1365_v46 = vunpack.c.h.bf16 %v1744_v24 }
  0x82   :  { %v500_v43 = vadd.f32 %v2461_v29, %v365_v35  ;;  %v366_v44 = vmul.f32 %v2440_v20, %v1364_v37  ;;  %v1009_v48 = vmax.f32 %v881_v39, 0.0  ;;  %v883_v50 = vadd.f32 %v1616_v26, %v499_v41  ;;  %v1811_v26 = vld [vmem:[%s3030_s3 + $0x178] sm:$0xff]   ;;  %v1812_v41 = vld [vmem:[%s3030_s3 + $0x180] sm:$0xff]  }
  0x83   :  { %1137 = vst.msk [vmem:[%s3031_s4 + $0x288] sm:$0xff] %vm1055_vm0, %v1008_v38  ;;  %v1010_v49 = vmax.f32 %v882_v40, 0.0  ;;  %v1621_v51 = vunpack.c.h.bf16 %v1807_v33  ;;  %v367_v54 = vmul.f32 %v2440_v20, %v1365_v46  ;;  %v1368_v55 = vunpack.c.l.bf16 %v1745_v42 }
  0x84   :  { %v884_v52 = vadd.f32 %v1617_v36, %v500_v43  ;;  %v501_v53 = vadd.f32 %v2461_v29, %v366_v44  ;;  %1138 = vst.msk [vmem:[%s3031_s4 + $0x290] sm:$0xff] %vm1055_vm0, %v1009_v48  ;;  %v1011_v58 = vmax.f32 %v883_v50, 0.0  ;;  %v1624_v59 = vunpack.c.l.bf16 %v1808_v47  ;;  %v1749_v36 = vld [vmem:[%s3027_s0 + $0x180] sm:$0xff]   ;;  %v1750_v50 = vld [vmem:[%s3027_s0 + $0x188] sm:$0xff]  }
  0x85   :  { %1139 = vst.msk [vmem:[%s3031_s4 + $0x298] sm:$0xff] %vm1055_vm0, %v1010_v49  ;;  %v1369_v60 = vunpack.c.h.bf16 %v1745_v42  ;;  %v1625_v61 = vunpack.c.h.bf16 %v1808_v47  ;;  %v502_v0 = vadd.f32 %v2461_v29, %v367_v54  ;;  %v368_v2 = vmul.f32 %v2440_v20, %v1368_v55 }
  0x86   :  { %v1012_v62 = vmax.f32 %v884_v52, 0.0  ;;  %v885_v63 = vadd.f32 %v1620_v45, %v501_v53  ;;  %1140 = vst.msk [vmem:[%s3031_s4 + $0x2a0] sm:$0xff] %vm1055_vm0, %v1011_v58  ;;  %v1372_v5 = vunpack.c.l.bf16 %v1746_v56  ;;  %v1628_v6 = vunpack.c.l.bf16 %v1809_v57 }
  0x87   :  { %v369_v4 = vmul.f32 %v2440_v20, %v1369_v60  ;;  %v1373_v8 = vunpack.c.h.bf16 %v1746_v56  ;;  %v886_v11 = vadd.f32 %v1621_v51, %v502_v0  ;;  %v503_v12 = vadd.f32 %v2461_v29, %v368_v2  ;;  %v1813_v51 = vld [vmem:[%s3030_s3 + $0x188] sm:$0xff]   ;;  %v1751_v60 = vld [vmem:[%s3027_s0 + $0x190] sm:$0xff]  }
  0x88   :  { %1141 = vst.msk [vmem:[%s3031_s4 + $0x2a8] sm:$0xff] %vm1055_vm0, %v1012_v62  ;;  %v1013_v10 = vmax.f32 %v885_v63, 0.0  ;;  %v1629_v13 = vunpack.c.h.bf16 %v1809_v57  ;;  %v370_v14 = vmul.f32 %v2440_v20, %v1372_v5  ;;  %v1376_v16 = vunpack.c.l.bf16 %v1747_v3  ;;  %v1814_v2 = vld [vmem:[%s3030_s3 + $0x190] sm:$0xff]  }
  0x89   :  { %v504_v1 = vadd.f32 %v2461_v29, %v369_v4  ;;  %v371_v15 = vmul.f32 %v2440_v20, %v1373_v8  ;;  %v1014_v18 = vmax.f32 %v886_v11, 0.0  ;;  %v887_v19 = vadd.f32 %v1624_v59, %v503_v12  ;;  %v1752_v12 = vld [vmem:[%s3027_s0 + $0x198] sm:$0xff]  }
  0x8a   :  { %1142 = vst.msk [vmem:[%s3031_s4 + $0x2b0] sm:$0xff] %vm1055_vm0, %v1013_v10  ;;  %v1632_v21 = vunpack.c.l.bf16 %v1810_v9  ;;  %v1377_v22 = vunpack.c.h.bf16 %v1747_v3  ;;  %v505_v24 = vadd.f32 %v2461_v29, %v370_v14  ;;  %v372_v25 = vmul.f32 %v2440_v20, %v1376_v16 }
  0x8b   :  { %v888_v23 = vadd.f32 %v1625_v61, %v504_v1  ;;  %v506_v7 = vadd.f32 %v2461_v29, %v371_v15  ;;  %1143 = vst.msk [vmem:[%s3031_s4 + $0x2b8] sm:$0xff] %vm1055_vm0, %v1014_v18  ;;  %v1015_v27 = vmax.f32 %v887_v19, 0.0  ;;  %v1633_v30 = vunpack.c.h.bf16 %v1810_v9 }
  0x8c   :  { %v373_v28 = vmul.f32 %v2440_v20, %v1377_v22  ;;  %v1380_v31 = vunpack.c.l.bf16 %v1748_v17  ;;  %v889_v33 = vadd.f32 %v1628_v6, %v505_v24  ;;  %v507_v35 = vadd.f32 %v2461_v29, %v372_v25 }
  0x8d   :  { %v1016_v32 = vmax.f32 %v888_v23, 0.0  ;;  %v890_v34 = vadd.f32 %v1629_v13, %v506_v7  ;;  %1144 = vst.msk [vmem:[%s3031_s4 + $0x2c0] sm:$0xff] %vm1055_vm0, %v1015_v27  ;;  %v1636_v39 = vunpack.c.l.bf16 %v1811_v26  ;;  %v1381_v40 = vunpack.c.h.bf16 %v1748_v17 }
  0x8e   :  { %v508_v37 = vadd.f32 %v2461_v29, %v373_v28  ;;  %v374_v38 = vmul.f32 %v2440_v20, %v1380_v31  ;;  %v1017_v42 = vmax.f32 %v889_v33, 0.0  ;;  %v891_v44 = vadd.f32 %v1632_v21, %v507_v35  ;;  %v1815_v21 = vld [vmem:[%s3030_s3 + $0x198] sm:$0xff]   ;;  %v1816_v35 = vld [vmem:[%s3030_s3 + $0x1a0] sm:$0xff]  }
  0x8f   :  { %1145 = vst.msk [vmem:[%s3031_s4 + $0x2c8] sm:$0xff] %vm1055_vm0, %v1016_v32  ;;  %v1018_v43 = vmax.f32 %v890_v34, 0.0  ;;  %v1637_v45 = vunpack.c.h.bf16 %v1811_v26  ;;  %v375_v48 = vmul.f32 %v2440_v20, %v1381_v40  ;;  %v1384_v49 = vunpack.c.l.bf16 %v1749_v36 }
  0x90   :  { %v892_v46 = vadd.f32 %v1633_v30, %v508_v37  ;;  %v509_v47 = vadd.f32 %v2461_v29, %v374_v38  ;;  %1146 = vst.msk [vmem:[%s3031_s4 + $0x2d0] sm:$0xff] %vm1055_vm0, %v1017_v42  ;;  %v1019_v52 = vmax.f32 %v891_v44, 0.0  ;;  %v1640_v53 = vunpack.c.l.bf16 %v1812_v41  ;;  %v1753_v30 = vld [vmem:[%s3027_s0 + $0x1a0] sm:$0xff]   ;;  %v1754_v44 = vld [vmem:[%s3027_s0 + $0x1a8] sm:$0xff]  }
  0x91   :  { %1147 = vst.msk [vmem:[%s3031_s4 + $0x2d8] sm:$0xff] %vm1055_vm0, %v1018_v43  ;;  %v1385_v54 = vunpack.c.h.bf16 %v1749_v36  ;;  %v1641_v55 = vunpack.c.h.bf16 %v1812_v41  ;;  %v510_v58 = vadd.f32 %v2461_v29, %v375_v48  ;;  %v376_v59 = vmul.f32 %v2440_v20, %v1384_v49 }
  0x92   :  { %v1020_v56 = vmax.f32 %v892_v46, 0.0  ;;  %v893_v57 = vadd.f32 %v1636_v39, %v509_v47  ;;  %1148 = vst.msk [vmem:[%s3031_s4 + $0x2e0] sm:$0xff] %vm1055_vm0, %v1019_v52  ;;  %v1388_v62 = vunpack.c.l.bf16 %v1750_v50  ;;  %v1644_v63 = vunpack.c.l.bf16 %v1813_v51 }
  0x93   :  { %v377_v61 = vmul.f32 %v2440_v20, %v1385_v54  ;;  %v1389_v0 = vunpack.c.h.bf16 %v1750_v50  ;;  %v894_v4 = vadd.f32 %v1637_v45, %v510_v58  ;;  %v511_v5 = vadd.f32 %v2461_v29, %v376_v59  ;;  %v1817_v45 = vld [vmem:[%s3030_s3 + $0x1a8] sm:$0xff]   ;;  %v1755_v54 = vld [vmem:[%s3027_s0 + $0x1b0] sm:$0xff]  }
  0x94   :  { %1149 = vst.msk [vmem:[%s3031_s4 + $0x2e8] sm:$0xff] %vm1055_vm0, %v1020_v56  ;;  %v1021_v3 = vmax.f32 %v893_v57, 0.0  ;;  %v1645_v6 = vunpack.c.h.bf16 %v1813_v51  ;;  %v378_v9 = vmul.f32 %v2440_v20, %v1388_v62  ;;  %v1392_v11 = vunpack.c.l.bf16 %v1751_v60  ;;  %v1818_v59 = vld [vmem:[%s3030_s3 + $0x1b0] sm:$0xff]  }
  0x95   :  { %v512_v8 = vadd.f32 %v2461_v29, %v377_v61  ;;  %v379_v10 = vmul.f32 %v2440_v20, %v1389_v0  ;;  %v1022_v13 = vmax.f32 %v894_v4, 0.0  ;;  %v895_v1 = vadd.f32 %v1640_v53, %v511_v5  ;;  %v1756_v5 = vld [vmem:[%s3027_s0 + $0x1b8] sm:$0xff]  }
  0x96   :  { %1150 = vst.msk [vmem:[%s3031_s4 + $0x2f0] sm:$0xff] %vm1055_vm0, %v1021_v3  ;;  %v1648_v14 = vunpack.c.l.bf16 %v1814_v2  ;;  %v1393_v15 = vunpack.c.h.bf16 %v1751_v60  ;;  %v513_v17 = vadd.f32 %v2461_v29, %v378_v9  ;;  %v380_v19 = vmul.f32 %v2440_v20, %v1392_v11 }
  0x97   :  { %v896_v16 = vadd.f32 %v1641_v55, %v512_v8  ;;  %v514_v18 = vadd.f32 %v2461_v29, %v379_v10  ;;  %1151 = vst.msk [vmem:[%s3031_s4 + $0x2f8] sm:$0xff] %vm1055_vm0, %v1022_v13  ;;  %v1023_v22 = vmax.f32 %v895_v1, 0.0  ;;  %v1649_v24 = vunpack.c.h.bf16 %v1814_v2 }
  0x98   :  { %v381_v23 = vmul.f32 %v2440_v20, %v1393_v15  ;;  %v1396_v7 = vunpack.c.l.bf16 %v1752_v12  ;;  %v897_v26 = vadd.f32 %v1644_v63, %v513_v17  ;;  %v515_v28 = vadd.f32 %v2461_v29, %v380_v19 }
  0x99   :  { %v1024_v25 = vmax.f32 %v896_v16, 0.0  ;;  %v898_v27 = vadd.f32 %v1645_v6, %v514_v18  ;;  %1152 = vst.msk [vmem:[%s3031_s4 + $0x300] sm:$0xff] %vm1055_vm0, %v1023_v22  ;;  %v1652_v33 = vunpack.c.l.bf16 %v1815_v21  ;;  %v1397_v34 = vunpack.c.h.bf16 %v1752_v12 }
  0x9a   :  { %v516_v31 = vadd.f32 %v2461_v29, %v381_v23  ;;  %v382_v32 = vmul.f32 %v2440_v20, %v1396_v7  ;;  %v1025_v36 = vmax.f32 %v897_v26, 0.0  ;;  %v899_v38 = vadd.f32 %v1648_v14, %v515_v28  ;;  %v1819_v14 = vld [vmem:[%s3030_s3 + $0x1b8] sm:$0xff]   ;;  %v1820_v28 = vld [vmem:[%s3030_s3 + $0x1c0] sm:$0xff]  }
  0x9b   :  { %1153 = vst.msk [vmem:[%s3031_s4 + $0x308] sm:$0xff] %vm1055_vm0, %v1024_v25  ;;  %v1026_v37 = vmax.f32 %v898_v27, 0.0  ;;  %v1653_v39 = vunpack.c.h.bf16 %v1815_v21  ;;  %v383_v42 = vmul.f32 %v2440_v20, %v1397_v34  ;;  %v1400_v43 = vunpack.c.l.bf16 %v1753_v30 }
  0x9c   :  { %v900_v40 = vadd.f32 %v1649_v24, %v516_v31  ;;  %v517_v41 = vadd.f32 %v2461_v29, %v382_v32  ;;  %1154 = vst.msk [vmem:[%s3031_s4 + $0x310] sm:$0xff] %vm1055_vm0, %v1025_v36  ;;  %v1027_v46 = vmax.f32 %v899_v38, 0.0  ;;  %v1656_v47 = vunpack.c.l.bf16 %v1816_v35  ;;  %v1757_v24 = vld [vmem:[%s3027_s0 + $0x1c0] sm:$0xff]   ;;  %v1758_v38 = vld [vmem:[%s3027_s0 + $0x1c8] sm:$0xff]  }
  0x9d   :  { %1155 = vst.msk [vmem:[%s3031_s4 + $0x318] sm:$0xff] %vm1055_vm0, %v1026_v37  ;;  %v1401_v48 = vunpack.c.h.bf16 %v1753_v30  ;;  %v1657_v49 = vunpack.c.h.bf16 %v1816_v35  ;;  %v518_v52 = vadd.f32 %v2461_v29, %v383_v42  ;;  %v384_v53 = vmul.f32 %v2440_v20, %v1400_v43 }
  0x9e   :  { %v1028_v50 = vmax.f32 %v900_v40, 0.0  ;;  %v901_v51 = vadd.f32 %v1652_v33, %v517_v41  ;;  %1156 = vst.msk [vmem:[%s3031_s4 + $0x320] sm:$0xff] %vm1055_vm0, %v1027_v46  ;;  %v1404_v56 = vunpack.c.l.bf16 %v1754_v44  ;;  %v1660_v57 = vunpack.c.l.bf16 %v1817_v45 }
  0x9f   :  { %v385_v55 = vmul.f32 %v2440_v20, %v1401_v48  ;;  %v1405_v58 = vunpack.c.h.bf16 %v1754_v44  ;;  %v902_v61 = vadd.f32 %v1653_v39, %v518_v52  ;;  %v519_v62 = vadd.f32 %v2461_v29, %v384_v53  ;;  %v1821_v39 = vld [vmem:[%s3030_s3 + $0x1c8] sm:$0xff]   ;;  %v1759_v48 = vld [vmem:[%s3027_s0 + $0x1d0] sm:$0xff]  }
  0xa0   :  { %1157 = vst.msk [vmem:[%s3031_s4 + $0x328] sm:$0xff] %vm1055_vm0, %v1028_v50  ;;  %v1029_v60 = vmax.f32 %v901_v51, 0.0  ;;  %v1661_v63 = vunpack.c.h.bf16 %v1817_v45  ;;  %v386_v2 = vmul.f32 %v2440_v20, %v1404_v56  ;;  %v1408_v4 = vunpack.c.l.bf16 %v1755_v54  ;;  %v1822_v53 = vld [vmem:[%s3030_s3 + $0x1d0] sm:$0xff]  }
  0xa1   :  { %v520_v0 = vadd.f32 %v2461_v29, %v385_v55  ;;  %v387_v3 = vmul.f32 %v2440_v20, %v1405_v58  ;;  %v1030_v6 = vmax.f32 %v902_v61, 0.0  ;;  %v903_v8 = vadd.f32 %v1656_v47, %v519_v62  ;;  %v1760_v62 = vld [vmem:[%s3027_s0 + $0x1d8] sm:$0xff]  }
  0xa2   :  { %1158 = vst.msk [vmem:[%s3031_s4 + $0x330] sm:$0xff] %vm1055_vm0, %v1029_v60  ;;  %v1664_v9 = vunpack.c.l.bf16 %v1818_v59  ;;  %v1409_v10 = vunpack.c.h.bf16 %v1755_v54  ;;  %v521_v12 = vadd.f32 %v2461_v29, %v386_v2  ;;  %v388_v1 = vmul.f32 %v2440_v20, %v1408_v4 }
  0xa3   :  { %v904_v11 = vadd.f32 %v1657_v49, %v520_v0  ;;  %v522_v13 = vadd.f32 %v2461_v29, %v387_v3  ;;  %1159 = vst.msk [vmem:[%s3031_s4 + $0x338] sm:$0xff] %vm1055_vm0, %v1030_v6  ;;  %v1031_v15 = vmax.f32 %v903_v8, 0.0  ;;  %v1665_v17 = vunpack.c.h.bf16 %v1818_v59 }
  0xa4   :  { %v389_v16 = vmul.f32 %v2440_v20, %v1409_v10  ;;  %v1412_v18 = vunpack.c.l.bf16 %v1756_v5  ;;  %v905_v21 = vadd.f32 %v1660_v57, %v521_v12  ;;  %v523_v23 = vadd.f32 %v2461_v29, %v388_v1 }
  0xa5   :  { %v1032_v19 = vmax.f32 %v904_v11, 0.0  ;;  %v906_v22 = vadd.f32 %v1661_v63, %v522_v13  ;;  %1160 = vst.msk [vmem:[%s3031_s4 + $0x340] sm:$0xff] %vm1055_vm0, %v1031_v15  ;;  %v1668_v26 = vunpack.c.l.bf16 %v1819_v14  ;;  %v1413_v27 = vunpack.c.h.bf16 %v1756_v5 }
  0xa6   :  { %v524_v7 = vadd.f32 %v2461_v29, %v389_v16  ;;  %v390_v25 = vmul.f32 %v2440_v20, %v1412_v18  ;;  %v1033_v30 = vmax.f32 %v905_v21, 0.0  ;;  %v907_v32 = vadd.f32 %v1664_v9, %v523_v23  ;;  %v1823_v9 = vld [vmem:[%s3030_s3 + $0x1d8] sm:$0xff]   ;;  %v1824_v23 = vld [vmem:[%s3030_s3 + $0x1e0] sm:$0xff]  }
  0xa7   :  { %1161 = vst.msk [vmem:[%s3031_s4 + $0x348] sm:$0xff] %vm1055_vm0, %v1032_v19  ;;  %v1034_v31 = vmax.f32 %v906_v22, 0.0  ;;  %v1669_v33 = vunpack.c.h.bf16 %v1819_v14  ;;  %v391_v36 = vmul.f32 %v2440_v20, %v1413_v27  ;;  %v1416_v37 = vunpack.c.l.bf16 %v1757_v24 }
  0xa8   :  { %v908_v34 = vadd.f32 %v1665_v17, %v524_v7  ;;  %v525_v35 = vadd.f32 %v2461_v29, %v390_v25  ;;  %1162 = vst.msk [vmem:[%s3031_s4 + $0x350] sm:$0xff] %vm1055_vm0, %v1033_v30  ;;  %v1035_v40 = vmax.f32 %v907_v32, 0.0  ;;  %v1672_v41 = vunpack.c.l.bf16 %v1820_v28  ;;  %v1761_v17 = vld [vmem:[%s3027_s0 + $0x1e0] sm:$0xff]   ;;  %v1762_v32 = vld [vmem:[%s3027_s0 + $0x1e8] sm:$0xff]  }
  0xa9   :  { %1163 = vst.msk [vmem:[%s3031_s4 + $0x358] sm:$0xff] %vm1055_vm0, %v1034_v31  ;;  %v1417_v42 = vunpack.c.h.bf16 %v1757_v24  ;;  %v1673_v43 = vunpack.c.h.bf16 %v1820_v28  ;;  %v526_v46 = vadd.f32 %v2461_v29, %v391_v36  ;;  %v392_v47 = vmul.f32 %v2440_v20, %v1416_v37 }
  0xaa   :  { %v1036_v44 = vmax.f32 %v908_v34, 0.0  ;;  %v909_v45 = vadd.f32 %v1668_v26, %v525_v35  ;;  %1164 = vst.msk [vmem:[%s3031_s4 + $0x360] sm:$0xff] %vm1055_vm0, %v1035_v40  ;;  %v1420_v50 = vunpack.c.l.bf16 %v1758_v38  ;;  %v1676_v51 = vunpack.c.l.bf16 %v1821_v39 }
  0xab   :  { %v393_v49 = vmul.f32 %v2440_v20, %v1417_v42  ;;  %v1421_v52 = vunpack.c.h.bf16 %v1758_v38  ;;  %v910_v55 = vadd.f32 %v1669_v33, %v526_v46  ;;  %v527_v56 = vadd.f32 %v2461_v29, %v392_v47  ;;  %v1825_v33 = vld [vmem:[%s3030_s3 + $0x1e8] sm:$0xff]   ;;  %v1763_v42 = vld [vmem:[%s3027_s0 + $0x1f0] sm:$0xff]  }
  0xac   :  { %1165 = vst.msk [vmem:[%s3031_s4 + $0x368] sm:$0xff] %vm1055_vm0, %v1036_v44  ;;  %v1037_v54 = vmax.f32 %v909_v45, 0.0  ;;  %v1677_v57 = vunpack.c.h.bf16 %v1821_v39  ;;  %v394_v59 = vmul.f32 %v2440_v20, %v1420_v50  ;;  %v1424_v61 = vunpack.c.l.bf16 %v1759_v48  ;;  %v1826_v47 = vld [vmem:[%s3030_s3 + $0x1f0] sm:$0xff]  }
  0xad   :  { %v528_v58 = vadd.f32 %v2461_v29, %v393_v49  ;;  %v395_v60 = vmul.f32 %v2440_v20, %v1421_v52  ;;  %v1038_v63 = vmax.f32 %v910_v55, 0.0  ;;  %v911_v0 = vadd.f32 %v1672_v41, %v527_v56  ;;  %v1764_v56 = vld [vmem:[%s3027_s0 + $0x1f8] sm:$0xff]  }
  0xae   :  { %1166 = vst.msk [vmem:[%s3031_s4 + $0x370] sm:$0xff] %vm1055_vm0, %v1037_v54  ;;  %v1680_v2 = vunpack.c.l.bf16 %v1822_v53  ;;  %v1425_v3 = vunpack.c.h.bf16 %v1759_v48  ;;  %v529_v5 = vadd.f32 %v2461_v29, %v394_v59  ;;  %v396_v8 = vmul.f32 %v2440_v20, %v1424_v61 }
  0xaf   :  { %v912_v4 = vadd.f32 %v1673_v43, %v528_v58  ;;  %v530_v6 = vadd.f32 %v2461_v29, %v395_v60  ;;  %1167 = vst.msk [vmem:[%s3031_s4 + $0x378] sm:$0xff] %vm1055_vm0, %v1038_v63  ;;  %v1039_v10 = vmax.f32 %v911_v0, 0.0  ;;  %v1681_v12 = vunpack.c.h.bf16 %v1822_v53 }
  0xb0   :  { %v397_v11 = vmul.f32 %v2440_v20, %v1425_v3  ;;  %v1428_v13 = vunpack.c.l.bf16 %v1760_v62  ;;  %v913_v14 = vadd.f32 %v1676_v51, %v529_v5  ;;  %v531_v16 = vadd.f32 %v2461_v29, %v396_v8 }
  0xb1   :  { %v1040_v1 = vmax.f32 %v912_v4, 0.0  ;;  %v914_v15 = vadd.f32 %v1677_v57, %v530_v6  ;;  %1168 = vst.msk [vmem:[%s3031_s4 + $0x380] sm:$0xff] %vm1055_vm0, %v1039_v10  ;;  %v1684_v21 = vunpack.c.l.bf16 %v1823_v9  ;;  %v1429_v22 = vunpack.c.h.bf16 %v1760_v62 }
  0xb2   :  { %v532_v18 = vadd.f32 %v2461_v29, %v397_v11  ;;  %v398_v19 = vmul.f32 %v2440_v20, %v1428_v13  ;;  %v1041_v24 = vmax.f32 %v913_v14, 0.0  ;;  %v915_v25 = vadd.f32 %v1680_v2, %v531_v16  ;;  %v1827_v2 = vld [vmem:[%s3030_s3 + $0x1f8] sm:$0xff]  }
  0xb3   :  { %1169 = vst.msk [vmem:[%s3031_s4 + $0x388] sm:$0xff] %vm1055_vm0, %v1040_v1  ;;  %v1042_v7 = vmax.f32 %v914_v15, 0.0  ;;  %v1685_v26 = vunpack.c.h.bf16 %v1823_v9  ;;  %v399_v30 = vmul.f32 %v2440_v20, %v1429_v22  ;;  %v1432_v31 = vunpack.c.l.bf16 %v1761_v17 }
  0xb4   :  { %v916_v27 = vadd.f32 %v1681_v12, %v532_v18  ;;  %v533_v28 = vadd.f32 %v2461_v29, %v398_v19  ;;  %1170 = vst.msk [vmem:[%s3031_s4 + $0x390] sm:$0xff] %vm1055_vm0, %v1041_v24  ;;  %v1043_v34 = vmax.f32 %v915_v25, 0.0  ;;  %v1688_v35 = vunpack.c.l.bf16 %v1824_v23 }
  0xb5   :  { %1171 = vst.msk [vmem:[%s3031_s4 + $0x398] sm:$0xff] %vm1055_vm0, %v1042_v7  ;;  %v1433_v36 = vunpack.c.h.bf16 %v1761_v17  ;;  %v1689_v37 = vunpack.c.h.bf16 %v1824_v23  ;;  %v534_v40 = vadd.f32 %v2461_v29, %v399_v30  ;;  %v400_v41 = vmul.f32 %v2440_v20, %v1432_v31 }
  0xb6   :  { %v1044_v38 = vmax.f32 %v916_v27, 0.0  ;;  %v917_v39 = vadd.f32 %v1684_v21, %v533_v28  ;;  %1172 = vst.msk [vmem:[%s3031_s4 + $0x3a0] sm:$0xff] %vm1055_vm0, %v1043_v34  ;;  %v1436_v44 = vunpack.c.l.bf16 %v1762_v32  ;;  %v1692_v45 = vunpack.c.l.bf16 %v1825_v33 }
  0xb7   :  { %v401_v43 = vmul.f32 %v2440_v20, %v1433_v36  ;;  %v1437_v46 = vunpack.c.h.bf16 %v1762_v32  ;;  %v918_v49 = vadd.f32 %v1685_v26, %v534_v40  ;;  %v535_v50 = vadd.f32 %v2461_v29, %v400_v41 }
  0xb8   :  { %1173 = vst.msk [vmem:[%s3031_s4 + $0x3a8] sm:$0xff] %vm1055_vm0, %v1044_v38  ;;  %v1045_v48 = vmax.f32 %v917_v39, 0.0  ;;  %v1693_v51 = vunpack.c.h.bf16 %v1825_v33  ;;  %v402_v53 = vmul.f32 %v2440_v20, %v1436_v44  ;;  %v1440_v55 = vunpack.c.l.bf16 %v1763_v42 }
  0xb9   :  { %v536_v52 = vadd.f32 %v2461_v29, %v401_v43  ;;  %v403_v54 = vmul.f32 %v2440_v20, %v1437_v46  ;;  %v1046_v57 = vmax.f32 %v918_v49, 0.0  ;;  %v919_v58 = vadd.f32 %v1688_v35, %v535_v50 }
  0xba   :  { %1174 = vst.msk [vmem:[%s3031_s4 + $0x3b0] sm:$0xff] %vm1055_vm0, %v1045_v48  ;;  %v1696_v59 = vunpack.c.l.bf16 %v1826_v47  ;;  %v1441_v60 = vunpack.c.h.bf16 %v1763_v42  ;;  %v537_v62 = vadd.f32 %v2461_v29, %v402_v53  ;;  %v404_v0 = vmul.f32 %v2440_v20, %v1440_v55 }
  0xbb   :  { %v920_v61 = vadd.f32 %v1689_v37, %v536_v52  ;;  %v538_v63 = vadd.f32 %v2461_v29, %v403_v54  ;;  %1175 = vst.msk [vmem:[%s3031_s4 + $0x3b8] sm:$0xff] %vm1055_vm0, %v1046_v57  ;;  %v1047_v3 = vmax.f32 %v919_v58, 0.0  ;;  %v1697_v5 = vunpack.c.h.bf16 %v1826_v47 }
  0xbc   :  { %v405_v4 = vmul.f32 %v2440_v20, %v1441_v60  ;;  %v1444_v6 = vunpack.c.l.bf16 %v1764_v56  ;;  %v921_v9 = vadd.f32 %v1692_v45, %v537_v62  ;;  %v539_v11 = vadd.f32 %v2461_v29, %v404_v0 }
  0xbd   :  { %v1048_v8 = vmax.f32 %v920_v61, 0.0  ;;  %v922_v10 = vadd.f32 %v1693_v51, %v538_v63  ;;  %1176 = vst.msk [vmem:[%s3031_s4 + $0x3c0] sm:$0xff] %vm1055_vm0, %v1047_v3  ;;  %v1700_v1 = vunpack.c.l.bf16 %v1827_v2  ;;  %v1445_v14 = vunpack.c.h.bf16 %v1764_v56 }
  0xbe   :  { %v540_v12 = vadd.f32 %v2461_v29, %v405_v4  ;;  %v406_v13 = vmul.f32 %v2440_v20, %v1444_v6  ;;  %v1049_v15 = vmax.f32 %v921_v9, 0.0  ;;  %v923_v17 = vadd.f32 %v1696_v59, %v539_v11 }
  0xbf   :  { %1177 = vst.msk [vmem:[%s3031_s4 + $0x3c8] sm:$0xff] %vm1055_vm0, %v1048_v8  ;;  %v1050_v16 = vmax.f32 %v922_v10, 0.0  ;;  %v407_v21 = vmul.f32 %v2440_v20, %v1445_v14  ;;  %v1701_v22 = vunpack.c.h.bf16 %v1827_v2 }
  0xc0   :  { %v924_v18 = vadd.f32 %v1697_v5, %v540_v12  ;;  %v541_v19 = vadd.f32 %v2461_v29, %v406_v13  ;;  %1178 = vst.msk [vmem:[%s3031_s4 + $0x3d0] sm:$0xff] %vm1055_vm0, %v1049_v15  ;;  %v1051_v23 = vmax.f32 %v923_v17, 0.0 }
  0xc1   :  { %1179 = vst.msk [vmem:[%s3031_s4 + $0x3d8] sm:$0xff] %vm1055_vm0, %v1050_v16  ;;  %v542_v25 = vadd.f32 %v2461_v29, %v407_v21 }
  0xc2   :  { %v1052_v24 = vmax.f32 %v924_v18, 0.0  ;;  %v925_v7 = vadd.f32 %v1700_v1, %v541_v19  ;;  %1180 = vst.msk [vmem:[%s3031_s4 + $0x3e0] sm:$0xff] %vm1055_vm0, %v1051_v23 }
  0xc3   :  { %v926_v26 = vadd.f32 %v1701_v22, %v542_v25 }
  0xc4   :  { %1181 = vst.msk [vmem:[%s3031_s4 + $0x3e8] sm:$0xff] %vm1055_vm0, %v1052_v24  ;;  %v1053_v20 = vmax.f32 %v925_v7, 0.0 }
  0xc5   :  { %v1054_v27 = vmax.f32 %v926_v26, 0.0 }
  0xc6   :  { %1182 = vst.msk [vmem:[%s3031_s4 + $0x3f0] sm:$0xff] %vm1055_vm0, %v1053_v20 }
  0xc7   :  { %1183 = vst.msk [vmem:[%s3031_s4 + $0x3f8] sm:$0xff] %vm1055_vm0, %v1054_v27 }

// kernel: basic_block_forward.4
= control target key start
LH: loop header
LB: loop body
LE: loop exit
PB: predicated region body
PF: predicated region fallthrough
CT: control target
= control target key end

     0   :  { %s4621_s18 = smov 0   ;;  %s4623_s19 = smov 0   ;;  %s5953_s0 = inlined_call_operand.vmem [shape: bf16[20,10,10,4], index: 0, kind: input, shape index: {}, may-alias: {0,1,2}]   ;;  %s5954_s1 = inlined_call_operand.vmem [shape: bf16[20,10,10,4], index: 1, kind: input, shape index: {}, may-alias: {0,1,2}]   ;;  %s5955_s2 = inlined_call_operand.vmem [shape: bf16[20,10,10,4], index: 2, kind: input, shape index: {}, may-alias: {0,1,2}]   ;;  %s5956_s3 = inlined_call_operand.vmem [shape: bf16[27,4,4], index: 3, kind: input, shape index: {}]   ;;  %s5957_s4 = inlined_call_operand.vmem [shape: bf16[16,64,4], index: 4, kind: output, shape index: {0}]   ;;  %s5958_s5 = inlined_call_operand.vmem [shape: f32[16,2,4], index: 5, kind: output, shape index: {1}]  }
   0x1   :  { %s4625_s20 = smov 0   ;;  %s4627_s21 = smov 0  }
   0x2   :  { %s4629_s22 = smov 0  }
   0x3 LB: > { %s25_s23 = sadd.s32 1, %s4581_s20  ;;  %s28_s24 = sadd.s32 1, %s4585_s21  ;;  %s4589_s22 = sphi %s4629_s22, %s16_s22   ;;  %s4585_s21 = sphi %s4627_s21, %s5994_s21   ;;  %s4581_s20 = sphi %s4625_s20, %s5993_s20   ;;  %s4577_s19 = sphi %s4623_s19, %s5992_s19   ;;  %s4573_s18 = sphi %s4621_s18, %s5991_s18  }
   0x4   : > { %p26_p0 = scmp.ge.s32.totalorder %s25_s23, 8  ;;  %p3773_p1 = scmp.ge.s32.totalorder %s4589_s22, 1 }
   0x5   : > { %p262_p2 = scmp.lt.s32.totalorder %s4589_s22, 17 }
   0x6   : > { %s5996_s23 = smov (%p26_p0, %s25_s23), 0  ;;  %s5998_s24 = smov (!%p26_p0, %s28_s24), %s4585_s21 }
   0x7   : > { %p263_p3 = pnand %p3773_p1, %p262_p2  ;;  %p30_p4 = scmp.ge.s32.totalorder %s5998_s24, 2 }
   0x9   : > { %s6000_s24 = smov (%p30_p4, %s5998_s24), 0  ;;  %266 = sbr.rel (%p263_p3) target bundleno = 486 (0x1e6), region = 36 }
   0xe   : > { %v3782_v0 = vld [vmem:[%s5956_s3 + $0x2] sm:$0x3]  ;;  %vm568_vm0 = vcmask 1041408   ;;  %s316_s27 = smul.u32 10, %s4577_s19  ;;  %v425_v2 = vld [vmem:[%s5956_s3] sm:$0x3] }
   0xf   : > { %4454 = vmatprep.subr.msk.bf16.mxu1 %vm568_vm0, %v3782_v0  ;;  %4453 = vmatprep.subr.msk.bf16.mxu0 %vm568_vm0, %v3782_v0  ;;  %v570_v1 = vsel %vm568_vm0, %v3782_v0, 0  ;;  %v3807_v3 = vld [vmem:[%s5956_s3 + $0x4] sm:$0x3]  ;;  %vm426_vm1 = vsmask.f32 3328  ;;  %vm555_vm3 = vcmask 31744  }
  0x10   : > { %4452 = vmatpush3.bf16.msra.mxu1 %v570_v1  ;;  %4182 = vmatpush3.bf16.msra.mxu0 %v570_v1  ;;  %s4666_s30 = sadd.s32 %s4573_s18, %s316_s27  ;;  %vm427_vm2 = vsmask.f32 7440  ;;  %v4724_v37 = vsel %vm568_vm0, %v425_v2, 0  ;;  %v4727_v38 = vsel %vm568_vm0, %v3807_v3, 0  ;;  %vm745_vm5 = vcmask 1042432   ;;  %s3777_s25 = sshll.u32 %s4577_s19, 3 }
  0x11   : > { %p318_p5 = scmp.lt.s32.totalorder %s4666_s30, 19  ;;  %4455 = vmatprep.subr.msk.bf16.mxu1 %vm568_vm0, %v425_v2  ;;  %4456 = vmatprep.subr.msk.bf16.mxu0 %vm568_vm0, %v3807_v3  ;;  %vm4712_vm4 = vmor %vm426_vm1, %vm427_vm2  ;;  %vm746_vm6 = vcmask 1046532   ;;  %s327_s26 = sadd.s32 1, %s4666_s30  ;;  %vm3568_vm8 = vcmask 27648   ;;  %vm3627_vm9 = vcmask 1040384   ;;  %vm3629_vm10 = vcmask 25600  }
  0x12   : > { %vm4802_vm7 = vmor %vm745_vm5, %vm746_vm6  ;;  %p328_p6 = scmp.lt.s32.totalorder %s327_s26, 19  ;;  %s338_s13 = sadd.s32 2, %s4666_s30 }
  0x13   : > { %s319_s8 = scalar_select %p318_p5, %s4666_s30, 19 }
  0x14   : > { %s6002_s26 = smov (!%p328_p6, %s327_s26), 19  ;;  %p339_p7 = scmp.lt.s32.totalorder %s338_s13, 19 }
  0x15   : > { %s4481_s9 = smul.u32 80, %s319_s8  ;;  %s348_s19 = sadd.s32 %s4573_s18, %s3777_s25 }
  0x16   : > { %s4482_s29 = smul.u32 80, %s6002_s26  ;;  %s6004_s13 = smov (!%p339_p7, %s338_s13), 19 }
  0x17   : > { %s4678_s12 = scalar_lea.vmem %s5953_s0, %s4481_s9  ;;  %s4483_s16 = smul.u32 80, %s6004_s13 }
  0x18   : > { %v4681_v4 = vld [vmem:[%s4678_s12] sm:$0xf]  ;;  %v4684_v5 = vld [vmem:[%s4678_s12 + $0x4] sm:$0x1]  ;;  %v4687_v6 = vld [vmem:[%s4678_s12 + $0x8] sm:$0xf]  ;;  %s4963_s10 = scalar_lea.vmem %s5954_s1, %s4482_s29 }
  0x19   : > { %v4690_v7 = vld [vmem:[%s4678_s12 + $0xc] sm:$0x1]  ;;  %v4693_v8 = vld [vmem:[%s4678_s12 + $0x10] sm:$0xf]  ;;  %v430_v9 = vshrl.u32 %v4681_v4, 16  ;;  %v433_v10 = vshll.u32 %v4681_v4, 16  ;;  %v3791_v54 = vcombine.low %v4681_v4, %v4687_v6  ;;  %s5388_s26 = scalar_lea.vmem %s5955_s2, %s4483_s16 }
  0x1a   : > { %v439_v11 = vshll.u32 %v4684_v5, 16  ;;  %v444_v12 = vshrl.u32 %v4687_v6, 16  ;;  %v4700_v13 = vld [vmem:[%s4678_s12 + $0x14] sm:$0x1]  ;;  %v447_v14 = vshll.u32 %v4687_v6, 16  ;;  %v453_v15 = vshll.u32 %v4690_v7, 16 }
  0x1b   : > { %v458_v16 = vshrl.u32 %v4693_v8, 16  ;;  %v461_v17 = vshll.u32 %v4693_v8, 16  ;;  %v432_v18 = vrot.slane %v430_v9, 4  ;;  %v435_v19 = vrot.slane %v433_v10, 5  ;;  %v4707_v21 = vld [vmem:[%s4678_s12 + $0x18] sm:$0xf] }
  0x1c   : > { %v446_v20 = vrot.slane %v444_v12, 4  ;;  %v449_v22 = vrot.slane %v447_v14, 5  ;;  %v441_v26 = vrot.slane %v439_v11, 5  ;;  %v467_v27 = vshll.u32 %v4700_v13, 16  ;;  %v4717_v32 = vld [vmem:[%s4678_s12 + $0x1c] sm:$0x1] }
  0x1d   : > { %v460_v23 = vrot.slane %v458_v16, 4  ;;  %v463_v24 = vrot.slane %v461_v17, 5  ;;  %v436_v25 = vor.u32 %v435_v19, %v432_v18  ;;  %v455_v30 = vrot.slane %v453_v15, 5  ;;  %v4720_v33 = vld [vmem:[%s4678_s12 + $0x20] sm:$0xf]  ;;  %p349_p8 = scmp.lt.s32.totalorder %s348_s19, 15 }
  0x1e   : > { %v450_v29 = vor.u32 %v449_v22, %v446_v20  ;;  %v472_v34 = vshrl.u32 %v4707_v21, 16  ;;  %v469_v36 = vrot.slane %v467_v27, 5  ;;  %v4730_v41 = vld [vmem:[%s4678_s12 + $0x24] sm:$0x1]  ;;  %v475_v43 = vshll.u32 %v4707_v21, 16 }
  0x1f   : > { %v464_v31 = vor.u32 %v463_v24, %v460_v23  ;;  %v437_v35 = vrot.slane %v436_v25, 4  ;;  %v4736_v45 = vld [vmem:[%s4678_s12 + $0x28] sm:$0xf]  ;;  %v481_v46 = vshll.u32 %v4717_v32, 16  ;;  %v486_v47 = vshrl.u32 %v4720_v33, 16  ;;  %s6006_s19 = smov (!%p349_p8, %s348_s19), 15 }
  0x20   : > { %v451_v39 = vrot.slane %v450_v29, 4  ;;  %v474_v42 = vrot.slane %v472_v34, 4  ;;  %v489_v48 = vshll.u32 %v4720_v33, 16  ;;  %v750_v50 = vrot.slane %v4684_v5, 5  ;;  %v4747_v51 = vld [vmem:[%s4678_s12 + $0x2c] sm:$0x1] }
  0x21   : > { %v465_v40 = vrot.slane %v464_v31, 4  ;;  %v442_v44 = vsel %vm4712_vm4, %v437_v35, %v441_v26  ;;  %v4750_v52 = vld [vmem:[%s4678_s12 + $0x30] sm:$0xf]  ;;  %v477_v53 = vrot.slane %v475_v43, 5  ;;  %v4760_v57 = vld [vmem:[%s4678_s12 + $0x34] sm:$0x1] }
  0x22   : > { %v4743_v49 = vsel %vm4712_vm4, %v451_v39, %v455_v30  ;;  %v488_v58 = vrot.slane %v486_v47, 4  ;;  %v495_v59 = vshll.u32 %v4730_v41, 16  ;;  %v483_v61 = vrot.slane %v481_v46, 5  ;;  %v4766_v0 = vld [vmem:[%s4678_s12 + $0x38] sm:$0xf]  ;;  %s4037_s18 = sshll.u32 %s6006_s19, 5 }
  0x23   : > { %v4756_v55 = vsel %vm4712_vm4, %v465_v40, %v469_v36  ;;  %v3783_v56 = vcombine.low %v442_v44, %v4743_v49  ;;  %v478_v60 = vor.u32 %v477_v53, %v474_v42  ;;  %v491_v62 = vrot.slane %v489_v48, 5  ;;  %v4773_v10 = vld [vmem:[%s4678_s12 + $0x3c] sm:$0x1]  ;;  %v3825_v43 = vld [vmem:[%s5956_s3 + $0x8] sm:$0x3]  ;;  %s5894_s28 = scalar_lea.vmem %s5957_s4, %s4037_s18  ;;  %s3781_s29 = sshll.u32 %s6006_s19, 1 }
  0x24   : > { %v500_v63 = vshrl.u32 %v4736_v45, 16  ;;  %v503_v1 = vshll.u32 %v4736_v45, 16  ;;  %v509_v2 = vshll.u32 %v4747_v51, 16  ;;  %v514_v3 = vshrl.u32 %v4750_v52, 16  ;;  %s361_s8 = scalar_lea.vmem %s5958_s5, %s3781_s29 }
  0x25   : > { %4183 = vmatprep.mubr.msk.bf16.mxu0 %vm555_vm3, %v3783_v56  ;;  %v517_v9 = vshll.u32 %v4750_v52, 16  ;;  %v479_v11 = vrot.slane %v478_v60, 4  ;;  %v492_v12 = vor.u32 %v491_v62, %v488_v58  ;;  %v523_v15 = vshll.u32 %v4760_v57, 16 }
  0x26   : > { %v502_v14 = vrot.slane %v500_v63, 4  ;;  %v497_v16 = vrot.slane %v495_v59, 5  ;;  %v505_v17 = vrot.slane %v503_v1, 5  ;;  %v516_v18 = vrot.slane %v514_v3, 4 }
  0x27   : > { %v519_v19 = vrot.slane %v517_v9, 5  ;;  %v4778_v20 = vsel %vm4712_vm4, %v479_v11, %v483_v61  ;;  %v493_v22 = vrot.slane %v492_v12, 4  ;;  %v511_v23 = vrot.slane %v509_v2, 5 }
  0x28   : > { %v528_v24 = vshrl.u32 %v4766_v0, 16  ;;  %v506_v25 = vor.u32 %v505_v17, %v502_v14  ;;  %v531_v27 = vshll.u32 %v4766_v0, 16  ;;  %v537_v29 = vshll.u32 %v4773_v10, 16  ;;  %v3816_v17 = vld [vmem:[%s5956_s3 + $0x6] sm:$0x3] }
  0x29   : > { %v520_v26 = vor.u32 %v519_v19, %v516_v18  ;;  %v754_v30 = vrot.slane %v4690_v7, 5  ;;  %v525_v31 = vrot.slane %v523_v15, 5  ;;  %v4786_v35 = vcombine.low %v4756_v55, %v4778_v20 }
  0x2a   : > { %v530_v34 = vrot.slane %v528_v24, 4  ;;  %v4790_v36 = vsel %vm4712_vm4, %v493_v22, %v497_v16  ;;  %v507_v39 = vrot.slane %v506_v25, 4  ;;  %v533_v42 = vrot.slane %v531_v27, 5  ;;  %v4869_v16 = vld [vmem:[%s4678_s12 + $0x40] sm:$0xf] }
  0x2b   : > { %v521_v40 = vrot.slane %v520_v26, 4  ;;  %v758_v44 = vrot.slane %v4700_v13, 5  ;;  %v539_v7 = vrot.slane %v537_v29, 5  ;;  %v762_v46 = vrot.slane %v4717_v32, 5  ;;  %4184 = vmatmul.mubr.msk.bf16.vlgmr.msra.gmra.mxu0 %vm555_vm3, %v4786_v35  ;;  %v3844_v24 = vld [vmem:[%s5956_s3 + $0xc] sm:$0x3] }
  0x2c   : > { %v766_v47 = vrot.slane %v4730_v41, 5  ;;  %v4808_v53 = vsel %vm4712_vm4, %v507_v39, %v511_v23  ;;  %v534_v56 = vor.u32 %v533_v42, %v530_v34  ;;  %v770_v13 = vrot.slane %v4747_v51, 5  ;;  %4202 = vmatpush3.bf16.msra.mxu0 %v4727_v38  ;;  %v4923_v39 = vld [vmem:[%s4678_s12 + $0x44] sm:$0x1] }
  0x2d   : > { %v3799_v32 = vrot.slane %v4681_v4, 9  ;;  %v4815_v41 = vsel %vm4712_vm4, %v521_v40, %v525_v31  ;;  %v4819_v58 = vcombine.low %v4790_v36, %v4808_v53  ;;  %v3800_v59 = vrot.slane %v4687_v6, 9  ;;  %4458 = vmatprep.subr.msk.bf16.mxu0 %vm568_vm0, %v3825_v43  ;;  %v3835_v40 = vld [vmem:[%s5956_s3 + $0xa] sm:$0x3] }
  0x2e   : > { %v3801_v60 = vrot.slane %v4693_v8, 9  ;;  %v535_v61 = vrot.slane %v534_v56, 4  ;;  %v3802_v51 = vrot.slane %v4707_v21, 9  ;;  %v3803_v62 = vrot.slane %v4720_v33, 9 }
  0x2f   : > { %v751_v38 = vsel %vm4802_vm7, %v3799_v32, %v750_v50  ;;  %4187 = vmatprep.mubr.msk.bf16.mxu1 %vm555_vm3, %v4819_v58  ;;  %v774_v63 = vrot.slane %v4760_v57, 5  ;;  %v4835_v1 = vsel %vm4802_vm7, %v3800_v59, %v754_v30  ;;  %v3804_v50 = vrot.slane %v4736_v45, 9 }
  0x30   : > { %v4839_v5 = vsel %vm4802_vm7, %v3801_v60, %v758_v44  ;;  %v4844_v2 = vsel %vm4712_vm4, %v535_v61, %v539_v7  ;;  %v3808_v3 = vcombine.low %v751_v38, %v4835_v1  ;;  %v4849_v9 = vsel %vm4802_vm7, %v3802_v51, %v762_v46  ;;  %v4994_v38 = vld [vmem:[%s4963_s10 + $0x8] sm:$0xf] }
  0x31   : > { %v4853_v57 = vsel %vm4802_vm7, %v3803_v62, %v766_v47  ;;  %v4857_v11 = vcombine.low %v4815_v41, %v4844_v2  ;;  %v4861_v12 = vcombine.low %v4839_v5, %v4849_v9  ;;  %v1012_v14 = vsel %vm568_vm0, %v3825_v43, 0 }
  0x32   : > { %v4866_v15 = vsel %vm4802_vm7, %v3804_v50, %v770_v13  ;;  %4203 = vmatprep.mubr.msk.bf16.mxu0 %vm555_vm3, %v3808_v3  ;;  %v3805_v19 = vrot.slane %v4750_v52, 9  ;;  %v3806_v22 = vrot.slane %v4766_v0, 9  ;;  %v778_v23 = vrot.slane %v4773_v10, 5  ;;  %v3857_v13 = vld [vmem:[%s5956_s3 + $0x10] sm:$0x3] }
  0x33   : > { %v4877_v18 = vcombine.low %v4853_v57, %v4866_v15  ;;  %4188 = vmatmul.mubr.msk.bf16.vlgmr.msra.gmra.mxu1 %vm555_vm3, %v4857_v11  ;;  %4204 = vmatmul.mubr.msk.bf16.vlgmr.msra.gmra.mxu0 %vm555_vm3, %v4861_v12  ;;  %v979_v26 = vshrl.u32 %v4869_v16, 16  ;;  %v982_v27 = vshll.u32 %v4869_v16, 16  ;;  %v3792_v4 = vcombine.low %v4693_v8, %v4707_v21  ;;  %v3872_v50 = vld [vmem:[%s5956_s3 + $0x14] sm:$0x3]  ;;  %v5003_v3 = vld [vmem:[%s4963_s10 + $0x4] sm:$0x1] }
  0x34   : > { %4192 = vmatpush3.bf16.msra.mxu1 %v4724_v37  ;;  %4193 = vmatprep.mubr.msk.bf16.mxu1 %vm555_vm3, %v3791_v54  ;;  %v4896_v10 = vsel %vm4802_vm7, %v3805_v19, %v774_v63  ;;  %v4900_v25 = vsel %vm4802_vm7, %v3806_v22, %v778_v23  ;;  %v4917_v54 = vcombine.low %v4720_v33, %v4736_v45  ;;  %v903_v34 = vsel %vm568_vm0, %v3816_v17, 0  ;;  %v5008_v22 = vld [vmem:[%s4963_s10 + $0x10] sm:$0xf] }
  0x35   : > { %4457 = vmatprep.subr.msk.bf16.mxu1 %vm568_vm0, %v3816_v17  ;;  %4222 = vmatpush3.bf16.msra.mxu0 %v1012_v14  ;;  %v4913_v37 = vcombine.low %v4896_v10, %v4900_v25  ;;  %v981_v29 = vrot.slane %v979_v26, 4  ;;  %v984_v30 = vrot.slane %v982_v27, 5  ;;  %v3826_v31 = vcombine.low %v4743_v49, %v4756_v55 }
  0x36   : > { %4207 = vmatprep.mubr.msk.bf16.mxu0 %vm555_vm3, %v4877_v18  ;;  %4460 = vmatprep.subr.msk.bf16.mxu0 %vm568_vm0, %v3844_v24  ;;  %v988_v49 = vshll.u32 %v4923_v39, 16  ;;  %v3827_v55 = vcombine.low %v4778_v20, %v4790_v36  ;;  %v4940_v43 = vcombine.low %v4750_v52, %v4766_v0  ;;  %v3817_v44 = vcombine.low %v4687_v6, %v4693_v8 }
  0x37   : > { %v985_v42 = vor.u32 %v984_v30, %v981_v29  ;;  %v3828_v47 = vcombine.low %v4808_v53, %v4815_v41  ;;  %v1196_v56 = vsel %vm568_vm0, %v3844_v24, 0  ;;  %v3818_v8 = vcombine.low %v4707_v21, %v4720_v33  ;;  %v4972_v53 = vld [vmem:[%s4963_s10] sm:$0xf]  ;;  %v3850_v41 = vld [vmem:[%s5956_s3 + $0xe] sm:$0x3] }
  0x38   : > { %v990_v46 = vrot.slane %v988_v49, 5  ;;  %v3819_v36 = vcombine.low %v4736_v45, %v4750_v52  ;;  %v1112_v32 = vsel %vm568_vm0, %v3835_v40, 0  ;;  %v1567_v21 = vshrl.u32 %v4972_v53, 16  ;;  %v4984_v45 = vld [vmem:[%s4678_s12 + $0x48] sm:$0xf] }
  0x39   : > { %v986_v7 = vrot.slane %v985_v42, 4  ;;  %v1570_v33 = vshll.u32 %v4972_v53, 16  ;;  %v1272_v52 = vshrl.u32 %v4984_v45, 16  ;;  %v1275_v59 = vshll.u32 %v4984_v45, 16  ;;  %v5022_v30 = vld [vmem:[%s4963_s10 + $0x14] sm:$0x1] }
  0x3a   : > { %v3820_v60 = vcombine.low %v4766_v0, %v4869_v16  ;;  %v1381_v61 = vsel %vm568_vm0, %v3857_v13, 0  ;;  %v1569_v51 = vrot.slane %v1567_v21, 4  ;;  %v3836_v63 = vcombine.low %v4835_v1, %v4839_v5  ;;  %v5012_v1 = vld [vmem:[%s4963_s10 + $0xc] sm:$0x1]  ;;  %v5079_v21 = vld [vmem:[%s4963_s10 + $0x40] sm:$0xf] }
  0x3b   : > { %4194 = vmatmul.mubr.msk.bf16.vlgmr.msra.gmra.mxu1 %vm555_vm3, %v3792_v4  ;;  %4208 = vmatmul.mubr.msk.bf16.gmra.mxu0 %vm555_vm3, %v4913_v37  ;;  %v4956_v6 = vsel %vm4712_vm4, %v986_v7, %v990_v46  ;;  %v1572_v62 = vrot.slane %v1570_v33, 5  ;;  %v3834_v0 = vrot.slane %v4869_v16, 9  ;;  %v1090_v14 = vrot.slane %v4923_v39, 5 }
  0x3c   : > { %4212 = vmatpush3.bf16.msra.mxu1 %v903_v34  ;;  %4197 = vmatprep.mubr.msk.bf16.mxu1 %vm555_vm3, %v4917_v54  ;;  %v3829_v20 = vcombine.low %v4844_v2, %v4956_v6  ;;  %v384_v2 = vld [vmem:[%s4678_s12 + $0x4c] sm:$0x1]  ;;  %v1274_v17 = vrot.slane %v1272_v52, 4  ;;  %v1277_v19 = vrot.slane %v1275_v59, 5  ;;  %v3856_v23 = vrot.slane %v4984_v45, 9 }
  0x3d   : > { %4223 = vmatprep.mubr.msk.bf16.mxu0 %vm555_vm3, %v3826_v31  ;;  %4459 = vmatprep.subr.msk.bf16.mxu1 %vm568_vm0, %v3835_v40  ;;  %v1371_v24 = vrot.slane %v384_v2, 5  ;;  %v1581_v5 = vshrl.u32 %v4994_v38, 16  ;;  %v1584_v26 = vshll.u32 %v4994_v38, 16  ;;  %v1293_v27 = vsel %vm568_vm0, %v3850_v41, 0  ;;  %v402_v59 = vld [vmem:[%s4963_s10 + $0x44] sm:$0x1] }
  0x3e   : > { %v1576_v29 = vshll.u32 %v5003_v3, 16  ;;  %v5026_v31 = vsel %vm568_vm0, %v3872_v50, 0  ;;  %v1281_v34 = vshll.u32 %v384_v2, 16  ;;  %v1595_v39 = vshrl.u32 %v5008_v22, 16 }
  0x3f   : > { %v3837_v40 = vcombine.low %v4849_v9, %v4853_v57  ;;  %v5036_v42 = vsel %vm4802_vm7, %v3834_v0, %v1090_v14  ;;  %v1278_v49 = vor.u32 %v1277_v19, %v1274_v17  ;;  %v5045_v7 = vsel %vm4802_vm7, %v3856_v23, %v1371_v24  ;;  %v404_v17 = vld [vmem:[%s4963_s10 + $0x4c] sm:$0x1] }
  0x40   : > { %v1583_v9 = vrot.slane %v1581_v5, 4  ;;  %v1586_v57 = vrot.slane %v1584_v26, 5  ;;  %v1604_v46 = vshll.u32 %v5022_v30, 16  ;;  %v2019_v0 = vshrl.u32 %v5079_v21, 16 }
  0x41   : > { %v5081_v33 = vrot.slane %v1278_v49, 4  ;;  %v2022_v14 = vshll.u32 %v5079_v21, 16 }
  0x42   : > { %v2021_v26 = vrot.slane %v2019_v0, 4 }
  0x43   : > { %4198 = vmatmul.mubr.msk.bf16.gmra.mxu1 %vm555_vm3, %v4940_v43  ;;  %4224 = vmatmul.mubr.msk.bf16.vlgmr.msra.gmra.mxu0 %vm555_vm3, %v3827_v55  ;;  %v1590_v55 = vshll.u32 %v5012_v1, 16 }
  0x44   : > { %4213 = vmatprep.mubr.msk.bf16.mxu1 %vm555_vm3, %v3817_v44  ;;  %4242 = vmatpush3.bf16.msra.mxu0 %v1196_v56  ;;  %v5041_v44 = vld [vmem:[%s4963_s10 + $0x18] sm:$0xf]  ;;  %v3845_v56 = vcombine.low %v4869_v16, %v4984_v45  ;;  %v5074_v16 = vrot.slane %v1595_v39, 4 }
  0x45   : > { %4227 = vmatprep.mubr.msk.bf16.mxu0 %vm555_vm3, %v3828_v47  ;;  %4462 = vmatprep.subr.msk.bf16.mxu0 %vm568_vm0, %v3857_v13  ;;  %v3838_v47 = vcombine.low %v4866_v15, %v4896_v10  ;;  %v5070_v15 = vld [vmem:[%s5956_s3 + $0x12] sm:$0x3]  ;;  %v5072_v10 = vrot.slane %v1281_v34, 5  ;;  %v1609_v52 = vshrl.u32 %v5041_v44, 16 }
  0x47   : > { %v1611_v39 = vrot.slane %v1609_v52, 4 }
  0x4b   : > { %4214 = vmatmul.mubr.msk.bf16.vlgmr.msra.gmra.mxu1 %vm555_vm3, %v3818_v8  ;;  %4228 = vmatmul.mubr.msk.bf16.gmra.mxu0 %vm555_vm3, %v3829_v20  ;;  %v5057_v8 = vrot.slane %v1576_v29, 5  ;;  %v5060_v20 = vld [vmem:[%s4963_s10 + $0x20] sm:$0xf] }
  0x4c   : > { %4232 = vmatpush3.bf16.msra.mxu1 %v1112_v32  ;;  %4217 = vmatprep.mubr.msk.bf16.mxu1 %vm555_vm3, %v3819_v36  ;;  %v5063_v36 = vld [vmem:[%s4963_s10 + $0x28] sm:$0xf]  ;;  %v3839_v32 = vcombine.low %v4900_v25, %v5036_v42  ;;  %v5085_v25 = vrot.slane %v1590_v55, 5  ;;  %v1623_v2 = vshrl.u32 %v5060_v20, 16  ;;  %v1626_v23 = vshll.u32 %v5060_v20, 16 }
  0x4d   : > { %4243 = vmatprep.mubr.msk.bf16.mxu0 %vm555_vm3, %v3792_v4  ;;  %4461 = vmatprep.subr.msk.bf16.mxu1 %vm568_vm0, %v3850_v41  ;;  %v1573_v4 = vor.u32 %v1572_v62, %v1569_v51  ;;  %v1612_v51 = vshll.u32 %v5041_v44, 16  ;;  %v1637_v24 = vshrl.u32 %v5063_v36, 16  ;;  %v1640_v5 = vshll.u32 %v5063_v36, 16 }
  0x4e   : > { %v1625_v55 = vrot.slane %v1623_v2, 4 }
  0x4f   : > { %v5055_v13 = vrot.slane %v1573_v4, 4  ;;  %v2028_v4 = vshll.u32 %v402_v59, 16  ;;  %v1614_v49 = vrot.slane %v1612_v51, 5  ;;  %v1639_v51 = vrot.slane %v1637_v24, 4 }
  0x50   : > { %v1642_v2 = vrot.slane %v1640_v5, 5 }
  0x51   : > { %v2030_v0 = vrot.slane %v2028_v4, 5 }
  0x53   : > { %4218 = vmatmul.mubr.msk.bf16.gmra.mxu1 %vm555_vm3, %v3820_v60  ;;  %4244 = vmatmul.mubr.msk.bf16.vlgmr.msra.gmra.mxu0 %vm555_vm3, %v4917_v54  ;;  %v1598_v54 = vshll.u32 %v5008_v22, 16  ;;  %v1587_v60 = vor.u32 %v1586_v57, %v1583_v9  ;;  %v5119_v9 = vld [vmem:[%s4963_s10 + $0x30] sm:$0xf] }
  0x54   : > { %4233 = vmatprep.mubr.msk.bf16.mxu1 %vm555_vm3, %v3836_v63  ;;  %4262 = vmatpush3.bf16.msra.mxu0 %v1381_v61  ;;  %v5089_v61 = vrot.slane %v1604_v46, 5  ;;  %v5094_v63 = vld [vmem:[%s4963_s10 + $0x48] sm:$0xf]  ;;  %v5124_v46 = vld [vmem:[%s5956_s3 + $0x18] sm:$0x3]  ;;  %v1654_v24 = vshll.u32 %v5119_v9, 16 }
  0x55   : > { %4247 = vmatprep.mubr.msk.bf16.mxu0 %vm555_vm3, %v4940_v43  ;;  %4464 = vmatprep.subr.msk.bf16.mxu0 %vm568_vm0, %v3872_v50  ;;  %v5048_v43 = vld [vmem:[%s4963_s10 + $0x1c] sm:$0x1]  ;;  %v5076_v41 = vrot.slane %v1598_v54, 5  ;;  %v2312_v29 = vshrl.u32 %v5094_v63, 16  ;;  %v1588_v34 = vrot.slane %v1587_v60, 4  ;;  %v2315_v54 = vshll.u32 %v5094_v63, 16 }
  0x56   : > { %v1618_v62 = vshll.u32 %v5048_v43, 16  ;;  %v5131_v60 = vld [vmem:[%s4963_s10 + $0x24] sm:$0x1]  ;;  %v3938_v45 = vrot.slane %v5094_v63, 9  ;;  %v2411_v50 = vrot.slane %v404_v17, 5 }
  0x57   : > { %v1601_v19 = vor.u32 %v5076_v41, %v5074_v16  ;;  %v2314_v57 = vrot.slane %v2312_v29, 4  ;;  %v3916_v16 = vrot.slane %v5079_v21, 9  ;;  %v2130_v41 = vrot.slane %v402_v59, 5 }
  0x58   : > { %v2317_v52 = vrot.slane %v2315_v54, 5  ;;  %v1615_v59 = vor.u32 %v1614_v49, %v1611_v39  ;;  %v1643_v54 = vor.u32 %v1642_v2, %v1639_v51  ;;  %v1620_v49 = vrot.slane %v1618_v62, 5  ;;  %v5188_v51 = vld [vmem:[%s4963_s10 + $0x34] sm:$0x1]  ;;  %v5191_v62 = vld [vmem:[%s4963_s10 + $0x3c] sm:$0x1] }
  0x59   : > { %v3889_v2 = vld [vmem:[%s5956_s3 + $0x16] sm:$0x3] }
  0x5a   : > { %v2318_v29 = vor.u32 %v2317_v52, %v2314_v57 }
  0x5b   : > { %4234 = vmatmul.mubr.msk.bf16.vlgmr.msra.gmra.mxu1 %vm555_vm3, %v3837_v40  ;;  %4248 = vmatmul.mubr.msk.bf16.gmra.mxu0 %vm555_vm3, %v3845_v56  ;;  %v2321_v40 = vshll.u32 %v404_v17, 16  ;;  %v5127_v56 = vld [vmem:[%s4963_s10 + $0x38] sm:$0xf] }
  0x5c   : > { %4252 = vmatpush3.bf16.msra.mxu1 %v1293_v27  ;;  %4237 = vmatprep.mubr.msk.bf16.mxu1 %vm555_vm3, %v3838_v47  ;;  %v2024_v27 = vrot.slane %v2022_v14, 5  ;;  %v1628_v47 = vrot.slane %v1626_v23, 5  ;;  %v1651_v23 = vshrl.u32 %v5119_v9, 16  ;;  %v1665_v5 = vshrl.u32 %v5127_v56, 16 }
  0x5d   : > { %4263 = vmatprep.mubr.msk.bf16.mxu0 %vm555_vm3, %v4861_v12  ;;  %4463 = vmatprep.subr.msk.bf16.mxu1 %vm568_vm0, %v5070_v15  ;;  %v2323_v14 = vrot.slane %v2321_v40, 5  ;;  %v1668_v4 = vshll.u32 %v5127_v56, 16  ;;  %v2319_v17 = vrot.slane %v2318_v29, 4  ;;  %v1616_v40 = vrot.slane %v1615_v59, 4 }
  0x5e   : > { %v2025_v12 = vor.u32 %v2024_v27, %v2021_v26  ;;  %v5134_v26 = vld [vmem:[%s4963_s10 + $0x2c] sm:$0x1]  ;;  %v1653_v57 = vrot.slane %v1651_v23, 4  ;;  %v3864_v23 = vcombine.low %v4972_v53, %v4994_v38 }
  0x5f   : > { %v1646_v39 = vshll.u32 %v5134_v26, 16  ;;  %v5213_v59 = vsel %vm4712_vm4, %v1616_v40, %v1620_v49  ;;  %v1847_v40 = vsel %vm568_vm0, %v3889_v2, 0  ;;  %v5271_v49 = vcombine.low %v5060_v20, %v5063_v36 }
  0x60   : > { %v2026_v27 = vrot.slane %v2025_v12, 4 }
  0x61   : > { %v1648_v29 = vrot.slane %v1646_v39, 5  ;;  %v1943_v39 = vsel %vm568_vm0, %v5124_v46, 0 }
  0x63   : > { %4238 = vmatmul.mubr.msk.bf16.gmra.mxu1 %vm555_vm3, %v3839_v32  ;;  %4264 = vmatmul.mubr.msk.bf16.vlgmr.msra.gmra.mxu0 %vm555_vm3, %v4877_v18  ;;  %v5149_v32 = vsel %vm4802_vm7, %v3916_v16, %v2130_v41  ;;  %v5153_v18 = vsel %vm4802_vm7, %v3938_v45, %v2411_v50  ;;  %v1629_v50 = vor.u32 %v1628_v47, %v1625_v55  ;;  %v1656_v16 = vrot.slane %v1654_v24, 5 }
  0x64   : > { %4253 = vmatprep.mubr.msk.bf16.mxu1 %vm555_vm3, %v4786_v35  ;;  %4282 = vmatpush3.bf16.msra.mxu0 %v5026_v31  ;;  %v5160_v35 = vsel %vm4712_vm4, %v1588_v34, %v5085_v25  ;;  %v1632_v31 = vshll.u32 %v5131_v60, 16  ;;  %v3940_v45 = vcombine.low %v5149_v32, %v5153_v18  ;;  %v2324_v25 = vsel %vm4712_vm4, %v2319_v17, %v2323_v14 }
  0x65   : > { %4267 = vmatprep.mubr.msk.bf16.mxu0 %vm555_vm3, %v4913_v37  ;;  %4466 = vmatprep.subr.msk.bf16.mxu0 %vm568_vm0, %v5124_v46  ;;  %v5170_v37 = vsel %vm4712_vm4, %v2026_v27, %v2030_v0  ;;  %v1602_v34 = vrot.slane %v1601_v19, 4  ;;  %v1667_v41 = vrot.slane %v1665_v5, 4  ;;  %v1670_v55 = vrot.slane %v1668_v4, 5 }
  0x66   : > { %v5177_v12 = vcombine.low %v5170_v37, %v2324_v25  ;;  %v1491_v47 = vsel %vm568_vm0, %v5070_v15, 0  ;;  %v5963_v19 = vsel %vm4712_vm4, %v5055_v13, %v5057_v8  ;;  %v1630_v0 = vrot.slane %v1629_v50, 4 }
  0x67   : > { %v3873_v52 = vcombine.low %v5963_v19, %v5160_v35  ;;  %v1634_v14 = vrot.slane %v1632_v31, 5  ;;  %v1644_v27 = vrot.slane %v1643_v54, 4  ;;  %v1284_v13 = vsel %vm4712_vm4, %v5081_v33, %v5072_v10  ;;  %v3907_v19 = vld [vmem:[%s5956_s3 + $0x1a] sm:$0x3] }
  0x68   : > { %v5964_v8 = vcombine.low %v5036_v42, %v5045_v7  ;;  %v5209_v15 = vsel %vm4712_vm4, %v1602_v34, %v5089_v61  ;;  %v1660_v10 = vshll.u32 %v5188_v51, 16  ;;  %v1671_v33 = vor.u32 %v1670_v55, %v1667_v41 }
  0x69   : > { %v1674_v42 = vshll.u32 %v5191_v62, 16  ;;  %v5223_v7 = vsel %vm4712_vm4, %v1630_v0, %v1634_v14  ;;  %v5227_v61 = vsel %vm4712_vm4, %v1644_v27, %v1648_v29  ;;  %v5234_v24 = vcombine.low %v5209_v15, %v5213_v59 }
  0x6a   : > { %v1662_v4 = vrot.slane %v1660_v10, 5  ;;  %v1672_v17 = vrot.slane %v1671_v33, 4  ;;  %v5240_v50 = vcombine.low %v5223_v7, %v5227_v61  ;;  %v5262_v25 = vcombine.low %v5008_v22, %v5041_v44 }
  0x6b   : > { %4254 = vmatmul.mubr.msk.bf16.vlgmr.msra.gmra.mxu1 %vm555_vm3, %v4819_v58  ;;  %4268 = vmatmul.mubr.msk.bf16.gmra.mxu0 %vm555_vm3, %v5964_v8  ;;  %v1657_v58 = vor.u32 %v1656_v16, %v1653_v57  ;;  %v1676_v31 = vrot.slane %v1674_v42, 5  ;;  %v3881_v57 = vrot.slane %v4972_v53, 9  ;;  %v1790_v16 = vrot.slane %v5003_v3, 5 }
  0x6c   : > { %4272 = vmatpush3.bf16.msra.mxu1 %v1491_v47  ;;  %4257 = vmatprep.mubr.msk.bf16.mxu1 %vm555_vm3, %v4857_v11  ;;  %v3851_v11 = vcombine.low %v4956_v6, %v1284_v13  ;;  %v3917_v6 = vld [vmem:[%s5956_s3 + $0x1c] sm:$0x3]  ;;  %v3882_v41 = vrot.slane %v4994_v38, 9  ;;  %v1794_v55 = vrot.slane %v5012_v1, 5  ;;  %v3899_v47 = vcombine.low %v4994_v38, %v5008_v22 }
  0x6d   : > { %4283 = vmatprep.mubr.msk.bf16.mxu0 %vm555_vm3, %v3873_v52  ;;  %4465 = vmatprep.subr.msk.bf16.mxu1 %vm568_vm0, %v3889_v2  ;;  %v1658_v5 = vrot.slane %v1657_v58, 4  ;;  %v5255_v46 = vsel %vm4712_vm4, %v1672_v17, %v1676_v31  ;;  %v1791_v53 = vsel %vm4802_vm7, %v3881_v57, %v1790_v16  ;;  %v5296_v3 = vcombine.low %v5119_v9, %v5127_v56  ;;  %v3926_v31 = vld [vmem:[%s5956_s3 + $0x1e] sm:$0x3]  ;;  %v3945_v57 = vld [vmem:[%s5956_s3 + $0x24] sm:$0x3] }
  0x6e   : > { %v1795_v38 = vsel %vm4802_vm7, %v3882_v41, %v1794_v55  ;;  %v3883_v1 = vrot.slane %v5008_v22, 9  ;;  %v1798_v52 = vrot.slane %v5022_v30, 5  ;;  %v3884_v2 = vrot.slane %v5041_v44, 9  ;;  %v3939_v55 = vld [vmem:[%s5956_s3 + $0x22] sm:$0x3] }
  0x6f   : > { %v5251_v54 = vsel %vm4712_vm4, %v1658_v5, %v1662_v4  ;;  %v3900_v0 = vcombine.low %v5041_v44, %v5060_v20  ;;  %v3890_v14 = vcombine.low %v1791_v53, %v1795_v38  ;;  %v1802_v27 = vrot.slane %v5048_v43, 5  ;;  %v3932_v44 = vld [vmem:[%s5956_s3 + $0x20] sm:$0x3] }
  0x70   : > { %v5266_v34 = vcombine.low %v5251_v54, %v5255_v46  ;;  %v2152_v29 = vsel %vm568_vm0, %v3917_v6, 0  ;;  %v3885_v13 = vrot.slane %v5060_v20, 9  ;;  %v1806_v8 = vrot.slane %v5131_v60, 5 }
  0x71   : > { %v3886_v58 = vrot.slane %v5063_v36, 9  ;;  %v1810_v22 = vrot.slane %v5134_v26, 5  ;;  %v3901_v30 = vcombine.low %v5063_v36, %v5119_v9  ;;  %v1799_v43 = vsel %vm4802_vm7, %v3883_v1, %v1798_v52  ;;  %v406_v1 = vld [vmem:[%s5388_s26 + $0x4] sm:$0x1]  ;;  %v408_v52 = vld [vmem:[%s5388_s26 + $0xc] sm:$0x1] }
  0x72   : > { %v1803_v20 = vsel %vm4802_vm7, %v3884_v2, %v1802_v27  ;;  %v1807_v36 = vsel %vm4802_vm7, %v3885_v13, %v1806_v8  ;;  %v3887_v10 = vrot.slane %v5119_v9, 9  ;;  %v3902_v33 = vcombine.low %v5127_v56, %v5079_v21  ;;  %v5420_v2 = vld [vmem:[%s5388_s26 + $0x10] sm:$0xf] }
  0x73   : > { %4258 = vmatmul.mubr.msk.bf16.gmra.mxu1 %vm555_vm3, %v3851_v11  ;;  %4284 = vmatmul.mubr.msk.bf16.vlgmr.msra.gmra.mxu0 %vm555_vm3, %v5234_v24  ;;  %v1811_v60 = vsel %vm4802_vm7, %v3886_v58, %v1810_v22  ;;  %v5328_v26 = vcombine.low %v1799_v43, %v1803_v20  ;;  %v1814_v11 = vrot.slane %v5188_v51, 5  ;;  %v1818_v5 = vrot.slane %v5191_v62, 5 }
  0x74   : > { %4273 = vmatprep.mubr.msk.bf16.mxu1 %vm555_vm3, %v3864_v23  ;;  %4302 = vmatpush3.bf16.msra.mxu0 %v1943_v39  ;;  %v5333_v42 = vcombine.low %v1807_v36, %v1811_v60  ;;  %v3888_v23 = vrot.slane %v5127_v56, 9  ;;  %v2052_v4 = vsel %vm568_vm0, %v3907_v19, 0  ;;  %v3918_v17 = vcombine.low %v1795_v38, %v1799_v43 }
  0x75   : > { %4287 = vmatprep.mubr.msk.bf16.mxu0 %vm555_vm3, %v5240_v50  ;;  %4468 = vmatprep.subr.msk.bf16.mxu0 %vm568_vm0, %v3917_v6  ;;  %v1815_v9 = vsel %vm4802_vm7, %v3887_v10, %v1814_v11  ;;  %v3919_v51 = vcombine.low %v1803_v20, %v1807_v36  ;;  %v3908_v39 = vcombine.low %v5160_v35, %v5209_v15  ;;  %v2333_v6 = vsel %vm568_vm0, %v3932_v44, 0 }
  0x76   : > { %v1819_v56 = vsel %vm4802_vm7, %v3888_v23, %v1818_v5  ;;  %v3909_v35 = vcombine.low %v5213_v59, %v5223_v7  ;;  %v3910_v16 = vcombine.low %v5227_v61, %v5251_v54  ;;  %v2236_v41 = vsel %vm568_vm0, %v3926_v31, 0  ;;  %v3971_v61 = vld [vmem:[%s5956_s3 + $0x28] sm:$0x3]  ;;  %v5452_v5 = vld [vmem:[%s5388_s26 + $0x30] sm:$0xf] }
  0x77   : > { %v5353_v62 = vcombine.low %v1815_v9, %v1819_v56  ;;  %v3921_v15 = vcombine.low %v1819_v56, %v5149_v32  ;;  %v3911_v59 = vcombine.low %v5255_v46, %v5170_v37  ;;  %v2531_v7 = vsel %vm568_vm0, %v3945_v57, 0  ;;  %v405_v37 = vld [vmem:[%s5388_s26] sm:$0xf]  ;;  %v5404_v46 = vld [vmem:[%s5388_s26 + $0x8] sm:$0xf] }
  0x78   : > { %v2610_v54 = vshll.u32 %v405_v37, 16  ;;  %v3946_v38 = vcombine.low %v405_v37, %v5404_v46  ;;  %v2616_v8 = vshll.u32 %v406_v1, 16  ;;  %v2630_v58 = vshll.u32 %v408_v52, 16 }
  0x79   : > { %v3963_v22 = vrot.slane %v405_v37, 9  ;;  %v2834_v43 = vrot.slane %v408_v52, 5  ;;  %v2638_v36 = vshll.u32 %v5420_v2, 16 }
  0x7a   : > { %v2612_v53 = vrot.slane %v2610_v54, 5  ;;  %v2618_v11 = vrot.slane %v2616_v8, 5 }
  0x7b   : > { %4274 = vmatmul.mubr.msk.bf16.vlgmr.msra.gmra.mxu1 %vm555_vm3, %v5262_v25  ;;  %4288 = vmatmul.mubr.msk.bf16.gmra.mxu0 %vm555_vm3, %v5266_v34 }
  0x7c   : > { %4292 = vmatpush3.bf16.msra.mxu1 %v1847_v40  ;;  %4277 = vmatprep.mubr.msk.bf16.mxu1 %vm555_vm3, %v5271_v49  ;;  %v3920_v40 = vcombine.low %v1811_v60, %v1815_v9  ;;  %v410_v9 = vld [vmem:[%s5388_s26 + $0x14] sm:$0x1] }
  0x7d   : > { %4303 = vmatprep.mubr.msk.bf16.mxu0 %vm555_vm3, %v3899_v47  ;;  %4467 = vmatprep.subr.msk.bf16.mxu1 %vm568_vm0, %v3907_v19  ;;  %v2621_v47 = vshrl.u32 %v5404_v46, 16 }
  0x83   : > { %4278 = vmatmul.mubr.msk.bf16.gmra.mxu1 %vm555_vm3, %v5296_v3  ;;  %4304 = vmatmul.mubr.msk.bf16.vlgmr.msra.gmra.mxu0 %vm555_vm3, %v3900_v0  ;;  %v5423_v0 = vld [vmem:[%s5388_s26 + $0x18] sm:$0xf] }
  0x84   : > { %4293 = vmatprep.mubr.msk.bf16.mxu1 %vm555_vm3, %v3890_v14  ;;  %4322 = vmatpush3.bf16.msra.mxu0 %v2152_v29  ;;  %v2623_v14 = vrot.slane %v2621_v47, 4  ;;  %v5428_v29 = vld [vmem:[%s5388_s26 + $0x20] sm:$0xf]  ;;  %v2649_v60 = vshrl.u32 %v5423_v0, 16  ;;  %v2652_v23 = vshll.u32 %v5423_v0, 16 }
  0x85   : > { %4307 = vmatprep.mubr.msk.bf16.mxu0 %vm555_vm3, %v3901_v30  ;;  %4470 = vmatprep.subr.msk.bf16.mxu0 %vm568_vm0, %v3932_v44  ;;  %v2830_v30 = vrot.slane %v406_v1, 5  ;;  %v3964_v44 = vrot.slane %v5404_v46, 9  ;;  %v2663_v56 = vshrl.u32 %v5428_v29, 16 }
  0x87   : > { %v2665_v47 = vrot.slane %v2663_v56, 4 }
  0x8b   : > { %4294 = vmatmul.mubr.msk.bf16.vlgmr.msra.gmra.mxu1 %vm555_vm3, %v5328_v26  ;;  %4308 = vmatmul.mubr.msk.bf16.gmra.mxu0 %vm555_vm3, %v3902_v33 }
  0x8c   : > { %4312 = vmatpush3.bf16.msra.mxu1 %v2052_v4  ;;  %4297 = vmatprep.mubr.msk.bf16.mxu1 %vm555_vm3, %v5333_v42  ;;  %v5455_v4 = vld [vmem:[%s5388_s26 + $0x38] sm:$0xf] }
  0x8d   : > { %4323 = vmatprep.mubr.msk.bf16.mxu0 %vm555_vm3, %v3918_v17  ;;  %4469 = vmatprep.subr.msk.bf16.mxu1 %vm568_vm0, %v3926_v31  ;;  %v2632_v17 = vrot.slane %v2630_v58, 5  ;;  %v5459_v31 = vsel %vm4802_vm7, %v3963_v22, %v2830_v30  ;;  %v2708_v56 = vshll.u32 %v5455_v4, 16 }
  0x93   : > { %4298 = vmatmul.mubr.msk.bf16.gmra.mxu1 %vm555_vm3, %v5353_v62  ;;  %4324 = vmatmul.mubr.msk.bf16.vlgmr.msra.gmra.mxu0 %vm555_vm3, %v3919_v51  ;;  %v2666_v51 = vshll.u32 %v5428_v29, 16 }
  0x94   : > { %4313 = vmatprep.mubr.msk.bf16.mxu1 %vm555_vm3, %v3908_v39  ;;  %4342 = vmatpush3.bf16.msra.mxu0 %v2333_v6  ;;  %v5466_v39 = vsel %vm4802_vm7, %v3964_v44, %v2834_v43  ;;  %v3967_v43 = vrot.slane %v5428_v29, 9 }
  0x95   : > { %4327 = vmatprep.mubr.msk.bf16.mxu0 %vm555_vm3, %v3920_v40  ;;  %4472 = vmatprep.subr.msk.bf16.mxu0 %vm568_vm0, %v3945_v57  ;;  %v5471_v40 = vld [vmem:[%s5956_s3 + $0x2c] sm:$0x3]  ;;  %v3972_v52 = vcombine.low %v5459_v31, %v5466_v39 }
  0x9b   : > { %4314 = vmatmul.mubr.msk.bf16.vlgmr.msra.gmra.mxu1 %vm555_vm3, %v3909_v35  ;;  %4328 = vmatmul.mubr.msk.bf16.gmra.mxu0 %vm555_vm3, %v3921_v15 }
  0x9c   : > { %4332 = vmatpush3.bf16.msra.mxu1 %v2236_v41  ;;  %4317 = vmatprep.mubr.msk.bf16.mxu1 %vm555_vm3, %v3910_v16  ;;  %v412_v16 = vld [vmem:[%s5388_s26 + $0x1c] sm:$0x1]  ;;  %v2640_v41 = vrot.slane %v2638_v36, 5 }
  0x9d   : > { %4343 = vmatprep.mubr.msk.bf16.mxu0 %vm555_vm3, %v5234_v24  ;;  %4471 = vmatprep.subr.msk.bf16.mxu1 %vm568_vm0, %v3939_v55  ;;  %v2607_v24 = vshrl.u32 %v405_v37, 16  ;;  %v3966_v37 = vrot.slane %v5423_v0, 9 }
  0x9f   : > { %v2609_v19 = vrot.slane %v2607_v24, 4  ;;  %v2842_v24 = vrot.slane %v412_v16, 5 }
  0xa1   : > { %v2613_v13 = vor.u32 %v2612_v53, %v2609_v19  ;;  %v5490_v19 = vcombine.low %v5452_v5, %v5455_v4  ;;  %v414_v53 = vld [vmem:[%s5388_s26 + $0x24] sm:$0x1]  ;;  %v5508_v58 = vsel %vm4802_vm7, %v3966_v37, %v2842_v24  ;;  %v3969_v37 = vrot.slane %v5452_v5, 9 }
  0xa2   : > { %v2672_v30 = vshll.u32 %v414_v53, 16 }
  0xa3   : > { %4318 = vmatmul.mubr.msk.bf16.gmra.mxu1 %vm555_vm3, %v3911_v59  ;;  %4344 = vmatmul.mubr.msk.bf16.vlgmr.msra.gmra.mxu0 %vm555_vm3, %v5240_v50  ;;  %v2624_v50 = vshll.u32 %v5404_v46, 16  ;;  %v2614_v33 = vrot.slane %v2613_v13, 4  ;;  %v3965_v59 = vrot.slane %v5420_v2, 9 }
  0xa4   : > { %4333 = vmatprep.mubr.msk.bf16.mxu1 %vm555_vm3, %v5262_v25  ;;  %4362 = vmatpush3.bf16.msra.mxu0 %v2531_v7  ;;  %v2421_v25 = vsel %vm568_vm0, %v3939_v55, 0  ;;  %v2651_v55 = vrot.slane %v2649_v60, 4  ;;  %v2654_v7 = vrot.slane %v2652_v23, 5  ;;  %v2691_v23 = vshrl.u32 %v5452_v5, 16 }
  0xa5   : > { %4347 = vmatprep.mubr.msk.bf16.mxu0 %vm555_vm3, %v5266_v34  ;;  %4474 = vmatprep.subr.msk.bf16.mxu0 %vm568_vm0, %v3971_v61  ;;  %v3954_v34 = vld [vmem:[%s5956_s3 + $0x26] sm:$0x3]  ;;  %v2626_v27 = vrot.slane %v2624_v50, 5  ;;  %v2668_v50 = vrot.slane %v2666_v51, 5 }
  0xa6   : > { %v2745_v54 = vsel %vm568_vm0, %v3954_v34, 0  ;;  %v2655_v8 = vor.u32 %v2654_v7, %v2651_v55  ;;  %v418_v55 = vld [vmem:[%s5388_s26 + $0x34] sm:$0x1]  ;;  %v2693_v7 = vrot.slane %v2691_v23, 4 }
  0xa7   : > { %v2627_v20 = vor.u32 %v2626_v27, %v2623_v14  ;;  %v2644_v14 = vshll.u32 %v410_v9, 16  ;;  %v2658_v27 = vshll.u32 %v412_v16, 16  ;;  %v2669_v22 = vor.u32 %v2668_v50, %v2665_v47 }
  0xa8   : > { %v2656_v51 = vrot.slane %v2655_v8, 4  ;;  %v2854_v24 = vrot.slane %v418_v55, 5  ;;  %v2710_v47 = vrot.slane %v2708_v56, 5  ;;  %v3970_v50 = vrot.slane %v5455_v4, 9  ;;  %v3999_v56 = vld [vmem:[%s5956_s3 + $0x2e] sm:$0x3] }
  0xa9   : > { %v2628_v15 = vrot.slane %v2627_v20, 4  ;;  %v2846_v20 = vrot.slane %v414_v53, 5  ;;  %v3092_v53 = vsel %vm568_vm0, %v5471_v40, 0 }
  0xab   : > { %4334 = vmatmul.mubr.msk.bf16.vlgmr.msra.gmra.mxu1 %vm555_vm3, %v5271_v49  ;;  %4348 = vmatmul.mubr.msk.bf16.gmra.mxu0 %vm555_vm3, %v5177_v12  ;;  %v3927_v49 = vcombine.low %v5079_v21, %v5094_v63  ;;  %v5435_v12 = vld [vmem:[%s5388_s26 + $0x28] sm:$0xf]  ;;  %v2635_v21 = vshrl.u32 %v5420_v2, 16  ;;  %v2887_v63 = vsel %vm568_vm0, %v3971_v61, 0  ;;  %v2838_v61 = vrot.slane %v410_v9, 5 }
  0xac   : > { %4352 = vmatpush3.bf16.msra.mxu1 %v2421_v25  ;;  %4337 = vmatprep.mubr.msk.bf16.mxu1 %vm555_vm3, %v5296_v3  ;;  %v5439_v3 = vcombine.low %v5420_v2, %v5423_v0  ;;  %v5448_v10 = vcombine.low %v5428_v29, %v5435_v12  ;;  %v2677_v57 = vshrl.u32 %v5435_v12, 16  ;;  %v2680_v35 = vshll.u32 %v5435_v12, 16  ;;  %v416_v25 = vld [vmem:[%s5388_s26 + $0x2c] sm:$0x1] }
  0xad   : > { %4363 = vmatprep.mubr.msk.bf16.mxu0 %vm555_vm3, %v3946_v38  ;;  %4473 = vmatprep.subr.msk.bf16.mxu1 %vm568_vm0, %v3954_v34  ;;  %v2637_v6 = vrot.slane %v2635_v21, 4  ;;  %v5498_v34 = vsel %vm4712_vm4, %v2628_v15, %v2632_v17  ;;  %v2686_v44 = vshll.u32 %v416_v25, 16  ;;  %v5514_v21 = vld [vmem:[%s5956_s3 + $0x2a] sm:$0x3]  ;;  %v3968_v36 = vrot.slane %v5435_v12, 9 }
  0xae   : > { %v2679_v38 = vrot.slane %v2677_v57, 4  ;;  %v2682_v1 = vrot.slane %v2680_v35, 5  ;;  %v2850_v60 = vrot.slane %v416_v25, 5  ;;  %v2694_v17 = vshll.u32 %v5452_v5, 16 }
  0xaf   : > { %v2641_v13 = vor.u32 %v2640_v41, %v2637_v6  ;;  %v2660_v9 = vrot.slane %v2658_v27, 5  ;;  %v2674_v57 = vrot.slane %v2672_v30, 5  ;;  %v2688_v35 = vrot.slane %v2686_v44, 5 }
  0xb0   : > { %v5537_v16 = vsel %vm4802_vm7, %v3967_v43, %v2846_v20  ;;  %v5541_v41 = vsel %vm4802_vm7, %v3968_v36, %v2850_v60  ;;  %v2700_v27 = vshll.u32 %v418_v55, 16  ;;  %v5575_v30 = vsel %vm4802_vm7, %v3969_v37, %v2854_v24  ;;  %v4021_v37 = vld [vmem:[%s5956_s3 + $0x34] sm:$0x3] }
  0xb1   : > { %v2642_v31 = vrot.slane %v2641_v13, 4  ;;  %v5551_v25 = vcombine.low %v5537_v16, %v5541_v41 }
  0xb2   : > { %v2702_v20 = vrot.slane %v2700_v27, 5 }
  0xb3   : > { %4338 = vmatmul.mubr.msk.bf16.gmra.mxu1 %vm555_vm3, %v3927_v49  ;;  %4364 = vmatmul.mubr.msk.bf16.vlgmr.msra.gmra.mxu0 %vm555_vm3, %v5439_v3  ;;  %v5504_v49 = vsel %vm4802_vm7, %v3965_v59, %v2838_v61  ;;  %v420_v59 = vld [vmem:[%s5388_s26 + $0x3c] sm:$0x1]  ;;  %v2696_v61 = vrot.slane %v2694_v17, 5 }
  0xb4   : > { %4353 = vmatprep.mubr.msk.bf16.mxu1 %vm555_vm3, %v5328_v26  ;;  %4382 = vmatpush3.bf16.msra.mxu0 %v2887_v63  ;;  %v2619_v26 = vsel %vm4712_vm4, %v2614_v33, %v2618_v11  ;;  %v2683_v63 = vor.u32 %v2682_v1, %v2679_v38  ;;  %v2646_v11 = vrot.slane %v2644_v14, 5  ;;  %v5533_v6 = vcombine.low %v5504_v49, %v5508_v58  ;;  %v5554_v38 = vld [vmem:[%s5388_s26 + $0x40] sm:$0xf] }
  0xb5   : > { %4367 = vmatprep.mubr.msk.bf16.mxu0 %vm555_vm3, %v5448_v10  ;;  %4476 = vmatprep.subr.msk.bf16.mxu0 %vm568_vm0, %v5471_v40  ;;  %v3955_v33 = vcombine.low %v2619_v26, %v5498_v34  ;;  %v2858_v26 = vrot.slane %v420_v59, 5  ;;  %v4008_v40 = vld [vmem:[%s5956_s3 + $0x30] sm:$0x3]  ;;  %v2697_v8 = vor.u32 %v2696_v61, %v2693_v7  ;;  %v3059_v18 = vshrl.u32 %v5554_v38, 16 }
  0xb6   : > { %v2684_v15 = vrot.slane %v2683_v63, 4  ;;  %v2647_v1 = vsel %vm4712_vm4, %v2642_v31, %v2646_v11  ;;  %v2983_v31 = vsel %vm568_vm0, %v5514_v21, 0  ;;  %v3276_v7 = vsel %vm568_vm0, %v4008_v40, 0 }
  0xb7   : > { %v5580_v32 = vsel %vm4802_vm7, %v3970_v50, %v2858_v26  ;;  %v3061_v23 = vrot.slane %v3059_v18, 4  ;;  %v4014_v50 = vld [vmem:[%s5956_s3 + $0x32] sm:$0x3] }
  0xb8   : > { %v2689_v13 = vsel %vm4712_vm4, %v2684_v15, %v2688_v35  ;;  %v5593_v60 = vcombine.low %v5575_v30, %v5580_v32  ;;  %v3981_v15 = vcombine.low %v5404_v46, %v5420_v2  ;;  %v3982_v2 = vcombine.low %v5423_v0, %v5428_v29 }
  0xb9   : > { %v3984_v0 = vcombine.low %v5455_v4, %v5554_v38  ;;  %v4000_v29 = vcombine.low %v5466_v39, %v5504_v49  ;;  %v4002_v39 = vcombine.low %v5541_v41, %v5575_v30  ;;  %v3998_v49 = vrot.slane %v5554_v38, 9 }
  0xbb   : > { %4354 = vmatmul.mubr.msk.bf16.vlgmr.msra.gmra.mxu1 %vm555_vm3, %v5333_v42  ;;  %4368 = vmatmul.mubr.msk.bf16.gmra.mxu0 %vm555_vm3, %v5490_v19  ;;  %v2705_v42 = vshrl.u32 %v5455_v4, 16 }
  0xbc   : > { %4372 = vmatpush3.bf16.msra.mxu1 %v2745_v54  ;;  %4357 = vmatprep.mubr.msk.bf16.mxu1 %vm555_vm3, %v5353_v62  ;;  %v2670_v62 = vrot.slane %v2669_v22, 4  ;;  %v2714_v22 = vshll.u32 %v420_v59, 16 }
  0xbd   : > { %4383 = vmatprep.mubr.msk.bf16.mxu0 %vm555_vm3, %v3972_v52  ;;  %4475 = vmatprep.subr.msk.bf16.mxu1 %vm568_vm0, %v5514_v21  ;;  %v2707_v54 = vrot.slane %v2705_v42, 4  ;;  %v2661_v52 = vsel %vm4712_vm4, %v2656_v51, %v2660_v9  ;;  %v3990_v9 = vcombine.low %v5498_v34, %v2647_v1  ;;  %v422_v42 = vld [vmem:[%s5388_s26 + $0x44] sm:$0x1] }
  0xbe   : > { %v2675_v14 = vsel %vm4712_vm4, %v2670_v62, %v2674_v57  ;;  %v5587_v43 = vcombine.low %v2647_v1, %v2661_v52  ;;  %v2716_v36 = vrot.slane %v2714_v22, 5  ;;  %v3068_v57 = vshll.u32 %v422_v42, 16 }
  0xbf   : > { %v2711_v44 = vor.u32 %v2710_v47, %v2707_v54  ;;  %v5589_v63 = vcombine.low %v2675_v14, %v2689_v13  ;;  %v3991_v35 = vcombine.low %v2661_v52, %v2675_v14  ;;  %v3983_v54 = vcombine.low %v5435_v12, %v5452_v5  ;;  %v423_v5 = vld [vmem:[%s5388_s26 + $0x48] sm:$0xf]  ;;  %v424_v52 = vld [vmem:[%s5388_s26 + $0x4c] sm:$0x1] }
  0xc0   : > { %v3070_v59 = vrot.slane %v3068_v57, 5  ;;  %v3192_v47 = vsel %vm568_vm0, %v3999_v56, 0  ;;  %v3461_v12 = vsel %vm568_vm0, %v4021_v37, 0  ;;  %v4009_v4 = vcombine.low %v5554_v38, %v423_v5 }
  0xc1   : > { %v2712_v11 = vrot.slane %v2711_v44, 4  ;;  %v3170_v26 = vrot.slane %v422_v42, 5  ;;  %v3361_v44 = vshll.u32 %v424_v52, 16 }
  0xc3   : > { %4358 = vmatmul.mubr.msk.bf16.gmra.mxu1 %vm555_vm3, %v3940_v45  ;;  %4384 = vmatmul.mubr.msk.bf16.vlgmr.msra.gmra.mxu0 %vm555_vm3, %v5533_v6  ;;  %v3062_v45 = vshll.u32 %v5554_v38, 16  ;;  %v2717_v34 = vsel %vm4712_vm4, %v2712_v11, %v2716_v36 }
  0xc4   : > { %4373 = vmatprep.mubr.msk.bf16.mxu1 %vm555_vm3, %v3955_v33  ;;  %4402 = vmatpush3.bf16.msra.mxu0 %v3092_v53  ;;  %v2698_v33 = vrot.slane %v2697_v8, 4 }
  0xc5   : > { %4387 = vmatprep.mubr.msk.bf16.mxu0 %vm555_vm3, %v5551_v25  ;;  %4478 = vmatprep.subr.msk.bf16.mxu0 %vm568_vm0, %v4008_v40  ;;  %v3064_v17 = vrot.slane %v3062_v45, 5  ;;  %v4020_v40 = vrot.slane %v423_v5, 9 }
  0xc6   : > { %v2703_v21 = vsel %vm4712_vm4, %v2698_v33, %v2702_v20 }
  0xc7   : > { %v3065_v51 = vor.u32 %v3064_v17, %v3061_v23  ;;  %v5614_v62 = vcombine.low %v2703_v21, %v2717_v34  ;;  %v3992_v61 = vcombine.low %v2689_v13, %v2703_v21  ;;  %v3451_v13 = vrot.slane %v424_v52, 5 }
  0xc8   : > { %v3363_v23 = vrot.slane %v3361_v44, 5 }
  0xc9   : > { %v3066_v55 = vrot.slane %v3065_v51, 4 }
  0xcb   : > { %4374 = vmatmul.mubr.msk.bf16.vlgmr.msra.gmra.mxu1 %vm555_vm3, %v5587_v43  ;;  %4388 = vmatmul.mubr.msk.bf16.gmra.mxu0 %vm555_vm3, %v5593_v60  ;;  %v5628_v46 = vsel %vm4712_vm4, %v3066_v55, %v3070_v59 }
  0xcc   : > { %4392 = vmatpush3.bf16.msra.mxu1 %v2983_v31  ;;  %4377 = vmatprep.mubr.msk.bf16.mxu1 %vm555_vm3, %v5589_v63  ;;  %v3993_v24 = vcombine.low %v2717_v34, %v5628_v46 }
  0xcd   : > { %4403 = vmatprep.mubr.msk.bf16.mxu0 %vm555_vm3, %v3990_v9  ;;  %4477 = vmatprep.subr.msk.bf16.mxu1 %vm568_vm0, %v3999_v56 }
  0xd3   : > { %4378 = vmatmul.mubr.msk.bf16.gmra.mxu1 %vm555_vm3, %v5614_v62  ;;  %4404 = vmatmul.mubr.msk.bf16.vlgmr.msra.gmra.mxu0 %vm555_vm3, %v3991_v35 }
  0xd4   : > { %4393 = vmatprep.mubr.msk.bf16.mxu1 %vm555_vm3, %v3981_v15  ;;  %4422 = vmatpush3.bf16.msra.mxu0 %v3276_v7 }
  0xd5   : > { %4407 = vmatprep.mubr.msk.bf16.mxu0 %vm555_vm3, %v3992_v61  ;;  %4480 = vmatprep.subr.msk.bf16.mxu0 %vm568_vm0, %v4021_v37 }
  0xdb   : > { %4394 = vmatmul.mubr.msk.bf16.vlgmr.msra.gmra.mxu1 %vm555_vm3, %v3982_v2  ;;  %4408 = vmatmul.mubr.msk.bf16.gmra.mxu0 %vm555_vm3, %v3993_v24 }
  0xdc   : > { %4412 = vmatpush3.bf16.msra.mxu1 %v3192_v47  ;;  %4397 = vmatprep.mubr.msk.bf16.mxu1 %vm555_vm3, %v3983_v54 }
  0xdd   : > { %4423 = vmatprep.mubr.msk.bf16.mxu0 %vm555_vm3, %v5439_v3  ;;  %4479 = vmatprep.subr.msk.bf16.mxu1 %vm568_vm0, %v4014_v50  ;;  %v4001_v3 = vcombine.low %v5508_v58, %v5537_v16  ;;  %v3352_v58 = vshrl.u32 %v423_v5, 16  ;;  %v3355_v16 = vshll.u32 %v423_v5, 16 }
  0xdf   : > { %v3354_v14 = vrot.slane %v3352_v58, 4  ;;  %v3357_v27 = vrot.slane %v3355_v16, 5 }
  0xe3   : > { %4398 = vmatmul.mubr.msk.bf16.gmra.mxu1 %vm555_vm3, %v3984_v0  ;;  %4424 = vmatmul.mubr.msk.bf16.vlgmr.msra.gmra.mxu0 %vm555_vm3, %v5448_v10  ;;  %v3373_v10 = vsel %vm568_vm0, %v4014_v50, 0 }
  0xe4   : > { %4413 = vmatprep.mubr.msk.bf16.mxu1 %vm555_vm3, %v4000_v29  ;;  %4442 = vmatpush3.bf16.msra.mxu0 %v3461_v12 }
  0xe5   : > { %4427 = vmatprep.mubr.msk.bf16.mxu0 %vm555_vm3, %v5490_v19  ;;  %v3171_v19 = vsel %vm4802_vm7, %v3998_v49, %v3170_v26 }
  0xe6   : > { %v4003_v38 = vcombine.low %v5580_v32, %v3171_v19  ;;  %v3452_v32 = vsel %vm4802_vm7, %v4020_v40, %v3451_v13 }
  0xe7   : > { %v4022_v33 = vcombine.low %v3171_v19, %v3452_v32 }
  0xeb   : > { %4414 = vmatmul.mubr.msk.bf16.vlgmr.msra.gmra.mxu1 %vm555_vm3, %v4001_v3  ;;  %v4185_v53 = vpop.f32.mrf.mxu0  ;;  %4428 = vmatmul.mubr.msk.bf16.gmra.mxu0 %vm555_vm3, %v4009_v4 }
  0xec   : > { %4432 = vmatpush3.bf16.msra.mxu1 %v3373_v10  ;;  %4417 = vmatprep.mubr.msk.bf16.mxu1 %vm555_vm3, %v4002_v39 }
  0xed   : > { %v606_v41 = vpop.f32.mrf.mxu0  ;;  %4443 = vmatprep.mubr.msk.bf16.mxu0 %vm555_vm3, %v5533_v6  ;;  %v3358_v6 = vor.u32 %v3357_v27, %v3354_v14 }
  0xef   : > { %v4186_v1 = vpop.f32.mrf.mxu0  ;;  %v3359_v11 = vrot.slane %v3358_v6, 4 }
  0xf1   : > { %v609_v8 = vpop.f32.mrf.mxu0  ;;  %v3364_v48 = vsel %vm4712_vm4, %v3359_v11, %v3363_v23 }
  0xf2   : > { %v4015_v51 = vcombine.low %v5628_v46, %v3364_v48 }
  0xf3   : > { %v4189_v22 = vpop.f32.mrf.mxu1  ;;  %4418 = vmatmul.mubr.msk.bf16.gmra.mxu1 %vm555_vm3, %v4003_v38  ;;  %v4205_v30 = vpop.f32.mrf.mxu0  ;;  %4444 = vmatmul.mubr.msk.bf16.vlgmr.msra.gmra.mxu0 %vm555_vm3, %v5551_v25 }
  0xf4   : > { %4433 = vmatprep.mubr.msk.bf16.mxu1 %vm555_vm3, %v5587_v43  ;;  %4447 = vmatprep.mubr.msk.bf16.mxu0 %vm555_vm3, %v5593_v60 }
  0xf5   : > { %v622_v18 = vpop.f32.mrf.mxu1  ;;  %v843_v45 = vpop.f32.mrf.mxu0 }
  0xf7   : > { %v4190_v20 = vpop.f32.mrf.mxu1  ;;  %v4206_v36 = vpop.f32.mrf.mxu0 }
  0xf9   : > { %v625_v17 = vpop.f32.mrf.mxu1  ;;  %v846_v25 = vpop.f32.mrf.mxu0 }
  0xfb   : > { %v4195_v31 = vpop.f32.mrf.mxu1  ;;  %4434 = vmatmul.mubr.msk.bf16.vlgmr.msra.gmra.mxu1 %vm555_vm3, %v5589_v63  ;;  %v4209_v43 = vpop.f32.mrf.mxu0  ;;  %4448 = vmatmul.mubr.msk.bf16.gmra.mxu0 %vm555_vm3, %v4022_v33 }
  0xfc   : > { %v715_v60 = vadd.f32 %v4195_v31, %v4185_v53  ;;  %4437 = vmatprep.mubr.msk.bf16.mxu1 %vm555_vm3, %v5614_v62 }
  0xfd   : > { %v706_v9 = vpop.f32.mrf.mxu1  ;;  %v859_v42 = vpop.f32.mrf.mxu0 }
  0xfe   : > { %v876_v56 = vadd.f32 %v4205_v30, %v715_v60  ;;  %v707_v21 = vadd.f32 %v706_v9, %v606_v41 }
  0xff   : > { %v4196_v34 = vpop.f32.mrf.mxu1  ;;  %v4210_v57 = vpop.f32.mrf.mxu0 }
 0x100   : > { %v874_v35 = vadd.f32 %v843_v45, %v707_v21  ;;  %v718_v63 = vadd.f32 %v4196_v34, %v4186_v1 }
 0x101   : > { %v709_v15 = vpop.f32.mrf.mxu1  ;;  %v862_v55 = vpop.f32.mrf.mxu0 }
 0x102   : > { %v877_v59 = vadd.f32 %v4206_v36, %v718_v63  ;;  %v710_v7 = vadd.f32 %v709_v15, %v609_v8 }
 0x103   : > { %v4199_v61 = vpop.f32.mrf.mxu1  ;;  %4438 = vmatmul.mubr.msk.bf16.gmra.mxu1 %vm555_vm3, %v4015_v51  ;;  %v4225_v62 = vpop.f32.mrf.mxu0 }
 0x104   : > { %v875_v28 = vadd.f32 %v846_v25, %v710_v7  ;;  %v731_v37 = vadd.f32 %v4199_v61, %v4189_v22 }
 0x105   : > { %v722_v2 = vpop.f32.mrf.mxu1  ;;  %v1048_v24 = vpop.f32.mrf.mxu0 }
 0x106   : > { %v880_v54 = vadd.f32 %v4209_v43, %v731_v37  ;;  %v723_v47 = vadd.f32 %v722_v2, %v622_v18 }
 0x107   : > { %v4200_v50 = vpop.f32.mrf.mxu1  ;;  %v4226_v0 = vpop.f32.mrf.mxu0 }
 0x108   : > { %v878_v46 = vadd.f32 %v859_v42, %v723_v47  ;;  %v734_v29 = vadd.f32 %v4200_v50, %v4190_v20 }
 0x109   : > { %v725_v12 = vpop.f32.mrf.mxu1  ;;  %v1051_v5 = vpop.f32.mrf.mxu0 }
 0x10a   : > { %v881_v3 = vadd.f32 %v4210_v57, %v734_v29  ;;  %v726_v4 = vadd.f32 %v725_v12, %v625_v17 }
 0x10b   : > { %v4215_v39 = vpop.f32.mrf.mxu1  ;;  %v4229_v49 = vpop.f32.mrf.mxu0 }
 0x10c   : > { %v879_v26 = vadd.f32 %v862_v55, %v726_v4  ;;  %v972_v10 = vadd.f32 %v4215_v39, %v876_v56 }
 0x10d   : > { %v939_v53 = vpop.f32.mrf.mxu1  ;;  %v1064_v19 = vpop.f32.mrf.mxu0 }
 0x10e   : > { %v1081_v58 = vadd.f32 %v4225_v62, %v972_v10  ;;  %v970_v16 = vadd.f32 %v939_v53, %v874_v35 }
 0x10f   : > { %v4216_v41 = vpop.f32.mrf.mxu1  ;;  %v4230_v38 = vpop.f32.mrf.mxu0 }
 0x110   : > { %v1079_v1 = vadd.f32 %v1048_v24, %v970_v16  ;;  %v973_v52 = vadd.f32 %v4216_v41, %v877_v59 }
 0x111   : > { %v942_v14 = vpop.f32.mrf.mxu1  ;;  %v1067_v27 = vpop.f32.mrf.mxu0 }
 0x112   : > { %v1082_v40 = vadd.f32 %v4226_v0, %v973_v52  ;;  %v971_v13 = vadd.f32 %v942_v14, %v875_v28 }
 0x113   : > { %v4219_v8 = vpop.f32.mrf.mxu1  ;;  %v4245_v22 = vpop.f32.mrf.mxu0 }
 0x114   : > { %v1080_v30 = vadd.f32 %v1051_v5, %v971_v13  ;;  %v976_v6 = vadd.f32 %v4219_v8, %v880_v54 }
 0x115   : > { %v955_v44 = vpop.f32.mrf.mxu1  ;;  %v1232_v32 = vpop.f32.mrf.mxu0 }
 0x116   : > { %v1085_v18 = vadd.f32 %v4229_v49, %v976_v6  ;;  %v974_v45 = vadd.f32 %v955_v44, %v878_v46 }
 0x117   : > { %v4220_v20 = vpop.f32.mrf.mxu1  ;;  %v4246_v36 = vpop.f32.mrf.mxu0 }
 0x118   : > { %v1083_v33 = vadd.f32 %v1064_v19, %v974_v45  ;;  %v977_v11 = vadd.f32 %v4220_v20, %v881_v3 }
 0x119   : > { %v958_v23 = vpop.f32.mrf.mxu1  ;;  %v1235_v17 = vpop.f32.mrf.mxu0 }
 0x11a   : > { %v1086_v25 = vadd.f32 %v4230_v38, %v977_v11  ;;  %v975_v31 = vadd.f32 %v958_v23, %v879_v26 }
 0x11b   : > { %v4235_v43 = vpop.f32.mrf.mxu1  ;;  %v4249_v60 = vpop.f32.mrf.mxu0 }
 0x11c   : > { %v1084_v48 = vadd.f32 %v1067_v27, %v975_v31  ;;  %v1181_v9 = vadd.f32 %v4235_v43, %v1081_v58 }
 0x11d   : > { %v1148_v42 = vpop.f32.mrf.mxu1  ;;  %v1248_v56 = vpop.f32.mrf.mxu0 }
 0x11e   : > { %v1265_v21 = vadd.f32 %v4245_v22, %v1181_v9  ;;  %v1179_v34 = vadd.f32 %v1148_v42, %v1079_v1 }
 0x11f   : > { %v4236_v51 = vpop.f32.mrf.mxu1  ;;  %v4250_v57 = vpop.f32.mrf.mxu0 }
 0x120   : > { %v1263_v35 = vadd.f32 %v1232_v32, %v1179_v34  ;;  %v1182_v63 = vadd.f32 %v4236_v51, %v1082_v40 }
 0x121   : > { %v1151_v15 = vpop.f32.mrf.mxu1  ;;  %v1251_v55 = vpop.f32.mrf.mxu0 }
 0x122   : > { %v1266_v59 = vadd.f32 %v4246_v36, %v1182_v63  ;;  %v1180_v7 = vadd.f32 %v1151_v15, %v1080_v30 }
 0x123   : > { %v4239_v61 = vpop.f32.mrf.mxu1  ;;  %v4265_v62 = vpop.f32.mrf.mxu0 }
 0x124   : > { %v1264_v28 = vadd.f32 %v1235_v17, %v1180_v7  ;;  %v1185_v37 = vadd.f32 %v4239_v61, %v1085_v18 }
 0x125   : > { %v1164_v2 = vpop.f32.mrf.mxu1  ;;  %v1417_v24 = vpop.f32.mrf.mxu0 }
 0x126   : > { %v1269_v54 = vadd.f32 %v4249_v60, %v1185_v37  ;;  %v1183_v47 = vadd.f32 %v1164_v2, %v1083_v33 }
 0x127   : > { %v4240_v50 = vpop.f32.mrf.mxu1  ;;  %v4266_v0 = vpop.f32.mrf.mxu0 }
 0x128   : > { %v1267_v46 = vadd.f32 %v1248_v56, %v1183_v47  ;;  %v1186_v29 = vadd.f32 %v4240_v50, %v1086_v25 }
 0x129   : > { %v1167_v12 = vpop.f32.mrf.mxu1  ;;  %v1420_v5 = vpop.f32.mrf.mxu0 }
 0x12a   : > { %v1270_v3 = vadd.f32 %v4250_v57, %v1186_v29  ;;  %v1184_v4 = vadd.f32 %v1167_v12, %v1084_v48 }
 0x12b   : > { %v4255_v39 = vpop.f32.mrf.mxu1  ;;  %v4269_v49 = vpop.f32.mrf.mxu0 }
 0x12c   : > { %v1268_v26 = vadd.f32 %v1251_v55, %v1184_v4  ;;  %v1362_v10 = vadd.f32 %v4255_v39, %v1265_v21 }
 0x12d   : > { %v1329_v53 = vpop.f32.mrf.mxu1  ;;  %v1433_v19 = vpop.f32.mrf.mxu0 }
 0x12e   : > { %v1450_v58 = vadd.f32 %v4265_v62, %v1362_v10  ;;  %v1360_v16 = vadd.f32 %v1329_v53, %v1263_v35 }
 0x12f   : > { %v4256_v41 = vpop.f32.mrf.mxu1  ;;  %v4270_v38 = vpop.f32.mrf.mxu0 }
 0x130   : > { %v1448_v1 = vadd.f32 %v1417_v24, %v1360_v16  ;;  %v1363_v52 = vadd.f32 %v4256_v41, %v1266_v59 }
 0x131   : > { %v1332_v14 = vpop.f32.mrf.mxu1  ;;  %v1436_v27 = vpop.f32.mrf.mxu0 }
 0x132   : > { %v1451_v40 = vadd.f32 %v4266_v0, %v1363_v52  ;;  %v1361_v13 = vadd.f32 %v1332_v14, %v1264_v28 }
 0x133   : > { %v4259_v8 = vpop.f32.mrf.mxu1  ;;  %v4285_v22 = vpop.f32.mrf.mxu0 }
 0x134   : > { %v1449_v30 = vadd.f32 %v1420_v5, %v1361_v13  ;;  %v1366_v6 = vadd.f32 %v4259_v8, %v1269_v54 }
 0x135   : > { %v1345_v44 = vpop.f32.mrf.mxu1  ;;  %v1741_v32 = vpop.f32.mrf.mxu0 }
 0x136   : > { %v1454_v18 = vadd.f32 %v4269_v49, %v1366_v6  ;;  %v1364_v45 = vadd.f32 %v1345_v44, %v1267_v46 }
 0x137   : > { %v4260_v20 = vpop.f32.mrf.mxu1  ;;  %v4286_v36 = vpop.f32.mrf.mxu0 }
 0x138   : > { %v1452_v33 = vadd.f32 %v1433_v19, %v1364_v45  ;;  %v1367_v11 = vadd.f32 %v4260_v20, %v1270_v3 }
 0x139   : > { %v1348_v23 = vpop.f32.mrf.mxu1  ;;  %v1744_v17 = vpop.f32.mrf.mxu0 }
 0x13a   : > { %v1455_v25 = vadd.f32 %v4270_v38, %v1367_v11  ;;  %v1365_v31 = vadd.f32 %v1348_v23, %v1268_v26 }
 0x13b   : > { %v4275_v43 = vpop.f32.mrf.mxu1  ;;  %v4289_v60 = vpop.f32.mrf.mxu0 }
 0x13c   : > { %v1453_v48 = vadd.f32 %v1436_v27, %v1365_v31  ;;  %v1560_v9 = vadd.f32 %v4275_v43, %v1450_v58 }
 0x13d   : > { %v1527_v42 = vpop.f32.mrf.mxu1  ;;  %v1757_v56 = vpop.f32.mrf.mxu0 }
 0x13e   : > { %v1774_v21 = vadd.f32 %v4285_v22, %v1560_v9  ;;  %v1558_v34 = vadd.f32 %v1527_v42, %v1448_v1 }
 0x13f   : > { %v4276_v51 = vpop.f32.mrf.mxu1  ;;  %v4290_v57 = vpop.f32.mrf.mxu0 }
 0x140   : > { %v1772_v35 = vadd.f32 %v1741_v32, %v1558_v34  ;;  %v1561_v63 = vadd.f32 %v4276_v51, %v1451_v40 }
 0x141   : > { %v1530_v15 = vpop.f32.mrf.mxu1  ;;  %v1760_v55 = vpop.f32.mrf.mxu0 }
 0x142   : > { %v1775_v59 = vadd.f32 %v4286_v36, %v1561_v63  ;;  %v1559_v7 = vadd.f32 %v1530_v15, %v1449_v30 }
 0x143   : > { %v4279_v61 = vpop.f32.mrf.mxu1  ;;  %v4305_v62 = vpop.f32.mrf.mxu0 }
 0x144   : > { %v1773_v28 = vadd.f32 %v1744_v17, %v1559_v7  ;;  %v1564_v37 = vadd.f32 %v4279_v61, %v1454_v18 }
 0x145   : > { %v1543_v2 = vpop.f32.mrf.mxu1  ;;  %v1979_v24 = vpop.f32.mrf.mxu0 }
 0x146   : > { %v1778_v54 = vadd.f32 %v4289_v60, %v1564_v37  ;;  %v1562_v47 = vadd.f32 %v1543_v2, %v1452_v33 }
 0x147   : > { %v4280_v50 = vpop.f32.mrf.mxu1  ;;  %v4306_v0 = vpop.f32.mrf.mxu0 }
 0x148   : > { %v1776_v46 = vadd.f32 %v1757_v56, %v1562_v47  ;;  %v1565_v29 = vadd.f32 %v4280_v50, %v1455_v25 }
 0x149   : > { %v1546_v12 = vpop.f32.mrf.mxu1  ;;  %v1982_v5 = vpop.f32.mrf.mxu0 }
 0x14a   : > { %v1779_v3 = vadd.f32 %v4290_v57, %v1565_v29  ;;  %v1563_v4 = vadd.f32 %v1546_v12, %v1453_v48 }
 0x14b   : > { %v4295_v39 = vpop.f32.mrf.mxu1  ;;  %v4309_v49 = vpop.f32.mrf.mxu0 }
 0x14c   : > { %v1777_v26 = vadd.f32 %v1760_v55, %v1563_v4  ;;  %v1916_v10 = vadd.f32 %v4295_v39, %v1774_v21 }
 0x14d   : > { %v1883_v53 = vpop.f32.mrf.mxu1  ;;  %v1995_v19 = vpop.f32.mrf.mxu0 }
 0x14e   : > { %v2012_v58 = vadd.f32 %v4305_v62, %v1916_v10  ;;  %v1914_v16 = vadd.f32 %v1883_v53, %v1772_v35 }
 0x14f   : > { %v4296_v41 = vpop.f32.mrf.mxu1  ;;  %v4310_v38 = vpop.f32.mrf.mxu0 }
 0x150   : > { %v2010_v1 = vadd.f32 %v1979_v24, %v1914_v16  ;;  %v1917_v52 = vadd.f32 %v4296_v41, %v1775_v59 }
 0x151   : > { %v1886_v14 = vpop.f32.mrf.mxu1  ;;  %v1998_v27 = vpop.f32.mrf.mxu0 }
 0x152   : > { %v2013_v40 = vadd.f32 %v4306_v0, %v1917_v52  ;;  %v1915_v13 = vadd.f32 %v1886_v14, %v1773_v28 }
 0x153   : > { %v4299_v8 = vpop.f32.mrf.mxu1  ;;  %v4325_v22 = vpop.f32.mrf.mxu0 }
 0x154   : > { %v2011_v30 = vadd.f32 %v1982_v5, %v1915_v13  ;;  %v1920_v6 = vadd.f32 %v4299_v8, %v1778_v54 }
 0x155   : > { %v1899_v44 = vpop.f32.mrf.mxu1  ;;  %v2188_v32 = vpop.f32.mrf.mxu0 }
 0x156   : > { %v2016_v18 = vadd.f32 %v4309_v49, %v1920_v6  ;;  %v1918_v45 = vadd.f32 %v1899_v44, %v1776_v46 }
 0x157   : > { %v4300_v20 = vpop.f32.mrf.mxu1  ;;  %v4326_v36 = vpop.f32.mrf.mxu0 }
 0x158   : > { %v2014_v33 = vadd.f32 %v1995_v19, %v1918_v45  ;;  %v1921_v11 = vadd.f32 %v4300_v20, %v1779_v3 }
 0x159   : > { %v1902_v23 = vpop.f32.mrf.mxu1  ;;  %v2191_v17 = vpop.f32.mrf.mxu0 }
 0x15a   : > { %v2017_v25 = vadd.f32 %v4310_v38, %v1921_v11  ;;  %v1919_v31 = vadd.f32 %v1902_v23, %v1777_v26 }
 0x15b   : > { %v4315_v43 = vpop.f32.mrf.mxu1  ;;  %v4329_v60 = vpop.f32.mrf.mxu0 }
 0x15c   : > { %v2015_v48 = vadd.f32 %v1998_v27, %v1919_v31  ;;  %v2121_v9 = vadd.f32 %v4315_v43, %v2012_v58 }
 0x15d   : > { %v2088_v42 = vpop.f32.mrf.mxu1  ;;  %v2204_v56 = vpop.f32.mrf.mxu0 }
 0x15e   : > { %v5693_v21 = vadd.f32 %v4325_v22, %v2121_v9  ;;  %v2119_v34 = vadd.f32 %v2088_v42, %v2010_v1 }
 0x15f   : > { %v4316_v51 = vpop.f32.mrf.mxu1  ;;  %v4330_v57 = vpop.f32.mrf.mxu0 }
 0x160   : > { %v5695_v35 = vadd.f32 %v2188_v32, %v2119_v34  ;;  %v2122_v63 = vadd.f32 %v4316_v51, %v2013_v40 }
 0x161   : > { %v2091_v15 = vpop.f32.mrf.mxu1  ;;  %v2207_v55 = vpop.f32.mrf.mxu0 }
 0x162   : > { %v5697_v59 = vadd.f32 %v4326_v36, %v2122_v63  ;;  %v2120_v7 = vadd.f32 %v2091_v15, %v2011_v30 }
 0x163   : > { %v4319_v61 = vpop.f32.mrf.mxu1  ;;  %v5699_v62 = vpop.f32.mrf.mxu0 }
 0x164   : > { %v5701_v28 = vadd.f32 %v2191_v17, %v2120_v7  ;;  %v2125_v37 = vadd.f32 %v4319_v61, %v2016_v18 }
 0x165   : > { %v2104_v2 = vpop.f32.mrf.mxu1  ;;  %v5703_v24 = vpop.f32.mrf.mxu0 }
 0x166   : > { %v5705_v54 = vadd.f32 %v4329_v60, %v2125_v37  ;;  %v2123_v47 = vadd.f32 %v2104_v2, %v2014_v33 }
 0x167   : > { %v4320_v50 = vpop.f32.mrf.mxu1  ;;  %v5707_v0 = vpop.f32.mrf.mxu0 }
 0x168   : > { %v5709_v46 = vadd.f32 %v2204_v56, %v2123_v47  ;;  %v2126_v29 = vadd.f32 %v4320_v50, %v2017_v25 }
 0x169   : > { %v2107_v12 = vpop.f32.mrf.mxu1  ;;  %v5711_v5 = vpop.f32.mrf.mxu0 }
 0x16a   : > { %v5713_v3 = vadd.f32 %v4330_v57, %v2126_v29  ;;  %v2124_v4 = vadd.f32 %v2107_v12, %v2015_v48 }
 0x16b   : > { %v4335_v39 = vpop.f32.mrf.mxu1  ;;  %v5715_v49 = vpop.f32.mrf.mxu0 }
 0x16c   : > { %v5717_v26 = vadd.f32 %v2207_v55, %v2124_v4 }
 0x16d   : > { %v2272_v10 = vpop.f32.mrf.mxu1  ;;  %v5719_v53 = vpop.f32.mrf.mxu0 }
 0x16f   : > { %v4336_v19 = vpop.f32.mrf.mxu1  ;;  %v5721_v58 = vpop.f32.mrf.mxu0 }
 0x171   : > { %v2275_v16 = vpop.f32.mrf.mxu1  ;;  %v5723_v41 = vpop.f32.mrf.mxu0 }
 0x173   : > { %v4339_v38 = vpop.f32.mrf.mxu1  ;;  %v5725_v1 = vpop.f32.mrf.mxu0 }
 0x175   : > { %v2288_v52 = vpop.f32.mrf.mxu1  ;;  %v5727_v14 = vpop.f32.mrf.mxu0 }
 0x177   : > { %v5729_v27 = vpop.f32.mrf.mxu1  ;;  %v5731_v40 = vpop.f32.mrf.mxu0 }
 0x179   : > { %v5733_v13 = vpop.f32.mrf.mxu1  ;;  %v5735_v8 = vpop.f32.mrf.mxu0 }
 0x17b   : > { %v4355_v22 = vpop.f32.mrf.mxu1  ;;  %v5737_v30 = vpop.f32.mrf.mxu0 }
 0x17d   : > { %v2457_v6 = vpop.f32.mrf.mxu1  ;;  %v5739_v44 = vpop.f32.mrf.mxu0 }
 0x17f   : > { %v4356_v32 = vpop.f32.mrf.mxu1  ;;  %v5741_v18 = vpop.f32.mrf.mxu0 }
 0x181   : > { %v2460_v45 = vpop.f32.mrf.mxu1  ;;  %v5743_v20 = vpop.f32.mrf.mxu0 }
 0x183   : > { %v5745_v36 = vpop.f32.mrf.mxu1  ;;  %v5747_v33 = vpop.f32.mrf.mxu0 }
 0x185   : > { %v5749_v11 = vpop.f32.mrf.mxu1  ;;  %v5751_v23 = vpop.f32.mrf.mxu0 }
 0x187   : > { %v5753_v17 = vpop.f32.mrf.mxu1  ;;  %v5755_v25 = vpop.f32.mrf.mxu0 }
 0x189   : > { %v5757_v31 = vpop.f32.mrf.mxu1  ;;  %v5759_v43 = vpop.f32.mrf.mxu0 }
 0x18b   : > { %v4375_v60 = vpop.f32.mrf.mxu1  ;;  %v5761_v48 = vpop.f32.mrf.mxu0 }
 0x18c   : > { %5965 = vst [vmem:[#allocation2_spill] sm:$0xff] %v5761_v48 }
 0x18d   : > { %v2781_v9 = vpop.f32.mrf.mxu1  ;;  %v5763_v42 = vpop.f32.mrf.mxu0 }
 0x18e   : > { %5966 = vst [vmem:[#allocation3_spill] sm:$0xff] %v5763_v42 }
 0x18f   : > { %v5765_v56 = vpop.f32.mrf.mxu1  ;;  %v5767_v34 = vpop.f32.mrf.mxu0 }
 0x190   : > { %5967 = vst [vmem:[#allocation4_spill] sm:$0xff] %v5767_v34 }
 0x191   : > { %v5769_v51 = vpop.f32.mrf.mxu1  ;;  %v5771_v57 = vpop.f32.mrf.mxu0 }
 0x192   : > { %5968 = vst [vmem:[#allocation5_spill] sm:$0xff] %v5771_v57  ;;  %v2305_v57 = vadd.f32 %v4335_v39, %v5693_v21 }
 0x193   : > { %v5773_v63 = vpop.f32.mrf.mxu1  ;;  %v5775_v15 = vpop.f32.mrf.mxu0 }
 0x195   : > { %v5777_v55 = vpop.f32.mrf.mxu1  ;;  %v5779_v7 = vpop.f32.mrf.mxu0 }
 0x196   : > { %5969 = vst [vmem:[#allocation6_spill] sm:$0xff] %v5779_v7  ;;  %v2303_v7 = vadd.f32 %v2272_v10, %v5695_v35  ;;  %v2309_v10 = vadd.f32 %v4339_v38, %v5705_v54  ;;  %v2308_v38 = vadd.f32 %v5733_v13, %v5717_v26 }
 0x197   : > { %v5781_v61 = vpop.f32.mrf.mxu1  ;;  %v5783_v37 = vpop.f32.mrf.mxu0 }
 0x198   : > { %5970 = vst [vmem:[#allocation7_spill] sm:$0xff] %v5781_v61  ;;  %5971 = vst [vmem:[#allocation8_spill] sm:$0xff] %v5783_v37  ;;  %v2400_v21 = vadd.f32 %v5703_v24, %v2303_v7  ;;  %v2405_v26 = vadd.f32 %v5723_v41, %v2308_v38 }
 0x199   : > { %v5785_v2 = vpop.f32.mrf.mxu1  ;;  %v5787_v47 = vpop.f32.mrf.mxu0 }
 0x19a   : > { %5972 = vst [vmem:[#allocation9_spill] sm:$0xff] %v5785_v2  ;;  %5973 = vst [vmem:[#allocation10_spill] sm:$0xff] %v5787_v47  ;;  %v2402_v47 = vadd.f32 %v5699_v62, %v2305_v57  ;;  %v2306_v2 = vadd.f32 %v4336_v19, %v5697_v59  ;;  %v2307_v19 = vadd.f32 %v2288_v52, %v5709_v46 }
 0x19b   : > { %v4395_v50 = vpop.f32.mrf.mxu1  ;;  %v5789_v29 = vpop.f32.mrf.mxu0 }
 0x19c   : > { %5974 = vst [vmem:[#allocation11_spill] sm:$0xff] %v5789_v29  ;;  %v2490_v39 = vadd.f32 %v4355_v22, %v2402_v47  ;;  %v2403_v62 = vadd.f32 %v5707_v0, %v2306_v2  ;;  %v2406_v0 = vadd.f32 %v5715_v49, %v2309_v10 }
 0x19d   : > { %v3019_v12 = vpop.f32.mrf.mxu1  ;;  %v5791_v4 = vpop.f32.mrf.mxu0 }
 0x19e   : > { %5975 = vst [vmem:[#allocation12_spill] sm:$0xff] %v5791_v4  ;;  %v2304_v4 = vadd.f32 %v2275_v16, %v5701_v28  ;;  %v2600_v24 = vadd.f32 %v5725_v1, %v2490_v39  ;;  %v2310_v28 = vadd.f32 %v5729_v27, %v5713_v3  ;;  %v2491_v16 = vadd.f32 %v4356_v32, %v2403_v62 }
 0x19f   : > { %v5794_v34 = vpop.f32.mrf.mxu1  ;;  %v5796_v42 = vpop.f32.mrf.mxu0  ;;  %v2404_v3 = vadd.f32 %v5719_v53, %v2307_v19  ;;  %v2494_v27 = vadd.f32 %v5745_v36, %v2406_v0  ;;  %v5978_v19 = vld [vmem:[#allocation7_spill] sm:$0xff] }
 0x1a0   : > { %5976 = vst [vmem:[#allocation13_spill] sm:$0xff] %v5796_v42  ;;  %v2401_v22 = vadd.f32 %v5711_v5, %v2304_v4  ;;  %v2814_v52 = vadd.f32 %v4375_v60, %v2600_v24  ;;  %v2407_v2 = vadd.f32 %v5721_v58, %v2310_v28  ;;  %v2601_v49 = vadd.f32 %v5731_v40, %v2491_v16  ;;  %v5981_v16 = vld [vmem:[#allocation6_spill] sm:$0xff] }
 0x1a1   : > { %v5799_v48 = vpop.f32.mrf.mxu1  ;;  %v5801_v37 = vpop.f32.mrf.mxu0  ;;  %v2604_v40 = vadd.f32 %v5737_v30, %v2494_v27  ;;  %v5984_v27 = vld [vmem:[#allocation8_spill] sm:$0xff] }
 0x1a2   : > { %5977 = vst [vmem:[#allocation14_spill] sm:$0xff] %v5801_v37  ;;  %v2488_v37 = vadd.f32 %v2457_v6, %v2400_v21  ;;  %v2489_v1 = vadd.f32 %v2460_v45, %v2401_v22  ;;  %v2956_v13 = vadd.f32 %v5747_v33, %v2814_v52  ;;  %v2495_v45 = vadd.f32 %v5753_v17, %v2407_v2 }
 0x1a3   : > { %v5805_v29 = vpop.f32.mrf.mxu1  ;;  %v5807_v61 = vpop.f32.mrf.mxu0  ;;  %v2815_v36 = vadd.f32 %v5765_v56, %v2601_v49  ;;  %v2818_v17 = vadd.f32 %v5773_v63, %v2604_v40  ;;  %v5985_v49 = vld [vmem:[#allocation5_spill] sm:$0xff] }
 0x1a4   : > { %v2598_v46 = vadd.f32 %v5727_v14, %v2488_v37  ;;  %v2492_v14 = vadd.f32 %v5749_v11, %v2404_v3  ;;  %v2599_v53 = vadd.f32 %v5735_v8, %v2489_v1  ;;  %v3052_v37 = vadd.f32 %v4395_v50, %v2956_v13 }
 0x1a5   : > { %v5811_v42 = vpop.f32.mrf.mxu1  ;;  %v5813_v35 = vpop.f32.mrf.mxu0  ;;  %v2605_v39 = vadd.f32 %v5741_v18, %v2495_v45  ;;  %v2957_v30 = vadd.f32 %v5755_v25, %v2815_v36  ;;  %v5979_v18 = vld [vmem:[#allocation2_spill] sm:$0xff]  ;;  %v5980_v25 = vld [vmem:[#allocation9_spill] sm:$0xff]  ;;  %v5987_v36 = vld [vmem:[#allocation11_spill] sm:$0xff] }
 0x1a6   : > { %v2812_v32 = vadd.f32 %v2781_v9, %v2598_v46  ;;  %v2493_v9 = vadd.f32 %v5757_v31, %v2405_v26  ;;  %v2813_v11 = vadd.f32 %v5769_v51, %v2599_v53  ;;  %v2602_v8 = vadd.f32 %v5739_v44, %v2492_v14  ;;  %v5982_v46 = vld [vmem:[#allocation3_spill] sm:$0xff]  ;;  %v5986_v14 = vld [vmem:[#allocation10_spill] sm:$0xff] }
 0x1a7   : > { %v5817_v57 = vpop.f32.mrf.mxu1  ;;  %v5819_v59 = vpop.f32.mrf.mxu0  ;;  %v3161_v51 = vadd.f32 %v5775_v15, %v3052_v37  ;;  %v2819_v44 = vadd.f32 %v5978_v19, %v2605_v39  ;;  %v3053_v63 = vadd.f32 %v5794_v34, %v2957_v30  ;;  %v2960_v22 = vadd.f32 %v5979_v18, %v2818_v17  ;;  %v5983_v34 = vld [vmem:[#allocation4_spill] sm:$0xff]  ;;  %v5989_v30 = vld [vmem:[#allocation13_spill] sm:$0xff] }
 0x1a8   : > { %v2954_v41 = vadd.f32 %v5751_v23, %v2812_v32  ;;  %v2603_v23 = vadd.f32 %v5743_v20, %v2493_v9  ;;  %v2816_v50 = vadd.f32 %v5777_v55, %v2602_v8  ;;  %v2955_v62 = vadd.f32 %v5759_v43, %v2813_v11 }
 0x1a9   : > { %v5826_v7 = vpop.f32.mrf.mxu1  ;;  %v5828_v54 = vpop.f32.mrf.mxu0  ;;  %v3056_v43 = vadd.f32 %v5805_v29, %v2960_v22  ;;  %v2961_v3 = vadd.f32 %v5983_v34, %v2819_v44  ;;  %v3162_v32 = vadd.f32 %v5984_v27, %v3053_v63 }
 0x1aa   : > { %v3050_v56 = vadd.f32 %v3019_v12, %v2954_v41  ;;  %v2817_v28 = vadd.f32 %v5980_v25, %v2603_v23  ;;  %v3051_v55 = vadd.f32 %v5799_v48, %v2955_v62  ;;  %v2958_v52 = vadd.f32 %v5982_v46, %v2816_v50 }
 0x1ab   : > { %v4415_v6 = vpop.f32.mrf.mxu1  ;;  %v5834_v5 = vpop.f32.mrf.mxu0  ;;  %v3057_v29 = vadd.f32 %v5817_v57, %v2961_v3  ;;  %v3165_v40 = vadd.f32 %v5987_v36, %v3056_v43 }
 0x1ac   : > { %v3159_v0 = vadd.f32 %v5981_v16, %v3050_v56  ;;  %v3261_v20 = vadd.f32 %v4415_v6, %v3161_v51  ;;  %v2959_v6 = vadd.f32 %v5985_v49, %v2817_v28  ;;  %v3054_v48 = vadd.f32 %v5811_v42, %v2958_v52  ;;  %v5988_v42 = vld [vmem:[#allocation12_spill] sm:$0xff] }
 0x1ad   : > { %v3228_v47 = vpop.f32.mrf.mxu1  ;;  %v5840_v4 = vpop.f32.mrf.mxu0  ;;  %v3160_v13 = vadd.f32 %v5986_v14, %v3051_v55  ;;  %v3166_v57 = vadd.f32 %v5989_v30, %v3057_v29 }
 0x1ae   : > { %v3259_v1 = vadd.f32 %v3228_v47, %v3159_v0  ;;  %v3345_v26 = vadd.f32 %v5807_v61, %v3261_v20  ;;  %v3055_v9 = vadd.f32 %v5826_v7, %v2959_v6  ;;  %v3163_v17 = vadd.f32 %v5988_v42, %v3054_v48 }
 0x1af   : > { %v4416_v58 = vpop.f32.mrf.mxu1  ;;  %v5849_v60 = vpop.f32.mrf.mxu0 }
 0x1b0   : > { %v3262_v47 = vadd.f32 %v4416_v58, %v3162_v32  ;;  %v3343_v41 = vadd.f32 %v5813_v35, %v3259_v1 }
 0x1b1   : > { %v3231_v33 = vpop.f32.mrf.mxu1  ;;  %v5855_v21 = vpop.f32.mrf.mxu0 }
 0x1b2   : > { %v3260_v11 = vadd.f32 %v3231_v33, %v3160_v13  ;;  %v3346_v58 = vadd.f32 %v5819_v59, %v3262_v47  ;;  %v5990_v33 = vld [vmem:[#allocation14_spill] sm:$0xff] }
 0x1b3   : > { %v4419_v10 = vpop.f32.mrf.mxu1  ;;  %v4445_v31 = vpop.f32.mrf.mxu0  ;;  %v3164_v23 = vadd.f32 %v5990_v33, %v3055_v9 }
 0x1b4   : > { %v3265_v61 = vadd.f32 %v4419_v10, %v3165_v40  ;;  %v3344_v51 = vadd.f32 %v5828_v54, %v3260_v11 }
 0x1b5   : > { %v3244_v12 = vpop.f32.mrf.mxu1  ;;  %v3497_v24 = vpop.f32.mrf.mxu0 }
 0x1b6   : > { %v3263_v50 = vadd.f32 %v3244_v12, %v3163_v17  ;;  %v3349_v44 = vadd.f32 %v5834_v5, %v3265_v61 }
 0x1b7   : > { %v4420_v38 = vpop.f32.mrf.mxu1  ;;  %v4446_v15 = vpop.f32.mrf.mxu0 }
 0x1b8   : > { %v3266_v62 = vadd.f32 %v4420_v38, %v3166_v57  ;;  %v3347_v12 = vadd.f32 %v5840_v4, %v3263_v50 }
 0x1b9   : > { %v3247_v2 = vpop.f32.mrf.mxu1  ;;  %v3500_v45 = vpop.f32.mrf.mxu0 }
 0x1ba   : > { %v3264_v63 = vadd.f32 %v3247_v2, %v3164_v23  ;;  %v3350_v0 = vadd.f32 %v5849_v60, %v3266_v62 }
 0x1bb   : > { %v4435_v53 = vpop.f32.mrf.mxu1  ;;  %v4449_v7 = vpop.f32.mrf.mxu0 }
 0x1bc   : > { %v3442_v37 = vadd.f32 %v4435_v53, %v3345_v26  ;;  %v3348_v38 = vadd.f32 %v5855_v21, %v3264_v63 }
 0x1bd   : > { %v3409_v8 = vpop.f32.mrf.mxu1  ;;  %v3513_v16 = vpop.f32.mrf.mxu0 }
 0x1be   : > { %v3530_v56 = vadd.f32 %v4445_v31, %v3442_v37  ;;  %v3440_v39 = vadd.f32 %v3409_v8, %v3343_v41 }
 0x1bf   : > { %v4436_v35 = vpop.f32.mrf.mxu1  ;;  %v4450_v60 = vpop.f32.mrf.mxu0 }
 0x1c0   : > { %v4040_v10 = vpack.c.bf16 %v3530_v56, %v3530_v56  ;;  %v3528_v31 = vadd.f32 %v3497_v24, %v3440_v39  ;;  %v3443_v19 = vadd.f32 %v4436_v35, %v3346_v58  ;;  %v3600_v46 = vmul.f32 %v3530_v56, %v3530_v56 }
 0x1c1   : > { %v3412_v59 = vpop.f32.mrf.mxu1  ;;  %v3580_v27 = vsel %vm555_vm3, %v3530_v56, 0.0  ;;  %v3516_v41 = vpop.f32.mrf.mxu0 }
 0x1c2   : > { %3571 = vst.msk [vmem:[%s5894_s28 + $0x8] sm:$0xf] %vm3568_vm8, %v4040_v10  ;;  %v4038_v18 = vpack.c.bf16 %v3528_v31, %v3528_v31  ;;  %v3531_v22 = vadd.f32 %v4446_v15, %v3443_v19  ;;  %v3441_v25 = vadd.f32 %v3412_v59, %v3344_v51  ;;  %v3598_v24 = vmul.f32 %v3528_v31, %v3528_v31 }
 0x1c3   : > { %v4439_v28 = vpop.f32.mrf.mxu1  ;;  %v3577_v43 = vsel %vm555_vm3, %v3528_v31, 0.0  ;;  %v3609_v13 = vsel %vm555_vm3, %v3600_v46, 0.0 }
 0x1c4   : > { %3569 = vst.msk [vmem:[%s5894_s28] sm:$0xf] %vm3568_vm8, %v4038_v18  ;;  %v3446_v54 = vadd.f32 %v4439_v28, %v3349_v44  ;;  %v4041_v20 = vpack.c.bf16 %v3531_v22, %v3531_v22  ;;  %v3529_v55 = vadd.f32 %v3500_v45, %v3441_v25  ;;  %v3606_v32 = vsel %vm555_vm3, %v3598_v24, 0.0 }
 0x1c5   : > { %v3425_v5 = vpop.f32.mrf.mxu1  ;;  %v3601_v49 = vmul.f32 %v3531_v22, %v3531_v22  ;;  %v3582_v45 = vsel %vm555_vm3, %v3531_v22, 0.0 }
 0x1c6   : > { %v3534_v15 = vadd.f32 %v4449_v7, %v3446_v54  ;;  %v3444_v52 = vadd.f32 %v3425_v5, %v3347_v12  ;;  %3572 = vst.msk [vmem:[%s5894_s28 + $0xc] sm:$0xf] %vm3568_vm8, %v4041_v20  ;;  %v4039_v4 = vpack.c.bf16 %v3529_v55, %v3529_v55  ;;  %v3578_v1 = vsel %vm555_vm3, %v3529_v55, 0.0 }
 0x1c7   : > { %v3599_v34 = vmul.f32 %v3529_v55, %v3529_v55  ;;  %v4440_v3 = vpop.f32.mrf.mxu1  ;;  %v3579_v21 = vadd.f32 %v3578_v1, %v3577_v43  ;;  %v3611_v42 = vsel %vm555_vm3, %v3601_v49, 0.0 }
 0x1c8   : > { %v4044_v2 = vpack.c.bf16 %v3534_v15, %v3534_v15  ;;  %3570 = vst.msk [vmem:[%s5894_s28 + $0x4] sm:$0xf] %vm3568_vm8, %v4039_v4  ;;  %v3532_v48 = vadd.f32 %v3513_v16, %v3444_v52  ;;  %v3447_v26 = vadd.f32 %v4440_v3, %v3350_v0  ;;  %v3604_v58 = vmul.f32 %v3534_v15, %v3534_v15 }
 0x1c9   : > { %v3607_v6 = vsel %vm555_vm3, %v3599_v34, 0.0  ;;  %v3428_v14 = vpop.f32.mrf.mxu1  ;;  %v3581_v29 = vadd.f32 %v3580_v27, %v3579_v21  ;;  %v3588_v50 = vsel %vm555_vm3, %v3534_v15, 0.0 }
 0x1ca   : > { %v3608_v47 = vadd.f32 %v3607_v6, %v3606_v32  ;;  %3575 = vst.msk [vmem:[%s5894_s28 + $0x18] sm:$0xf] %vm3568_vm8, %v4044_v2  ;;  %v3445_v53 = vadd.f32 %v3428_v14, %v3348_v38  ;;  %v4042_v36 = vpack.c.bf16 %v3532_v48, %v3532_v48  ;;  %v3602_v40 = vmul.f32 %v3532_v48, %v3532_v48 }
 0x1cb   : > { %v3535_v9 = vadd.f32 %v4450_v60, %v3447_v26  ;;  %v3583_v11 = vadd.f32 %v3582_v45, %v3581_v29  ;;  %v3584_v17 = vsel %vm555_vm3, %v3532_v48, 0.0  ;;  %v3617_v19 = vsel %vm555_vm3, %v3604_v58, 0.0 }
 0x1cc   : > { %v3610_v37 = vadd.f32 %v3609_v13, %v3608_v47  ;;  %v3533_v8 = vadd.f32 %v3516_v41, %v3445_v53  ;;  %3573 = vst.msk [vmem:[%s5894_s28 + $0x10] sm:$0xf] %vm3568_vm8, %v4042_v36  ;;  %v3613_v35 = vsel %vm555_vm3, %v3602_v40, 0.0 }
 0x1cd   : > { %v4045_v61 = vpack.c.bf16 %v3535_v9, %v3535_v9  ;;  %v3585_v56 = vadd.f32 %v3584_v17, %v3583_v11  ;;  %v3605_v10 = vmul.f32 %v3535_v9, %v3535_v9  ;;  %v3590_v59 = vsel %vm555_vm3, %v3535_v9, 0.0 }
 0x1ce   : > { %v3612_v39 = vadd.f32 %v3611_v42, %v3610_v37  ;;  %v4043_v30 = vpack.c.bf16 %v3533_v8, %v3533_v8  ;;  %v3586_v57 = vsel %vm555_vm3, %v3533_v8, 0.0  ;;  %v3603_v7 = vmul.f32 %v3533_v8, %v3533_v8 }
 0x1cf   : > { %3576 = vst.msk [vmem:[%s5894_s28 + $0x1c] sm:$0xf] %vm3568_vm8, %v4045_v61  ;;  %v3587_v23 = vadd.f32 %v3586_v57, %v3585_v56  ;;  %v3619_v18 = vsel %vm555_vm3, %v3605_v10, 0.0 }
 0x1d0   : > { %v3614_v33 = vadd.f32 %v3613_v35, %v3612_v39  ;;  %3574 = vst.msk [vmem:[%s5894_s28 + $0x14] sm:$0xf] %vm3568_vm8, %v4043_v30  ;;  %v3615_v31 = vsel %vm555_vm3, %v3603_v7, 0.0 }
 0x1d1   : > { %v3589_v51 = vadd.f32 %v3588_v50, %v3587_v23 }
 0x1d2   : > { %v3616_v62 = vadd.f32 %v3615_v31, %v3614_v33 }
 0x1d3   : > { %v3591_v44 = vadd.f32 %v3590_v59, %v3589_v51 }
 0x1d4   : > { %v3618_v63 = vadd.f32 %v3617_v19, %v3616_v62 }
 0x1d5   : > { %v3592_v22 = vrot.slane %v3591_v44, 4 }
 0x1d6   : > { %v3620_v25 = vadd.f32 %v3619_v18, %v3618_v63 }
 0x1d7   : > { %v3593_v28 = vadd.f32 %v3592_v22, %v3591_v44 }
 0x1d8   : > { %v3621_v16 = vrot.slane %v3620_v25, 4 }
 0x1d9   : > { %v3594_v12 = vrot.slane %v3593_v28, 2 }
 0x1da   : > { %v3622_v24 = vadd.f32 %v3621_v16, %v3620_v25 }
 0x1db   : > { %v3595_v54 = vadd.f32 %v3594_v12, %v3593_v28 }
 0x1dc   : > { %v3623_v0 = vrot.slane %v3622_v24, 2 }
 0x1dd   : > { %v3596_v20 = vrot.slane %v3595_v54, 1 }
 0x1de   : > { %v3624_v55 = vadd.f32 %v3623_v0, %v3622_v24 }
 0x1df   : > { %v3597_v38 = vadd.f32 %v3596_v20, %v3595_v54 }
 0x1e0   : > { %v3625_v5 = vrot.slane %v3624_v55, 1 }
 0x1e2   : > { %v3626_v46 = vadd.f32 %v3625_v5, %v3624_v55 }
 0x1e4   : > { %v3628_v15 = vsel %vm3627_vm9, %v3597_v38, %v3626_v46 }
 0x1e5   : > { %3630 = vst.msk [vmem:[%s361_s8] sm:$0x3] %vm3629_vm10, %v3628_v15 }
 0x1e6 PF: > { %s16_s22 = sadd.s32 1, %s4589_s22   ;;  %s5991_s18 = smov %s4581_s20 }
 0x1e7   : > { %p13_p9 = scmp.ge.s32.totalorder %s16_s22, 18   ;;  %s5992_s19 = smov %s4585_s21 }
 0x1e8   : > { %s5993_s20 = smov %s5996_s23  ;;  %s5994_s21 = smov %s6000_s24 }
 0x1e9   :  { %15 = sbr.rel (!%p13_p9) target bundleno = 3 (0x3), region = 110 }

</bundles_post_ra>
